<compile_context>
chip_gen: v7x
topology: tpu7x:2x2x1
jax: 0.10.0
libtpu: 0.0.40
codegen_flags: <defaults>
</compile_context>

<pallas_src>
import math
import functools

import jax
import jax.numpy as jnp
from jax.experimental import pallas as pl
from jax.experimental.pallas import tpu as pltpu


def _vmem_limit_bytes():
    """Per-generation VMEM limit: ~75% of physical (96 MiB v5e/v6e, 48 MiB v7x)."""
    phys = 64 * 1024 * 1024
    try:
        info = pltpu.get_tpu_info()
        phys = int(getattr(info, "vmem_capacity_bytes", phys) or phys)
    except Exception:
        pass
    return int(phys * 3 // 4)


_VMEM_LIMIT = _vmem_limit_bytes()


# ----------------------------- kernels --------------------------------------

def _fc1_kernel(x_ref, w_ref, b_ref, o_ref, *, apply_relu: bool):
    """o = [relu](x @ w1 + b1); bf16 MXU operands, f32 accumulate, bf16 output."""
    x = x_ref[...].astype(jnp.bfloat16)
    acc = jnp.dot(x, w_ref[...], preferred_element_type=jnp.float32)
    acc = acc + b_ref[...].astype(jnp.float32)
    if apply_relu:                       # linear=True path, fused (free VPU work)
        acc = jnp.maximum(acc, 0.0)
    o_ref[...] = acc.astype(o_ref.dtype)   # bf16 hidden activation -> HBM


def _dwconv_gelu_fc2_kernel(h_mid_ref, h_top_ref, h_bot_ref,
                            wc_ref, bc_ref, w2_ref, b2_ref,
                            o_ref, pad_ref):
    """Fused dwconv3x3(pad=1) + bias + residual + exact GELU + fc2, one row tile.

    h_mid: (1, tH, W, Hid) bf16 hidden-activation row tile
    h_top/h_bot: (1, 1, W, Hid) halo rows (clamped index maps; zeroed at edges)
    pad_ref: (tH+2, W+2, Hid) f32 VMEM scratch with the zero-padded tile
    o_ref: (1, tH, W, Cout) final output tile
    """
    _, TH, W, HID = h_mid_ref.shape
    COUT = o_ref.shape[-1]
    r = pl.program_id(1)
    nr = pl.num_programs(1)

    xm = h_mid_ref[0].astype(jnp.float32)                        # (TH, W, HID)
    top_ok = (r > 0).astype(jnp.float32)
    bot_ok = (r < nr - 1).astype(jnp.float32)
    top = h_top_ref[...].astype(jnp.float32)[0] * top_ok         # (1, W, HID)
    bot = h_bot_ref[...].astype(jnp.float32)[0] * bot_ok         # (1, W, HID)

    # Build the zero-padded tile in VMEM once; all 9 taps are static slices of
    # it (no shifted full-size copies / concatenates).
    zcol = jnp.zeros((TH + 2, 1, HID), jnp.float32)
    pad_ref[:, 0:1, :] = zcol
    pad_ref[:, W + 1:W + 2, :] = zcol
    pad_ref[0:1, 1:W + 1, :] = top
    pad_ref[TH + 1:TH + 2, 1:W + 1, :] = bot
    pad_ref[1:TH + 1, 1:W + 1, :] = xm

    # Per-tap (1, 1, HID) weights hoisted out of the accumulation loop.
    w = wc_ref[...].astype(jnp.float32)                          # (3, 3, HID)
    w_taps = [[w[kh:kh + 1, kw:kw + 1, :] for kw in range(3)] for kh in range(3)]

    acc = jnp.zeros((TH, W, HID), jnp.float32)
    for kh in range(3):
        for kw in range(3):
            acc = acc + pad_ref[kh:kh + TH, kw:kw + W, :] * w_taps[kh][kw]

    y = acc + bc_ref[...].astype(jnp.float32) + xm               # conv + bias + residual
    y = 0.5 * y * (1.0 + jax.lax.erf(y * (1.0 / math.sqrt(2.0))))  # exact GELU

    # fc2 fused in: the activated tensor never round-trips HBM.
    y2 = y.reshape(TH * W, HID).astype(jnp.bfloat16)
    out = jnp.dot(y2, w2_ref[...], preferred_element_type=jnp.float32)
    out = out + b2_ref[...].astype(jnp.float32)
    o_ref[0] = out.reshape(TH, W, COUT).astype(o_ref.dtype)


# ----------------------------- tile pickers ----------------------------------

def _pick_tile_m(M, bytes_per_row, fixed_bytes, budget, min_steps=4):
    """Largest divisor tile fitting the VMEM budget, preferring >=min_steps steps."""
    best = None
    for t in (512, 256, 128, 64, 32, 16, 8):
        if M % t:
            continue
        if 2 * t * bytes_per_row + fixed_bytes > budget:   # double-buffered blocks
            continue
        if best is None:
            best = t
        if M // t >= min_steps:
            return t
    return best if best is not None else M


def _pick_tile_h(B, H, W, hid, cout, out_itemsize, budget, min_steps=4):
    best = None
    for t in (64, 32, 16, 8, 4, 2, 1):
        if H % t:
            continue
        ws = (2 * t * W * hid * 2                                  # h_mid bf16, 2 bufs
              + 4 * W * hid * 2                                    # halo rows
              + 2 * (hid * cout * 2 + 9 * hid * 4 + hid * 4 + cout * 4)  # weights/biases
              + 2 * t * W * cout * out_itemsize                    # output block
              + (t + 2) * (W + 2) * hid * 4                        # padded scratch (f32)
              + 4 * t * W * hid * 4)                               # f32 temporaries
        if ws > budget:
            continue
        if best is None:
            best = t
        if B * (H // t) >= min_steps:
            return t
    return best if best is not None else 1


# ----------------------------- wrappers --------------------------------------

def fc1(x2d, w1_bf16, b1, *, apply_relu, vmem_limit):
    M, Cin = x2d.shape
    Hid = w1_bf16.shape[1]
    in_b = Cin * jnp.dtype(x2d.dtype).itemsize
    out_b = Hid * 2                                    # bf16 hidden activation
    fixed = 2 * (Cin * Hid * 2 + Hid * 4)              # resident w1 (bf16) + b1
    tm = _pick_tile_m(M, in_b + out_b, fixed, budget=int(vmem_limit * 0.6))
    kernel = functools.partial(_fc1_kernel, apply_relu=apply_relu)
    ce = pl.CostEstimate(
        flops=int(2 * M * Cin * Hid),
        transcendentals=0,
        bytes_accessed=int(M * in_b + Cin * Hid * 2 + Hid * 4 + M * out_b))
    return pl.pallas_call(
        kernel,
        out_shape=jax.ShapeDtypeStruct((M, Hid), jnp.bfloat16),
        grid=(M // tm,),
        in_specs=[pl.BlockSpec((tm, Cin), lambda i: (i, 0)),
                  pl.BlockSpec((Cin, Hid), lambda i: (0, 0)),    # weight resident
                  pl.BlockSpec((1, Hid), lambda i: (0, 0))],
        out_specs=pl.BlockSpec((tm, Hid), lambda i: (i, 0)),
        compiler_params=pltpu.CompilerParams(
            dimension_semantics=("parallel",),
            vmem_limit_bytes=vmem_limit),
        cost_estimate=ce,
    )(x2d, w1_bf16, b1)


def dwconv_gelu_fc2(h_nhwc, wc, bc, w2_bf16, b2, out_dtype, vmem_limit):
    """Row-tiled fused depthwise 3x3 conv + bias + residual + GELU + fc2."""
    B, H, W, HID = h_nhwc.shape
    COUT = w2_bf16.shape[1]
    out_isz = jnp.dtype(out_dtype).itemsize
    tH = _pick_tile_h(B, H, W, HID, COUT, out_isz, budget=int(vmem_limit * 0.6))
    nR = H // tH

    ce = pl.CostEstimate(
        flops=int(B * H * W * (HID * (2 * 9 + 12) + 2 * HID * COUT)),
        transcendentals=int(B * H * W * HID),
        bytes_accessed=int(B * H * (W * HID * 2 * (tH + 2) // tH + W * COUT * out_isz)
                           + HID * COUT * 2 + 10 * HID * 4 + COUT * 4))

    return pl.pallas_call(
        _dwconv_gelu_fc2_kernel,
        out_shape=jax.ShapeDtypeStruct((B, H, W, COUT), out_dtype),
        grid=(B, nR),
        in_specs=[
            # current row tile
            pl.BlockSpec((1, tH, W, HID), lambda b, r: (b, r, 0, 0)),
            # 1-row halos: block size 1 in the row dim -> block index == row
            # index; clamped at image edges (kernel zeroes them there).
            pl.BlockSpec((1, 1, W, HID),
                         lambda b, r: (b, jnp.maximum(r * tH - 1, 0), 0, 0)),
            pl.BlockSpec((1, 1, W, HID),
                         lambda b, r: (b, jnp.minimum(r * tH + tH, H - 1), 0, 0)),
            pl.BlockSpec((3, 3, HID), lambda b, r: (0, 0, 0)),
            pl.BlockSpec((1, HID), lambda b, r: (0, 0)),
            pl.BlockSpec((HID, COUT), lambda b, r: (0, 0)),      # resident fc2 weight
            pl.BlockSpec((1, COUT), lambda b, r: (0, 0)),
        ],
        out_specs=pl.BlockSpec((1, tH, W, COUT), lambda b, r: (b, r, 0, 0)),
        scratch_shapes=[pltpu.VMEM((tH + 2, W + 2, HID), jnp.float32)],
        compiler_params=pltpu.CompilerParams(
            dimension_semantics=("parallel", "parallel"),
            vmem_limit_bytes=vmem_limit),
        cost_estimate=ce,
    )(h_nhwc, h_nhwc, h_nhwc, wc, bc, w2_bf16, b2)


@functools.partial(jax.jit, static_argnames=("H", "W", "linear"))
def mlp_forward(x, params, H, W, linear=False):
    """x: (B, N, C_in) with N == H*W.  Returns (B, N, C_out)."""
    B, N, Cin = x.shape
    vmem_limit = _VMEM_LIMIT

    # bf16 weights for the MXU (halves resident-weight DMA / VMEM footprint).
    w1 = params["w1"].astype(jnp.bfloat16)
    w2 = params["w2"].astype(jnp.bfloat16)

    h = fc1(x.reshape(B * N, Cin), w1, params["b1"],
            apply_relu=linear, vmem_limit=vmem_limit)             # (B*N, Hid) bf16
    Hid = h.shape[-1]
    # TODO(synk): fuse fc1 into the same row-tiled kernel (recompute tH+2 halo
    # rows per tile) to remove the remaining hidden-activation HBM round trip.
    out = dwconv_gelu_fc2(h.reshape(B, H, W, Hid), params["wc"], params["bc"],
                          w2, params["b2"], x.dtype, vmem_limit)  # (B, H, W, Cout)
    # Dropout with drop=0.0 is identity.
    return out.reshape(B, N, -1)


def init_params(key, in_features, hidden_features, out_features):
    k1, k2, k3 = jax.random.split(key, 3)
    # fc1 / fc2: trunc_normal(std=0.02) approximated by normal, bias = 0.
    w1 = 0.02 * jax.random.normal(k1, (in_features, hidden_features), jnp.float32)
    b1 = jnp.zeros((1, hidden_features), jnp.float32)
    # depthwise conv: normal(0, sqrt(2/fan_out)), fan_out = 3*3*dim/groups = 9
    wc = math.sqrt(2.0 / 9.0) * jax.random.normal(
        k2, (3, 3, hidden_features), jnp.float32)
    bc = jnp.zeros((1, hidden_features), jnp.float32)
    w2 = 0.02 * jax.random.normal(k3, (hidden_features, out_features), jnp.float32)
    b2 = jnp.zeros((1, out_features), jnp.float32)
    return dict(w1=w1, b1=b1, wc=wc, bc=bc, w2=w2, b2=b2)


# ----------------------------- reference (pure JAX) ---------------------------

def mlp_reference(x, params, H, W, linear=False):
    B, N, Cin = x.shape
    h = x @ params["w1"] + params["b1"]                    # (B, N, Hid)
    if linear:
        h = jnp.maximum(h, 0.0)
    Hid = h.shape[-1]
    xn = h.reshape(B, H, W, Hid)
    conv = jax.lax.conv_general_dilated(
        xn, params["wc"].reshape(3, 3, 1, Hid),
        window_strides=(1, 1), padding="SAME",
        dimension_numbers=("NHWC", "HWIO", "NHWC"),
        feature_group_count=Hid) + params["bc"]
    y = conv.reshape(B, N, Hid) + h
    y = jax.nn.gelu(y, approximate=False)
    return y @ params["w2"] + params["b2"]


# ----------------------------- main -------------------------------------------

if __name__ == "__main__":
    B, H, W = 2, 16, 16
    N = H * W
    in_features, hidden_features = 128, 256   # multiples of 128 (lane-dense)
    out_features = in_features

    key = jax.random.PRNGKey(0)
    kx, kp = jax.random.split(key)
    x = jax.random.normal(kx, (B, N, in_features), jnp.float32)
    params = init_params(kp, in_features, hidden_features, out_features)

    # GELU (linear=False) path.
    out = jax.block_until_ready(mlp_forward(x, params, H=H, W=W, linear=False))
    ref = mlp_reference(x, params, H, W, linear=False)
    assert out.shape == (B, N, out_features)
    # bf16 activations / MXU operands (f32 accumulate) -> looser tolerance.
    assert jnp.allclose(out, ref, rtol=2e-2, atol=1e-2), "mismatch (gelu path)"

    # linear=True fused-ReLU path.
    out_lin = jax.block_until_ready(mlp_forward(x, params, H=H, W=W, linear=True))
    ref_lin = mlp_reference(x, params, H, W, linear=True)
    assert jnp.allclose(out_lin, ref_lin, rtol=2e-2, atol=1e-2), "mismatch (linear path)"

    print("KERNEL_OK")
</pallas_src>

<mosaic_0001>
module attributes {stable_mosaic.version = 11 : i64} {
  func.func @_dwconv_gelu_fc2_kernel(%arg0: i32, %arg1: i32, %arg2: memref<1x8x16x256xbf16, #tpu.memory_space<vmem>>, %arg3: memref<1x1x16x256xbf16, #tpu.memory_space<vmem>>, %arg4: memref<1x1x16x256xbf16, #tpu.memory_space<vmem>>, %arg5: memref<3x3x256xf32, #tpu.memory_space<vmem>>, %arg6: memref<1x256xf32, #tpu.memory_space<vmem>>, %arg7: memref<256x128xbf16, #tpu.memory_space<vmem>>, %arg8: memref<1x128xf32, #tpu.memory_space<vmem>>, %arg9: memref<1x8x16x128xf32, #tpu.memory_space<vmem>>, %arg10: memref<10x18x256xf32, #tpu.memory_space<vmem>>) attributes {dimension_semantics = [#tpu.dimension_semantics<parallel>, #tpu.dimension_semantics<parallel>], iteration_bounds = array<i64: 2, 2>, scalar_prefetch = 0 : i64, scratch_operands = 1 : i64, tpu.core_type = #tpu.core_type<tc>, window_params = [{transform_indices = @transform_0, window_bounds = array<i64: 1, 8, 16, 256>}, {transform_indices = @transform_1, window_bounds = array<i64: 1, 1, 16, 256>}, {transform_indices = @transform_2, window_bounds = array<i64: 1, 1, 16, 256>}, {pipeline_mode = #tpu.pipeline_mode<synchronous>, transform_indices = @transform_3, window_bounds = array<i64: 3, 3, 256>}, {pipeline_mode = #tpu.pipeline_mode<synchronous>, transform_indices = @transform_4, window_bounds = array<i64: 1, 256>}, {pipeline_mode = #tpu.pipeline_mode<synchronous>, transform_indices = @transform_5, window_bounds = array<i64: 256, 128>}, {pipeline_mode = #tpu.pipeline_mode<synchronous>, transform_indices = @transform_6, window_bounds = array<i64: 1, 128>}, {transform_indices = @transform_7, window_bounds = array<i64: 1, 8, 16, 128>}]} {
    %c0 = arith.constant 0 : index
    %c0_0 = arith.constant 0 : index
    %c0_1 = arith.constant 0 : index
    %c0_2 = arith.constant 0 : index
    %0 = vector.load %arg2[%c0, %c0_0, %c0_1, %c0_2] : memref<1x8x16x256xbf16, #tpu.memory_space<vmem>>, vector<1x8x16x256xbf16>
    %1 = vector.shape_cast %0 : vector<1x8x16x256xbf16> to vector<8x16x256xbf16>
    %2 = arith.extf %1 : vector<8x16x256xbf16> to vector<8x16x256xf32>
    %c0_i32 = arith.constant 0 : i32
    %3 = arith.cmpi sgt, %arg1, %c0_i32 : i32
    %4 = arith.extui %3 : i1 to i32
    %5 = arith.sitofp %4 : i32 to f32
    %c1_i32 = arith.constant 1 : i32
    %6 = arith.cmpi slt, %arg1, %c1_i32 : i32
    %7 = arith.extui %6 : i1 to i32
    %8 = arith.sitofp %7 : i32 to f32
    %c0_3 = arith.constant 0 : index
    %c0_4 = arith.constant 0 : index
    %c0_5 = arith.constant 0 : index
    %c0_6 = arith.constant 0 : index
    %9 = vector.load %arg3[%c0_3, %c0_4, %c0_5, %c0_6] : memref<1x1x16x256xbf16, #tpu.memory_space<vmem>>, vector<1x1x16x256xbf16>
    %10 = arith.extf %9 : vector<1x1x16x256xbf16> to vector<1x1x16x256xf32>
    %11 = vector.shape_cast %10 : vector<1x1x16x256xf32> to vector<1x16x256xf32>
    %12 = vector.broadcast %5 : f32 to vector<1x16x256xf32>
    %13 = arith.mulf %11, %12 : vector<1x16x256xf32>
    %c0_7 = arith.constant 0 : index
    %c0_8 = arith.constant 0 : index
    %c0_9 = arith.constant 0 : index
    %c0_10 = arith.constant 0 : index
    %14 = vector.load %arg4[%c0_7, %c0_8, %c0_9, %c0_10] : memref<1x1x16x256xbf16, #tpu.memory_space<vmem>>, vector<1x1x16x256xbf16>
    %15 = arith.extf %14 : vector<1x1x16x256xbf16> to vector<1x1x16x256xf32>
    %16 = vector.shape_cast %15 : vector<1x1x16x256xf32> to vector<1x16x256xf32>
    %17 = vector.broadcast %8 : f32 to vector<1x16x256xf32>
    %18 = arith.mulf %16, %17 : vector<1x16x256xf32>
    %cst = arith.constant 0.000000e+00 : f32
    %19 = vector.broadcast %cst : f32 to vector<10x1x256xf32>
    %c0_11 = arith.constant 0 : index
    %c0_12 = arith.constant 0 : index
    %c0_13 = arith.constant 0 : index
    %20 = vector.load %arg10[%c0_11, %c0_12, %c0_13] : memref<10x18x256xf32, #tpu.memory_space<vmem>>, vector<10x1x256xf32>
    tpu.vector_store %arg10[%c0_11, %c0_12, %c0_13], %19 {strides = array<i32>} : memref<10x18x256xf32, #tpu.memory_space<vmem>>, vector<10x1x256xf32>,
    %c0_14 = arith.constant 0 : index
    %c17 = arith.constant 17 : index
    %c0_15 = arith.constant 0 : index
    %21 = vector.load %arg10[%c0_14, %c17, %c0_15] : memref<10x18x256xf32, #tpu.memory_space<vmem>>, vector<10x1x256xf32>
    tpu.vector_store %arg10[%c0_14, %c17, %c0_15], %19 {strides = array<i32>} : memref<10x18x256xf32, #tpu.memory_space<vmem>>, vector<10x1x256xf32>,
    %c0_16 = arith.constant 0 : index
    %c1 = arith.constant 1 : index
    %c0_17 = arith.constant 0 : index
    %22 = vector.load %arg10[%c0_16, %c1, %c0_17] : memref<10x18x256xf32, #tpu.memory_space<vmem>>, vector<1x16x256xf32>
    tpu.vector_store %arg10[%c0_16, %c1, %c0_17], %13 {strides = array<i32>} : memref<10x18x256xf32, #tpu.memory_space<vmem>>, vector<1x16x256xf32>,
    %c9 = arith.constant 9 : index
    %c1_18 = arith.constant 1 : index
    %c0_19 = arith.constant 0 : index
    %23 = vector.load %arg10[%c9, %c1_18, %c0_19] : memref<10x18x256xf32, #tpu.memory_space<vmem>>, vector<1x16x256xf32>
    tpu.vector_store %arg10[%c9, %c1_18, %c0_19], %18 {strides = array<i32>} : memref<10x18x256xf32, #tpu.memory_space<vmem>>, vector<1x16x256xf32>,
    %c1_20 = arith.constant 1 : index
    %c1_21 = arith.constant 1 : index
    %c0_22 = arith.constant 0 : index
    %24 = vector.load %arg10[%c1_20, %c1_21, %c0_22] : memref<10x18x256xf32, #tpu.memory_space<vmem>>, vector<8x16x256xf32>
    tpu.vector_store %arg10[%c1_20, %c1_21, %c0_22], %2 {strides = array<i32>} : memref<10x18x256xf32, #tpu.memory_space<vmem>>, vector<8x16x256xf32>,
    %c0_23 = arith.constant 0 : index
    %c0_24 = arith.constant 0 : index
    %c0_25 = arith.constant 0 : index
    %25 = vector.load %arg5[%c0_23, %c0_24, %c0_25] : memref<3x3x256xf32, #tpu.memory_space<vmem>>, vector<3x3x256xf32>
    %26 = vector.extract_strided_slice %25 {offsets = [0, 0, 0], sizes = [1, 1, 256], strides = [1, 1, 1]} : vector<3x3x256xf32> to vector<1x1x256xf32>
    %27 = vector.extract_strided_slice %25 {offsets = [0, 1, 0], sizes = [1, 1, 256], strides = [1, 1, 1]} : vector<3x3x256xf32> to vector<1x1x256xf32>
    %28 = vector.extract_strided_slice %25 {offsets = [0, 2, 0], sizes = [1, 1, 256], strides = [1, 1, 1]} : vector<3x3x256xf32> to vector<1x1x256xf32>
    %29 = vector.extract_strided_slice %25 {offsets = [1, 0, 0], sizes = [1, 1, 256], strides = [1, 1, 1]} : vector<3x3x256xf32> to vector<1x1x256xf32>
    %30 = vector.extract_strided_slice %25 {offsets = [1, 1, 0], sizes = [1, 1, 256], strides = [1, 1, 1]} : vector<3x3x256xf32> to vector<1x1x256xf32>
    %31 = vector.extract_strided_slice %25 {offsets = [1, 2, 0], sizes = [1, 1, 256], strides = [1, 1, 1]} : vector<3x3x256xf32> to vector<1x1x256xf32>
    %32 = vector.extract_strided_slice %25 {offsets = [2, 0, 0], sizes = [1, 1, 256], strides = [1, 1, 1]} : vector<3x3x256xf32> to vector<1x1x256xf32>
    %33 = vector.extract_strided_slice %25 {offsets = [2, 1, 0], sizes = [1, 1, 256], strides = [1, 1, 1]} : vector<3x3x256xf32> to vector<1x1x256xf32>
    %34 = vector.extract_strided_slice %25 {offsets = [2, 2, 0], sizes = [1, 1, 256], strides = [1, 1, 1]} : vector<3x3x256xf32> to vector<1x1x256xf32>
    %cst_26 = arith.constant 0.000000e+00 : f32
    %35 = vector.broadcast %cst_26 : f32 to vector<8x16x256xf32>
    %c0_27 = arith.constant 0 : index
    %c0_28 = arith.constant 0 : index
    %c0_29 = arith.constant 0 : index
    %36 = vector.load %arg10[%c0_27, %c0_28, %c0_29] : memref<10x18x256xf32, #tpu.memory_space<vmem>>, vector<8x16x256xf32>
    %37 = vector.broadcast %26 : vector<1x1x256xf32> to vector<8x16x256xf32>
    %38 = arith.mulf %36, %37 : vector<8x16x256xf32>
    %39 = arith.addf %35, %38 : vector<8x16x256xf32>
    %c0_30 = arith.constant 0 : index
    %c1_31 = arith.constant 1 : index
    %c0_32 = arith.constant 0 : index
    %40 = vector.load %arg10[%c0_30, %c1_31, %c0_32] : memref<10x18x256xf32, #tpu.memory_space<vmem>>, vector<8x16x256xf32>
    %41 = vector.broadcast %27 : vector<1x1x256xf32> to vector<8x16x256xf32>
    %42 = arith.mulf %40, %41 : vector<8x16x256xf32>
    %43 = arith.addf %39, %42 : vector<8x16x256xf32>
    %c0_33 = arith.constant 0 : index
    %c2 = arith.constant 2 : index
    %c0_34 = arith.constant 0 : index
    %44 = vector.load %arg10[%c0_33, %c2, %c0_34] : memref<10x18x256xf32, #tpu.memory_space<vmem>>, vector<8x16x256xf32>
    %45 = vector.broadcast %28 : vector<1x1x256xf32> to vector<8x16x256xf32>
    %46 = arith.mulf %44, %45 : vector<8x16x256xf32>
    %47 = arith.addf %43, %46 : vector<8x16x256xf32>
    %c1_35 = arith.constant 1 : index
    %c0_36 = arith.constant 0 : index
    %c0_37 = arith.constant 0 : index
    %48 = vector.load %arg10[%c1_35, %c0_36, %c0_37] : memref<10x18x256xf32, #tpu.memory_space<vmem>>, vector<8x16x256xf32>
    %49 = vector.broadcast %29 : vector<1x1x256xf32> to vector<8x16x256xf32>
    %50 = arith.mulf %48, %49 : vector<8x16x256xf32>
    %51 = arith.addf %47, %50 : vector<8x16x256xf32>
    %c1_38 = arith.constant 1 : index
    %c1_39 = arith.constant 1 : index
    %c0_40 = arith.constant 0 : index
    %52 = vector.load %arg10[%c1_38, %c1_39, %c0_40] : memref<10x18x256xf32, #tpu.memory_space<vmem>>, vector<8x16x256xf32>
    %53 = vector.broadcast %30 : vector<1x1x256xf32> to vector<8x16x256xf32>
    %54 = arith.mulf %52, %53 : vector<8x16x256xf32>
    %55 = arith.addf %51, %54 : vector<8x16x256xf32>
    %c1_41 = arith.constant 1 : index
    %c2_42 = arith.constant 2 : index
    %c0_43 = arith.constant 0 : index
    %56 = vector.load %arg10[%c1_41, %c2_42, %c0_43] : memref<10x18x256xf32, #tpu.memory_space<vmem>>, vector<8x16x256xf32>
    %57 = vector.broadcast %31 : vector<1x1x256xf32> to vector<8x16x256xf32>
    %58 = arith.mulf %56, %57 : vector<8x16x256xf32>
    %59 = arith.addf %55, %58 : vector<8x16x256xf32>
    %c2_44 = arith.constant 2 : index
    %c0_45 = arith.constant 0 : index
    %c0_46 = arith.constant 0 : index
    %60 = vector.load %arg10[%c2_44, %c0_45, %c0_46] : memref<10x18x256xf32, #tpu.memory_space<vmem>>, vector<8x16x256xf32>
    %61 = vector.broadcast %32 : vector<1x1x256xf32> to vector<8x16x256xf32>
    %62 = arith.mulf %60, %61 : vector<8x16x256xf32>
    %63 = arith.addf %59, %62 : vector<8x16x256xf32>
    %c2_47 = arith.constant 2 : index
    %c1_48 = arith.constant 1 : index
    %c0_49 = arith.constant 0 : index
    %64 = vector.load %arg10[%c2_47, %c1_48, %c0_49] : memref<10x18x256xf32, #tpu.memory_space<vmem>>, vector<8x16x256xf32>
    %65 = vector.broadcast %33 : vector<1x1x256xf32> to vector<8x16x256xf32>
    %66 = arith.mulf %64, %65 : vector<8x16x256xf32>
    %67 = arith.addf %63, %66 : vector<8x16x256xf32>
    %c2_50 = arith.constant 2 : index
    %c2_51 = arith.constant 2 : index
    %c0_52 = arith.constant 0 : index
    %68 = vector.load %arg10[%c2_50, %c2_51, %c0_52] : memref<10x18x256xf32, #tpu.memory_space<vmem>>, vector<8x16x256xf32>
    %69 = vector.broadcast %34 : vector<1x1x256xf32> to vector<8x16x256xf32>
    %70 = arith.mulf %68, %69 : vector<8x16x256xf32>
    %71 = arith.addf %67, %70 : vector<8x16x256xf32>
    %c0_53 = arith.constant 0 : index
    %c0_54 = arith.constant 0 : index
    %72 = vector.load %arg6[%c0_53, %c0_54] : memref<1x256xf32, #tpu.memory_space<vmem>>, vector<1x256xf32>
    %73 = vector.shape_cast %72 : vector<1x256xf32> to vector<1x1x256xf32>
    %74 = vector.broadcast %73 : vector<1x1x256xf32> to vector<8x16x256xf32>
    %75 = arith.addf %71, %74 : vector<8x16x256xf32>
    %76 = arith.addf %75, %2 : vector<8x16x256xf32>
    %cst_55 = arith.constant 5.000000e-01 : f32
    %77 = vector.broadcast %cst_55 : f32 to vector<8x16x256xf32>
    %78 = arith.mulf %77, %76 : vector<8x16x256xf32>
    %cst_56 = arith.constant 0.707106769 : f32
    %79 = vector.broadcast %cst_56 : f32 to vector<8x16x256xf32>
    %80 = arith.mulf %76, %79 : vector<8x16x256xf32>
    %81 = math.erf %80 : vector<8x16x256xf32>
    %cst_57 = arith.constant 1.000000e+00 : f32
    %82 = vector.broadcast %cst_57 : f32 to vector<8x16x256xf32>
    %83 = arith.addf %82, %81 : vector<8x16x256xf32>
    %84 = arith.mulf %78, %83 : vector<8x16x256xf32>
    %85 = vector.shape_cast %84 : vector<8x16x256xf32> to vector<128x256xf32>
    %86 = arith.truncf %85 : vector<128x256xf32> to vector<128x256xbf16>
    %c0_58 = arith.constant 0 : index
    %c0_59 = arith.constant 0 : index
    %87 = vector.load %arg7[%c0_58, %c0_59] : memref<256x128xbf16, #tpu.memory_space<vmem>>, vector<256x128xbf16>
    %cst_60 = arith.constant dense<0.000000e+00> : vector<128x128xf32>
    %88 = tpu.matmul %86, %87, %cst_60 {dimension_numbers = #tpu.dot_dimension_numbers<[1], [0], [0], [1], [0, 0, 1, 1], [], []>} : vector<128x256xbf16>, vector<256x128xbf16>, vector<128x128xf32> -> vector<128x128xf32>
    %c0_61 = arith.constant 0 : index
    %c0_62 = arith.constant 0 : index
    %89 = vector.load %arg8[%c0_61, %c0_62] : memref<1x128xf32, #tpu.memory_space<vmem>>, vector<1x128xf32>
    %90 = vector.broadcast %89 : vector<1x128xf32> to vector<128x128xf32>
    %91 = arith.addf %88, %90 : vector<128x128xf32>
    %92 = vector.shape_cast %91 : vector<128x128xf32> to vector<8x16x128xf32>
    %c0_63 = arith.constant 0 : index
    %c0_64 = arith.constant 0 : index
    %c0_65 = arith.constant 0 : index
    %c0_66 = arith.constant 0 : index
    %93 = vector.load %arg9[%c0_63, %c0_64, %c0_65, %c0_66] : memref<1x8x16x128xf32, #tpu.memory_space<vmem>>, vector<1x8x16x128xf32>
    %94 = vector.shape_cast %93 : vector<1x8x16x128xf32> to vector<8x16x128xf32>
    %95 = vector.shape_cast %92 : vector<8x16x128xf32> to vector<1x8x16x128xf32>
    tpu.vector_store %arg9[%c0_63, %c0_64, %c0_65, %c0_66], %95 {strides = array<i32>} : memref<1x8x16x128xf32, #tpu.memory_space<vmem>>, vector<1x8x16x128xf32>,
    return
  }
  func.func @transform_0(%arg0: i32, %arg1: i32) -> (i32, i32, i32, i32) {
    %c0_i32 = arith.constant 0 : i32
    %c0_i32_0 = arith.constant 0 : i32
    %c0_i32_1 = arith.constant 0 : i32
    return %arg0, %arg1, %c0_i32, %c0_i32_0 : i32, i32, i32, i32
  }
  func.func @transform_1(%arg0: i32, %arg1: i32) -> (i32, i32, i32, i32) {
    %c8_i32 = arith.constant 8 : i32
    %0 = arith.muli %arg1, %c8_i32 : i32
    %c1_i32 = arith.constant 1 : i32
    %1 = arith.subi %0, %c1_i32 : i32
    %c0_i32 = arith.constant 0 : i32
    %2 = arith.maxsi %1, %c0_i32 : i32
    %c0_i32_0 = arith.constant 0 : i32
    %c0_i32_1 = arith.constant 0 : i32
    %c0_i32_2 = arith.constant 0 : i32
    return %arg0, %2, %c0_i32_0, %c0_i32_1 : i32, i32, i32, i32
  }
  func.func @transform_2(%arg0: i32, %arg1: i32) -> (i32, i32, i32, i32) {
    %c8_i32 = arith.constant 8 : i32
    %0 = arith.muli %arg1, %c8_i32 : i32
    %c8_i32_0 = arith.constant 8 : i32
    %1 = arith.addi %0, %c8_i32_0 : i32
    %c15_i32 = arith.constant 15 : i32
    %2 = arith.minsi %1, %c15_i32 : i32
    %c0_i32 = arith.constant 0 : i32
    %c0_i32_1 = arith.constant 0 : i32
    %c0_i32_2 = arith.constant 0 : i32
    return %arg0, %2, %c0_i32, %c0_i32_1 : i32, i32, i32, i32
  }
  func.func @transform_3(%arg0: i32, %arg1: i32) -> (i32, i32, i32) {
    %c0_i32 = arith.constant 0 : i32
    %c0_i32_0 = arith.constant 0 : i32
    %c0_i32_1 = arith.constant 0 : i32
    %c0_i32_2 = arith.constant 0 : i32
    return %c0_i32, %c0_i32_0, %c0_i32_1 : i32, i32, i32
  }
  func.func @transform_4(%arg0: i32, %arg1: i32) -> (i32, i32) {
    %c0_i32 = arith.constant 0 : i32
    %c0_i32_0 = arith.constant 0 : i32
    %c0_i32_1 = arith.constant 0 : i32
    return %c0_i32, %c0_i32_0 : i32, i32
  }
  func.func @transform_5(%arg0: i32, %arg1: i32) -> (i32, i32) {
    %c0_i32 = arith.constant 0 : i32
    %c0_i32_0 = arith.constant 0 : i32
    %c0_i32_1 = arith.constant 0 : i32
    return %c0_i32, %c0_i32_0 : i32, i32
  }
  func.func @transform_6(%arg0: i32, %arg1: i32) -> (i32, i32) {
    %c0_i32 = arith.constant 0 : i32
    %c0_i32_0 = arith.constant 0 : i32
    %c0_i32_1 = arith.constant 0 : i32
    return %c0_i32, %c0_i32_0 : i32, i32
  }
  func.func @transform_7(%arg0: i32, %arg1: i32) -> (i32, i32, i32, i32) {
    %c0_i32 = arith.constant 0 : i32
    %c0_i32_0 = arith.constant 0 : i32
    %c0_i32_1 = arith.constant 0 : i32
    return %arg0, %arg1, %c0_i32, %c0_i32_0 : i32, i32, i32, i32
  }
}

module attributes {stable_mosaic.version = 11 : i64} {
  func.func @_fc1_kernel(%arg0: i32, %arg1: memref<128x128xf32, #tpu.memory_space<vmem>>, %arg2: memref<128x256xbf16, #tpu.memory_space<vmem>>, %arg3: memref<1x256xf32, #tpu.memory_space<vmem>>, %arg4: memref<128x256xbf16, #tpu.memory_space<vmem>>) attributes {dimension_semantics = [#tpu.dimension_semantics<parallel>], iteration_bounds = array<i64: 4>, scalar_prefetch = 0 : i64, scratch_operands = 0 : i64, tpu.core_type = #tpu.core_type<tc>, window_params = [{transform_indices = @transform_0, window_bounds = array<i64: 128, 128>}, {pipeline_mode = #tpu.pipeline_mode<synchronous>, transform_indices = @transform_1, window_bounds = array<i64: 128, 256>}, {pipeline_mode = #tpu.pipeline_mode<synchronous>, transform_indices = @transform_2, window_bounds = array<i64: 1, 256>}, {transform_indices = @transform_3, window_bounds = array<i64: 128, 256>}]} {
    %c0 = arith.constant 0 : index
    %c0_0 = arith.constant 0 : index
    %0 = vector.load %arg1[%c0, %c0_0] : memref<128x128xf32, #tpu.memory_space<vmem>>, vector<128x128xf32>
    %1 = arith.truncf %0 : vector<128x128xf32> to vector<128x128xbf16>
    %c0_1 = arith.constant 0 : index
    %c0_2 = arith.constant 0 : index
    %2 = vector.load %arg2[%c0_1, %c0_2] : memref<128x256xbf16, #tpu.memory_space<vmem>>, vector<128x256xbf16>
    %cst = arith.constant dense<0.000000e+00> : vector<128x256xf32>
    %3 = tpu.matmul %1, %2, %cst {dimension_numbers = #tpu.dot_dimension_numbers<[1], [0], [0], [1], [0, 0, 1, 1], [], []>} : vector<128x128xbf16>, vector<128x256xbf16>, vector<128x256xf32> -> vector<128x256xf32>
    %c0_3 = arith.constant 0 : index
    %c0_4 = arith.constant 0 : index
    %4 = vector.load %arg3[%c0_3, %c0_4] : memref<1x256xf32, #tpu.memory_space<vmem>>, vector<1x256xf32>
    %5 = vector.broadcast %4 : vector<1x256xf32> to vector<128x256xf32>
    %6 = arith.addf %3, %5 : vector<128x256xf32>
    %7 = arith.truncf %6 : vector<128x256xf32> to vector<128x256xbf16>
    %c0_5 = arith.constant 0 : index
    %c0_6 = arith.constant 0 : index
    %8 = vector.load %arg4[%c0_5, %c0_6] : memref<128x256xbf16, #tpu.memory_space<vmem>>, vector<128x256xbf16>
    tpu.vector_store %arg4[%c0_5, %c0_6], %7 {strides = array<i32>} : memref<128x256xbf16, #tpu.memory_space<vmem>>, vector<128x256xbf16>,
    return
  }
  func.func @transform_0(%arg0: i32) -> (i32, i32) {
    %c0_i32 = arith.constant 0 : i32
    %c0_i32_0 = arith.constant 0 : i32
    return %arg0, %c0_i32 : i32, i32
  }
  func.func @transform_1(%arg0: i32) -> (i32, i32) {
    %c0_i32 = arith.constant 0 : i32
    %c0_i32_0 = arith.constant 0 : i32
    %c0_i32_1 = arith.constant 0 : i32
    return %c0_i32, %c0_i32_0 : i32, i32
  }
  func.func @transform_2(%arg0: i32) -> (i32, i32) {
    %c0_i32 = arith.constant 0 : i32
    %c0_i32_0 = arith.constant 0 : i32
    %c0_i32_1 = arith.constant 0 : i32
    return %c0_i32, %c0_i32_0 : i32, i32
  }
  func.func @transform_3(%arg0: i32) -> (i32, i32) {
    %c0_i32 = arith.constant 0 : i32
    %c0_i32_0 = arith.constant 0 : i32
    return %arg0, %c0_i32 : i32, i32
  }
}

</mosaic_0001>

<bundles_post_ra>
// kernel: mlp_forward.2
= control target key start
LH: loop header
LB: loop body
LE: loop exit
PB: predicated region body
PF: predicated region fallthrough
CT: control target
= control target key end

     0   :  { %s731_s12 = smov 0   ;;  %s886_s0 = inlined_call_operand.vmem [shape: f32[512,128], index: 0, kind: input, shape index: {}]   ;;  %s887_s1 = inlined_call_operand.vmem [shape: bf16[128,256], index: 1, kind: input, shape index: {}]   ;;  %s888_s2 = inlined_call_operand.vmem [shape: f32[1,256], index: 2, kind: input, shape index: {}]   ;;  %s889_s3 = inlined_call_operand.vmem [shape: bf16[512,256], index: 3, kind: output, shape index: {}]  }
   0x1 LB: > { %s592_s13 = sadd.s32 4294967295, %s708_s12   ;;  %p596_p0 = scmp.ge.s32.totalorder %s708_s12, 1  ;;  %s708_s12 = sphi %s731_s12, %s13_s12  }
   0x2   : > { %p138_p1 = scmp.lt.s32.totalorder %s708_s12, 5 }
   0x4   : > { %p139_p2 = pnand %p596_p0, %p138_p1 }
   0x5   : > { %v678_v0 = vld [vmem:[%s887_s1 + $0x4] ss:$8 sps:$4 sm:$0xff] (!%p139_p2)   ;;  %v680_v1 = vld [vmem:[%s887_s1] ss:$8 sps:$4 sm:$0xff] (!%p139_p2)   ;;  %v710_v2 = vmov (!%p139_p2), 0   ;;  %s597_s28 = sshll.u32 (!%p139_p2), %s592_s13, 4  ;;  %v219_v41 = vlaneseq (!%p139_p2) }
   0x6   : > { %142 = sbr.rel (%p139_p2) target bundleno = 283 (0x11b), region = 32  ;;  %341 = vmatprep.mubr.bf16.mxu0 (!%p139_p2), %v710_v2  ;;  %381 = vmatprep.mubr.bf16.mxu1 (!%p139_p2), %v710_v2  ;;  %v681_v3 = vld [vmem:[%s887_s1 + $0x14] ss:$8 sps:$4 sm:$0xff] (!%p139_p2)   ;;  %v683_v4 = vld [vmem:[%s887_s1 + $0x10] ss:$8 sps:$4 sm:$0xff] (!%p139_p2)   ;;  %p164_p3 = scmp.lt.s32.totalorder (!%p139_p2), %s597_s28, 63 }
   0x7   : > { %309 = vmatprep.subr.bf16.mxu0 (!%p139_p2), %v678_v0  ;;  %653 = vmatprep.subr.bf16.mxu1 (!%p139_p2), %v678_v0  ;;  %v684_v5 = vld [vmem:[%s887_s1 + $0x24] ss:$8 sps:$4 sm:$0xff] (!%p139_p2)   ;;  %v686_v6 = vld [vmem:[%s887_s1 + $0x20] ss:$8 sps:$4 sm:$0xff] (!%p139_p2)   ;;  %v687_v7 = vld [vmem:[%s887_s1 + $0x34] ss:$8 sps:$4 sm:$0xff] (!%p139_p2)  }
   0x8   : > { %310 = vmatpush1.bf16.msra.mxu0 (!%p139_p2), %v680_v1  ;;  %661 = vmatpush1.bf16.msra.mxu1 (!%p139_p2), %v680_v1  ;;  %v689_v8 = vld [vmem:[%s887_s1 + $0x30] ss:$8 sps:$4 sm:$0xff] (!%p139_p2)   ;;  %v690_v9 = vld [vmem:[%s887_s1 + $0x44] ss:$8 sps:$4 sm:$0xff] (!%p139_p2)   ;;  %v692_v10 = vld [vmem:[%s887_s1 + $0x40] ss:$8 sps:$4 sm:$0xff] (!%p139_p2)  }
   0x9   : > { %311 = vmatprep.subr.bf16.mxu0 (!%p139_p2), %v681_v3  ;;  %654 = vmatprep.subr.bf16.mxu1 (!%p139_p2), %v681_v3  ;;  %v693_v11 = vld [vmem:[%s887_s1 + $0x54] ss:$8 sps:$4 sm:$0xff] (!%p139_p2)   ;;  %v695_v12 = vld [vmem:[%s887_s1 + $0x50] ss:$8 sps:$4 sm:$0xff] (!%p139_p2)   ;;  %v696_v13 = vld [vmem:[%s887_s1 + $0x64] ss:$8 sps:$4 sm:$0xff] (!%p139_p2)  }
   0xa   : > { %v698_v14 = vld [vmem:[%s887_s1 + $0x60] ss:$8 sps:$4 sm:$0xff] (!%p139_p2)   ;;  %v699_v15 = vld [vmem:[%s887_s1 + $0x74] ss:$8 sps:$4 sm:$0xff] (!%p139_p2)   ;;  %v701_v16 = vld [vmem:[%s887_s1 + $0x70] ss:$8 sps:$4 sm:$0xff] (!%p139_p2)  }
   0xb   : > { %v220_v42 = vshrl.u32 (!%p139_p2), %v219_v41, 7  ;;  %v217_v44 = vld [vmem:[%s888_s2] sm:$0x3] (!%p139_p2) }
   0xc   : > { %312 = vmatpush1.bf16.msra.mxu0 (!%p139_p2), %v683_v4  ;;  %662 = vmatpush1.bf16.msra.mxu1 (!%p139_p2), %v683_v4 }
   0xd   : > { %313 = vmatprep.subr.bf16.mxu0 %v684_v5  ;;  %655 = vmatprep.subr.bf16.mxu1 %v684_v5  ;;  %s891_s28 = smov (!%p164_p3, %s597_s28), 63  ;;  %v221_v43 = vsub.s32 0, %v220_v42  ;;  %v225_v45 = vsub.s32 1, %v220_v42 }
   0xe   : > { %s598_s15 = sshll.u32 %s891_s28, 3 }
   0xf   : > { %s791_s20 = scalar_lea.vmem %s886_s0, %s598_s15  ;;  %v824_v46 = vrot.slane %v217_v44, %v221_v43  ;;  %v826_v47 = vrot.slane %v217_v44, %v225_v45  ;;  %s837_s30 = scalar_lea.vmem %s889_s3, %s598_s15 }
  0x10   : > { %314 = vmatpush1.bf16.msra.mxu0 %v686_v6  ;;  %663 = vmatpush1.bf16.msra.mxu1 %v686_v6  ;;  %v177_v17 = vld [vmem:[%s791_s20] sm:$0xff]  ;;  %v178_v18 = vld [vmem:[%s791_s20 + $0x8] sm:$0xff]  ;;  %v179_v23 = vld [vmem:[%s791_s20 + $0x10] sm:$0xff] }
  0x11   : > { %315 = vmatprep.subr.bf16.mxu0 %v687_v7  ;;  %656 = vmatprep.subr.bf16.mxu1 %v687_v7  ;;  %v185_v19 = vld [vmem:[%s791_s20 + $0x40] sm:$0xff]  ;;  %v186_v20 = vld [vmem:[%s791_s20 + $0x48] sm:$0xff]  ;;  %v193_v21 = vpack.c.bf16 %v178_v18, %v177_v17  ;;  %v180_v24 = vld [vmem:[%s791_s20 + $0x18] sm:$0xff] }
  0x12   : > { %v197_v22 = vpack.c.bf16 %v186_v20, %v185_v19  ;;  %v187_v25 = vld [vmem:[%s791_s20 + $0x50] sm:$0xff]  ;;  %v188_v26 = vld [vmem:[%s791_s20 + $0x58] sm:$0xff]  ;;  %v194_v27 = vpack.c.bf16 %v180_v24, %v179_v23  ;;  %v181_v29 = vld [vmem:[%s791_s20 + $0x20] sm:$0xff] }
  0x13   : > { %v198_v28 = vpack.c.bf16 %v188_v26, %v187_v25  ;;  %v182_v30 = vld [vmem:[%s791_s20 + $0x28] sm:$0xff]  ;;  %v189_v31 = vld [vmem:[%s791_s20 + $0x60] sm:$0xff]  ;;  %v183_v35 = vld [vmem:[%s791_s20 + $0x30] sm:$0xff] }
  0x14   : > { %316 = vmatpush1.bf16.msra.mxu0 %v689_v8  ;;  %664 = vmatpush1.bf16.msra.mxu1 %v689_v8  ;;  %v190_v32 = vld [vmem:[%s791_s20 + $0x68] sm:$0xff]  ;;  %v195_v33 = vpack.c.bf16 %v182_v30, %v181_v29  ;;  %v184_v36 = vld [vmem:[%s791_s20 + $0x38] sm:$0xff]  ;;  %v191_v37 = vld [vmem:[%s791_s20 + $0x70] sm:$0xff] }
  0x15   : > { %317 = vmatprep.subr.bf16.mxu0 %v690_v9  ;;  %657 = vmatprep.subr.bf16.mxu1 %v690_v9  ;;  %v199_v34 = vpack.c.bf16 %v190_v32, %v189_v31  ;;  %v192_v38 = vld [vmem:[%s791_s20 + $0x78] sm:$0xff]  ;;  %v196_v39 = vpack.c.bf16 %v184_v36, %v183_v35 }
  0x16   : > { %v200_v40 = vpack.c.bf16 %v192_v38, %v191_v37 }
  0x18   : > { %318 = vmatpush1.bf16.msra.mxu0 %v692_v10  ;;  %665 = vmatpush1.bf16.msra.mxu1 %v692_v10 }
  0x19   : > { %319 = vmatprep.subr.bf16.mxu0 %v693_v11  ;;  %658 = vmatprep.subr.bf16.mxu1 %v693_v11 }
  0x1c   : > { %320 = vmatpush1.bf16.msra.mxu0 %v695_v12  ;;  %666 = vmatpush1.bf16.msra.mxu1 %v695_v12 }
  0x1d   : > { %321 = vmatprep.subr.bf16.mxu0 %v696_v13  ;;  %659 = vmatprep.subr.bf16.mxu1 %v696_v13 }
  0x20   : > { %322 = vmatpush1.bf16.msra.mxu0 %v698_v14  ;;  %667 = vmatpush1.bf16.msra.mxu1 %v698_v14 }
  0x21   : > { %323 = vmatprep.subr.bf16.mxu0 %v699_v15  ;;  %660 = vmatprep.subr.bf16.mxu1 %v699_v15 }
  0x24   : > { %324 = vmatpush1.bf16.msra.mxu0 %v701_v16  ;;  %668 = vmatpush1.bf16.msra.mxu1 %v701_v16 }
  0x27   : > { %342 = vmatmul.mubr.bf16.vlgmr.msra.gmra.mrb[0].mxu0 %v193_v21  ;;  %382 = vmatmul.mubr.bf16.vlgmr.msra.gmra.mrb[0].mxu1 %v197_v22 }
  0x28   : > { %351 = vmatprep.mubr.bf16.mxu0 %v710_v2  ;;  %391 = vmatprep.mubr.bf16.mxu1 %v710_v2 }
  0x2f   : > { %352 = vmatmul.mubr.bf16.gmra.mrb[4].mxu0 %v194_v27  ;;  %392 = vmatmul.mubr.bf16.gmra.mrb[4].mxu1 %v198_v28 }
  0x30   : > { %361 = vmatprep.mubr.bf16.mxu0 %v710_v2  ;;  %401 = vmatprep.mubr.bf16.mxu1 %v710_v2 }
  0x37   : > { %362 = vmatmul.mubr.bf16.gmra.mrb[8].mxu0 %v195_v33  ;;  %402 = vmatmul.mubr.bf16.gmra.mrb[8].mxu1 %v199_v34 }
  0x38   : > { %371 = vmatprep.mubr.bf16.mxu0 %v710_v2  ;;  %411 = vmatprep.mubr.bf16.mxu1 %v710_v2 }
  0x3f   : > { %372 = vmatmul.mubr.bf16.gmra.mrb[12].mxu0 %v196_v39  ;;  %412 = vmatmul.mubr.bf16.gmra.mrb[12].mxu1 %v200_v40 }
  0xfa   : > { %v343_v48 = vpop.f32.mrb[0].mxu0  ;;  %v383_v49 = vpop.f32.mrb[0].mxu1 }
  0xfb   : > { %v344_v50 = vadd.f32 %v343_v48, %v824_v46  ;;  %v384_v51 = vadd.f32 %v383_v49, %v824_v46  ;;  %v345_v52 = vpop.f32.mrb[1].mxu0  ;;  %v385_v53 = vpop.f32.mrb[1].mxu1 }
  0xfc   : > { %v346_v54 = vadd.f32 %v345_v52, %v826_v47  ;;  %v386_v55 = vadd.f32 %v385_v53, %v826_v47  ;;  %v347_v56 = vpop.f32.mrb[2].mxu0  ;;  %v387_v57 = vpop.f32.mrb[2].mxu1 }
  0xfd   : > { %v348_v58 = vadd.f32 %v347_v56, %v824_v46  ;;  %v388_v59 = vadd.f32 %v387_v57, %v824_v46  ;;  %v349_v60 = vpop.f32.mrb[3].mxu0  ;;  %v389_v61 = vpop.f32.mrb[3].mxu1 }
  0xfe   : > { %v637_v62 = vpack.c.bf16 %v346_v54, %v344_v50  ;;  %v645_v63 = vpack.c.bf16 %v386_v55, %v384_v51  ;;  %v350_v0 = vadd.f32 %v349_v60, %v826_v47  ;;  %v390_v1 = vadd.f32 %v389_v61, %v826_v47 }
 0x100   : > { %518 = vst [vmem:[%s837_s30] sm:$0xff] %v637_v62  ;;  %526 = vst [vmem:[%s837_s30 + $0x40] sm:$0xff] %v645_v63  ;;  %v638_v2 = vpack.c.bf16 %v350_v0, %v348_v58  ;;  %v646_v3 = vpack.c.bf16 %v390_v1, %v388_v59 }
 0x102   : > { %519 = vst [vmem:[%s837_s30 + $0x8] sm:$0xff] %v638_v2  ;;  %527 = vst [vmem:[%s837_s30 + $0x48] sm:$0xff] %v646_v3  ;;  %v353_v4 = vpop.f32.mrb[4].mxu0  ;;  %v393_v5 = vpop.f32.mrb[4].mxu1 }
 0x103   : > { %v354_v6 = vadd.f32 %v353_v4, %v824_v46  ;;  %v394_v7 = vadd.f32 %v393_v5, %v824_v46  ;;  %v355_v8 = vpop.f32.mrb[5].mxu0  ;;  %v395_v9 = vpop.f32.mrb[5].mxu1 }
 0x104   : > { %v356_v10 = vadd.f32 %v355_v8, %v826_v47  ;;  %v396_v11 = vadd.f32 %v395_v9, %v826_v47  ;;  %v357_v12 = vpop.f32.mrb[6].mxu0  ;;  %v397_v13 = vpop.f32.mrb[6].mxu1 }
 0x105   : > { %v358_v14 = vadd.f32 %v357_v12, %v824_v46  ;;  %v398_v15 = vadd.f32 %v397_v13, %v824_v46  ;;  %v359_v16 = vpop.f32.mrb[7].mxu0  ;;  %v399_v17 = vpop.f32.mrb[7].mxu1 }
 0x106   : > { %v639_v18 = vpack.c.bf16 %v356_v10, %v354_v6  ;;  %v647_v19 = vpack.c.bf16 %v396_v11, %v394_v7  ;;  %v360_v20 = vadd.f32 %v359_v16, %v826_v47  ;;  %v400_v21 = vadd.f32 %v399_v17, %v826_v47 }
 0x108   : > { %520 = vst [vmem:[%s837_s30 + $0x10] sm:$0xff] %v639_v18  ;;  %528 = vst [vmem:[%s837_s30 + $0x50] sm:$0xff] %v647_v19  ;;  %v640_v22 = vpack.c.bf16 %v360_v20, %v358_v14  ;;  %v648_v23 = vpack.c.bf16 %v400_v21, %v398_v15 }
 0x10a   : > { %521 = vst [vmem:[%s837_s30 + $0x18] sm:$0xff] %v640_v22  ;;  %529 = vst [vmem:[%s837_s30 + $0x58] sm:$0xff] %v648_v23  ;;  %v363_v24 = vpop.f32.mrb[8].mxu0  ;;  %v403_v25 = vpop.f32.mrb[8].mxu1 }
 0x10b   : > { %v364_v26 = vadd.f32 %v363_v24, %v824_v46  ;;  %v404_v27 = vadd.f32 %v403_v25, %v824_v46  ;;  %v365_v28 = vpop.f32.mrb[9].mxu0  ;;  %v405_v29 = vpop.f32.mrb[9].mxu1 }
 0x10c   : > { %v366_v30 = vadd.f32 %v365_v28, %v826_v47  ;;  %v406_v31 = vadd.f32 %v405_v29, %v826_v47  ;;  %v367_v32 = vpop.f32.mrb[10].mxu0  ;;  %v407_v33 = vpop.f32.mrb[10].mxu1 }
 0x10d   : > { %v368_v34 = vadd.f32 %v367_v32, %v824_v46  ;;  %v408_v35 = vadd.f32 %v407_v33, %v824_v46  ;;  %v369_v36 = vpop.f32.mrb[11].mxu0  ;;  %v409_v37 = vpop.f32.mrb[11].mxu1 }
 0x10e   : > { %v641_v38 = vpack.c.bf16 %v366_v30, %v364_v26  ;;  %v649_v39 = vpack.c.bf16 %v406_v31, %v404_v27  ;;  %v370_v40 = vadd.f32 %v369_v36, %v826_v47  ;;  %v410_v41 = vadd.f32 %v409_v37, %v826_v47 }
 0x110   : > { %522 = vst [vmem:[%s837_s30 + $0x20] sm:$0xff] %v641_v38  ;;  %530 = vst [vmem:[%s837_s30 + $0x60] sm:$0xff] %v649_v39  ;;  %v642_v42 = vpack.c.bf16 %v370_v40, %v368_v34  ;;  %v650_v43 = vpack.c.bf16 %v410_v41, %v408_v35 }
 0x112   : > { %523 = vst [vmem:[%s837_s30 + $0x28] sm:$0xff] %v642_v42  ;;  %531 = vst [vmem:[%s837_s30 + $0x68] sm:$0xff] %v650_v43  ;;  %v373_v44 = vpop.f32.mrb[12].mxu0  ;;  %v413_v45 = vpop.f32.mrb[12].mxu1 }
 0x113   : > { %v374_v48 = vadd.f32 %v373_v44, %v824_v46  ;;  %v414_v49 = vadd.f32 %v413_v45, %v824_v46  ;;  %v375_v50 = vpop.f32.mrb[13].mxu0  ;;  %v415_v51 = vpop.f32.mrb[13].mxu1 }
 0x114   : > { %v376_v52 = vadd.f32 %v375_v50, %v826_v47  ;;  %v416_v53 = vadd.f32 %v415_v51, %v826_v47  ;;  %v377_v54 = vpop.f32.mrb[14].mxu0  ;;  %v417_v55 = vpop.f32.mrb[14].mxu1 }
 0x115   : > { %v378_v56 = vadd.f32 %v377_v54, %v824_v46  ;;  %v418_v57 = vadd.f32 %v417_v55, %v824_v46  ;;  %v379_v58 = vpop.f32.mrb[15].mxu0  ;;  %v419_v59 = vpop.f32.mrb[15].mxu1 }
 0x116   : > { %v643_v60 = vpack.c.bf16 %v376_v52, %v374_v48  ;;  %v651_v61 = vpack.c.bf16 %v416_v53, %v414_v49  ;;  %v380_v62 = vadd.f32 %v379_v58, %v826_v47  ;;  %v420_v63 = vadd.f32 %v419_v59, %v826_v47 }
 0x118   : > { %524 = vst [vmem:[%s837_s30 + $0x30] sm:$0xff] %v643_v60  ;;  %532 = vst [vmem:[%s837_s30 + $0x70] sm:$0xff] %v651_v61  ;;  %v644_v0 = vpack.c.bf16 %v380_v62, %v378_v56  ;;  %v652_v1 = vpack.c.bf16 %v420_v63, %v418_v57 }
 0x11a   : > { %525 = vst [vmem:[%s837_s30 + $0x38] sm:$0xff] %v644_v0  ;;  %533 = vst [vmem:[%s837_s30 + $0x78] sm:$0xff] %v652_v1 }
 0x11b PF: > { %s13_s12 = sadd.s32 1, %s708_s12  }
 0x11c   : > { %p10_p4 = scmp.ge.s32.totalorder %s13_s12, 6  }
 0x11e   :  { %12 = sbr.rel (!%p10_p4) target bundleno = 1 (0x1), region = 62 }

// kernel: mlp_forward.3
= control target key start
LH: loop header
LB: loop body
LE: loop exit
PB: predicated region body
PF: predicated region fallthrough
CT: control target
= control target key end

     0   :  { %12 = vsyncpa [#allocation4], 0  ;;  %s5682_s0 = inlined_call_operand.vmem [shape: bf16[2,16,16,256], index: 0, kind: input, shape index: {}, may-alias: {0,1,2}]   ;;  %s5683_s1 = inlined_call_operand.vmem [shape: bf16[2,16,16,256], index: 1, kind: input, shape index: {}, may-alias: {0,1,2}]   ;;  %s5684_s2 = inlined_call_operand.vmem [shape: bf16[2,16,16,256], index: 2, kind: input, shape index: {}, may-alias: {0,1,2}]   ;;  %s5685_s3 = inlined_call_operand.vmem [shape: f32[3,3,256], index: 3, kind: input, shape index: {}]   ;;  %s5686_s4 = inlined_call_operand.vmem [shape: f32[1,256], index: 4, kind: input, shape index: {}]   ;;  %s5687_s5 = inlined_call_operand.vmem [shape: bf16[256,128], index: 5, kind: input, shape index: {}]   ;;  %s5688_s6 = inlined_call_operand.vmem [shape: f32[1,128], index: 6, kind: input, shape index: {}]   ;;  %s5689_s7 = inlined_call_operand.hbm [shape: f32[2,16,16,128], index: 7, kind: output, shape index: {}]  }
   0x1   :  { %14 = vsyncpa [#allocation4 + $0x1], 0  ;;  %s3968_s24 = smov 0   ;;  %s3970_s25 = smov 0  }
   0x2   :  { %s3972_s26 = smov 0   ;;  %s3974_s27 = smov 0  }
   0x3   :  { %s3976_s28 = smov 0   ;;  %s3978_s29 = smov 0  }
   0x4   :  { %s3980_s30 = smov 0   ;;  %s3982_s8 = smov 0  }
   0x5 LB: > { %5753 = sst [smem:[#allocation6_spill]] %s3914_s29  ;;  %s3533_s9 = sadd.s32 4294967295, %s3922_s8   ;;  %s3922_s8 = sphi %s3982_s8, %s20_s8   ;;  %s3918_s30 = sphi %s3980_s30, %s5843_s30   ;;  %s3914_s29 = sphi %s3978_s29, %s5842_s29   ;;  %s3910_s28 = sphi %s3976_s28, %s5841_s28   ;;  %s3906_s27 = sphi %s3974_s27, %s5840_s27   ;;  %s3902_s26 = sphi %s3972_s26, %s5846_s26   ;;  %s3898_s25 = sphi %s3970_s25, %s5845_s25   ;;  %s3894_s24 = sphi %s3968_s24, %s5844_s24  }
   0x6   : > { %5754 = sst [smem:[#allocation7_spill]] %s3918_s30  ;;  %s3534_s10 = sadd.s32 4294967294, %s3922_s8  }
   0x7   : > { %s29_s11 = sadd.s32 1, %s3914_s29  ;;  %s32_s12 = sadd.s32 1, %s3918_s30 }
   0x8   : > { %p30_p0 = scmp.ge.s32.totalorder %s29_s11, 2  ;;  %p235_p1 = scmp.ne.s32.totalorder %s3902_s26, %s3898_s25 }
   0x9   : > { %p236_p2 = scmp.eq.s32.totalorder %s3533_s9, 3  ;;  %p241_p5 = scmp.ne.s32.totalorder %s3898_s25, %s3894_s24 }
   0xa   : > { %s5848_s11 = smov (%p30_p0, %s29_s11), 0  ;;  %s5850_s12 = smov (!%p30_p0, %s32_s12), %s3918_s30 }
   0xb   : > { %5755 = sst [smem:[#allocation8_spill]] %s5848_s11  ;;  %s221_s13 = ssub.s32 %s3914_s29, %s5848_s11 }
   0xc   : > { %p4019_p3 = por %p236_p2, %p235_p1  ;;  %p34_p4 = scmp.ge.s32.totalorder %s5850_s12, 2 }
   0xd   : > { %p242_p6 = scmp.eq.s32.totalorder %s3534_s10, 3  ;;  %p3543_p7 = scmp.ge.s32.totalorder %s3922_s8, 1 }
   0xe   : > { %s5852_s12 = smov (%p34_p4, %s5850_s12), 0  ;;  %p326_p9 = scmp.lt.s32.totalorder %s3922_s8, 5 }
   0xf   : > { %5757 = sst [smem:[#allocation9_spill]] %s5852_s12  ;;  %p4028_p8 = por %p242_p6, %p241_p5 }
  0x10   : > { %s220_s16 = ssub.s32 %s3918_s30, %s5852_s12  ;;  %s225_s17 = sadd.s32 1, %s3902_s26 }
  0x11   : > { %s222_s18 = sor.u32 %s221_s13, %s220_s16  ;;  %p327_p10 = pnand %p3543_p7, %p326_p9 }
  0x12   : > { %p223_p11 = scmp.eq.s32.totalorder %s222_s18, 0 }
  0x13   : > { %330 = sbr.rel (%p327_p10) target bundleno = 687 (0x2af), region = 48 }
  0x14   : > { %s4037_s19 = scalar_select %p223_p11, %s3902_s26, %s225_s17  }
  0x1a   : > { %v3747_v0 = vld [vmem:[%s5687_s5 + $0x40] sm:$0xff]   ;;  %s4043_s22 = sshll.u32 %s3906_s27, 3  ;;  %p390_p12 = scmp.lt.s32.totalorder %s3910_s28, 1  ;;  %v3749_v2 = vld [vmem:[%s5687_s5 + $0x48] sm:$0xff]   ;;  %v512_v4 = vlaneseq  ;;  %v3751_v5 = vld [vmem:[%s5687_s5 + $0x50] sm:$0xff]   ;;  %v3924_v9 = vmov 0.0  }
  0x1b   : > { %v3748_v1 = vld [vmem:[%s5687_s5] sm:$0xff]   ;;  %3657 = vmatprep.subr.bf16.mxu1 %v3747_v0  ;;  %3593 = vmatprep.subr.bf16.mxu0 %v3747_v0  ;;  %p392_p13 = scmp.lt.s32.totalorder %s4043_s22, 15  ;;  %v3750_v3 = vld [vmem:[%s5687_s5 + $0x8] sm:$0xff]   ;;  %v3752_v6 = vld [vmem:[%s5687_s5 + $0x10] sm:$0xff]   ;;  %vm579_vm1 = vcmask 1040384   ;;  %vm1062_vm2 = vcmask 1046528  }
  0x1c   : > { %3665 = vmatpush3.bf16.msra.mxu1 %v3748_v1  ;;  %3594 = vmatpush3.bf16.msra.mxu0 %v3748_v1  ;;  %s391_s18 = scalar_select %p390_p12, %s3910_s28, 1  ;;  %vm4069_vm0 = vcmp.lt.s32.totalorder %v512_v4, 256  ;;  %v3753_v8 = vld [vmem:[%s5687_s5 + $0x58] sm:$0xff]   ;;  %v3755_v11 = vld [vmem:[%s5687_s5 + $0x60] sm:$0xff]   ;;  %v835_v12 = vshrl.u32 %v512_v4, 7  ;;  %v3757_v14 = vld [vmem:[%s5687_s5 + $0x68] sm:$0xff]  }
  0x1d   : > { %3658 = vmatprep.subr.bf16.mxu1 %v3749_v2  ;;  %3595 = vmatprep.subr.bf16.mxu0 %v3749_v2  ;;  %s393_s23 = scalar_select %p392_p13, %s4043_s22, 15  ;;  %528 = vst.msk [vmem:[#allocation2 + $0xc0] ss:$8 sm:$0x3] %vm4069_vm0, %v3924_v9  ;;  %v3754_v10 = vld [vmem:[%s5687_s5 + $0x18] sm:$0xff]   ;;  %v3756_v13 = vld [vmem:[%s5687_s5 + $0x20] sm:$0xff]  }
  0x1e   : > { %s4061_s9 = sshll.u32 %s391_s18, 6  ;;  %531 = vst.msk [vmem:[#allocation2 + $0xf0] ss:$8 sm:$0x3] %vm4069_vm0, %v3924_v9  ;;  %v4136_v15 = vsub.s32 0, %v835_v12  ;;  %v4138_v16 = vsub.s32 4, %v835_v12 }
  0x1f   : > { %s3546_s10 = sshll.u32 %s393_s23, 2  ;;  %534 = vst.msk [vmem:[#allocation2 + $0x120] ss:$8 sm:$0x3] %vm4069_vm0, %v3924_v9  ;;  %v4149_v20 = vsub.s32 1, %v835_v12  ;;  %v4151_v21 = vsub.s32 5, %v835_v12 }
  0x20   : > { %3666 = vmatpush3.bf16.msra.mxu1 %v3750_v3  ;;  %3596 = vmatpush3.bf16.msra.mxu0 %v3750_v3  ;;  %s4067_s16 = sadd.s32 %s4061_s9, %s3546_s10  ;;  %558 = vst.msk [vmem:[#allocation2 + $0xe1] ss:$8 sm:$0x3] %vm4069_vm0, %v3924_v9  ;;  %561 = vst.msk [vmem:[#allocation2 + $0x111] ss:$8 sm:$0x3] %vm4069_vm0, %v3924_v9 }
  0x21   : > { %3659 = vmatprep.subr.bf16.mxu1 %v3751_v5  ;;  %3597 = vmatprep.subr.bf16.mxu0 %v3751_v5  ;;  %s3548_s20 = sshll.u32 %s4067_s16, 2  ;;  %564 = vst.msk [vmem:[#allocation2 + $0x141] ss:$8 sm:$0x3] %vm4069_vm0, %v3924_v9  ;;  %v4153_v22 = vsub.s32 2, %v835_v12  ;;  %v4167_v29 = vsub.s32 6, %v835_v12 }
  0x22   : > { %516 = vst.msk [vmem:[#allocation2] ss:$8 sm:$0x3] %vm4069_vm0, %v3924_v9  ;;  %519 = vst.msk [vmem:[#allocation2 + $0x30] ss:$8 sm:$0x3] %vm4069_vm0, %v3924_v9  ;;  %s4131_s30 = scalar_lea.vmem %s5682_s0, %s3548_s20 }
  0x23   : > { %522 = vst.msk [vmem:[#allocation2 + $0x60] ss:$8 sm:$0x3] %vm4069_vm0, %v3924_v9  ;;  %525 = vst.msk [vmem:[#allocation2 + $0x90] ss:$8 sm:$0x3] %vm4069_vm0, %v3924_v9 }
  0x24   : > { %537 = vst.msk [vmem:[#allocation2 + $0x150] ss:$8 sm:$0x3] %vm4069_vm0, %v3924_v9  ;;  %540 = vst.msk [vmem:[#allocation2 + $0x180] ss:$8 sm:$0x3] %vm4069_vm0, %v3924_v9  ;;  %3667 = vmatpush3.bf16.msra.mxu1 %v3752_v6  ;;  %3598 = vmatpush3.bf16.msra.mxu0 %v3752_v6 }
  0x25   : > { %543 = vst.msk [vmem:[#allocation2 + $0x1b0] ss:$8 sm:$0x3] %vm4069_vm0, %v3924_v9  ;;  %546 = vst.msk [vmem:[#allocation2 + $0x21] ss:$8 sm:$0x3] %vm4069_vm0, %v3924_v9  ;;  %3660 = vmatprep.subr.bf16.mxu1 %v3753_v8  ;;  %3599 = vmatprep.subr.bf16.mxu0 %v3753_v8 }
  0x26   : > { %549 = vst.msk [vmem:[#allocation2 + $0x51] ss:$8 sm:$0x3] %vm4069_vm0, %v3924_v9  ;;  %552 = vst.msk [vmem:[#allocation2 + $0x81] ss:$8 sm:$0x3] %vm4069_vm0, %v3924_v9 }
  0x27   : > { %555 = vst.msk [vmem:[#allocation2 + $0xb1] ss:$8 sm:$0x3] %vm4069_vm0, %v3924_v9  ;;  %567 = vst.msk [vmem:[#allocation2 + $0x171] ss:$8 sm:$0x3] %vm4069_vm0, %v3924_v9 }
  0x28   : > { %570 = vst.msk [vmem:[#allocation2 + $0x1a1] ss:$8 sm:$0x3] %vm4069_vm0, %v3924_v9  ;;  %573 = vst.msk [vmem:[#allocation2 + $0x1d1] ss:$8 sm:$0x3] %vm4069_vm0, %v3924_v9  ;;  %3668 = vmatpush3.bf16.msra.mxu1 %v3754_v10  ;;  %3600 = vmatpush3.bf16.msra.mxu0 %v3754_v10 }
  0x29   : > { %3661 = vmatprep.subr.bf16.mxu1 %v3755_v11  ;;  %3601 = vmatprep.subr.bf16.mxu0 %v3755_v11  ;;  %v4141_v17 = vld [vmem:[%s4131_s30 + $0x30] sm:$0xff]  ;;  %v4144_v18 = vld [vmem:[%s4131_s30 + $0x38] sm:$0xff]  ;;  %v4147_v19 = vld [vmem:[%s4131_s30 + $0x40] sm:$0xff]  ;;  %vm1353_vm3 = vcmask 1045504   ;;  %s4363_s13 = sadd.s32 4294967295, %s4043_s22  ;;  %p484_p2 = scmp.gt.s32.totalorder %s3906_s27, 0 }
  0x2a   : > { %5761 = vst [vmem:[#allocation10_spill] sm:$0xff] %v4141_v17  ;;  %5762 = vst [vmem:[#allocation11_spill] sm:$0xff] %v4144_v18  ;;  %v4156_v23 = vld [vmem:[%s4131_s30 + $0x48] sm:$0xff]  ;;  %v4159_v24 = vld [vmem:[%s4131_s30 + $0x50] sm:$0xff]  ;;  %v5695_v26 = vunpack.c.l.bf16 %v4141_v17  ;;  %v5697_v27 = vunpack.c.h.bf16 %v4141_v17  ;;  %v5696_v28 = vunpack.c.h.bf16 %v4144_v18  ;;  %v468_v30 = vunpack.c.l.bf16 %v4147_v19  ;;  %p402_p0 = scmp.gt.s32.totalorder %s4363_s13, 0  ;;  %p3551_p1 = scmp.lt.s32.totalorder %s4363_s13, 15 }
  0x2b   : > { %5763 = vst [vmem:[#allocation12_spill] sm:$0xff] %v4159_v24  ;;  %v4162_v25 = vld [vmem:[%s4131_s30 + $0x58] sm:$0xff]  ;;  %v469_v31 = vunpack.c.h.bf16 %v4147_v19  ;;  %v470_v32 = vunpack.c.l.bf16 %v4156_v23  ;;  %v471_v33 = vunpack.c.h.bf16 %v4156_v23  ;;  %v3758_v34 = vld [vmem:[%s5687_s5 + $0x28] sm:$0xff]   ;;  %v5694_v35 = vunpack.c.l.bf16 %v4144_v18  ;;  %v4183_v39 = vld [vmem:[%s5685_s3] sm:$0x77]  ;;  %p487_p5 = scmp.lt.s32.totalorder %s3906_s27, 1 }
  0x2c   : > { %5764 = vst [vmem:[#allocation13_spill] sm:$0xff] %v4162_v25  ;;  %3669 = vmatpush3.bf16.msra.mxu1 %v3756_v13  ;;  %3602 = vmatpush3.bf16.msra.mxu0 %v3756_v13  ;;  %v5702_v36 = vunpack.c.l.bf16 %v4159_v24  ;;  %v5703_v37 = vunpack.c.h.bf16 %v4159_v24  ;;  %v5698_v38 = vunpack.c.h.bf16 %v4162_v25  ;;  %v3759_v40 = vld [vmem:[%s5687_s5 + $0x70] sm:$0xff]   ;;  %v672_v41 = vrot.slane %v5697_v27, 7  ;;  %v4208_v50 = vld [vmem:[%s5685_s3 + $0x8] sm:$0x77]  ;;  %v3761_v59 = vld [vmem:[%s5687_s5 + $0x78] sm:$0xff]  }
  0x2d   : > { %3662 = vmatprep.subr.bf16.mxu1 %v3757_v14  ;;  %3603 = vmatprep.subr.bf16.mxu0 %v3757_v14  ;;  %v675_v42 = vrot.slane %v5696_v28, 7  ;;  %v677_v43 = vrot.slane %v468_v30, 7  ;;  %v678_v44 = vrot.slane %v469_v31, 7  ;;  %v679_v45 = vrot.slane %v470_v32, 7  ;;  %v3760_v54 = vld [vmem:[%s5687_s5 + $0x30] sm:$0xff]   ;;  %v3762_v9 = vld [vmem:[%s5687_s5 + $0x38] sm:$0xff]  }
  0x2e   : > { %v681_v46 = vrot.slane %v471_v33, 7  ;;  %v684_v47 = vrot.slane %v5703_v37, 7  ;;  %v687_v48 = vrot.slane %v5698_v38, 7  ;;  %769 = vst [vmem:[#allocation2 + $0xc8] sm:$0xfe] %v672_v41  ;;  %v841_v51 = vrot.slane %v4183_v39, %v4138_v16  ;;  %s403_s17 = scalar_select %p402_p0, %s4363_s13, 0 }
  0x2f   : > { %v676_v49 = vsel %vm579_vm1, %v672_v41, %v675_v42  ;;  %773 = vst [vmem:[#allocation2 + $0xe8] sm:$0x1] %v675_v42  ;;  %774 = vst [vmem:[#allocation2 + $0xf0] sm:$0xfe] %v677_v43  ;;  %v951_v52 = vrot.slane %v4183_v39, %v4149_v20  ;;  %v955_v53 = vrot.slane %v4183_v39, %v4151_v21  ;;  %v5701_v55 = vunpack.c.l.bf16 %v4162_v25  ;;  %v4259_v4 = vld [vmem:[%s5685_s3 + $0x10] sm:$0x77] }
  0x30   : > { %775 = vst [vmem:[#allocation2 + $0xf8] sm:$0xfe] %v678_v44  ;;  %3670 = vmatpush3.bf16.msra.mxu1 %v3758_v34  ;;  %3604 = vmatpush3.bf16.msra.mxu0 %v3758_v34  ;;  %v4221_v56 = vsel %vm579_vm1, %v677_v43, %v679_v45  ;;  %v4224_v57 = vsel %vm579_vm1, %v678_v44, %v681_v46  ;;  %771 = vst [vmem:[#allocation2 + $0xd8] sm:$0xff] %v676_v49  ;;  %v4246_v63 = vrot.slane %v5695_v26, 7  ;;  %s5854_s17 = smov (!%p3551_p1, %s403_s17), 15  ;;  %s386_s16 = sand.u32 1, %s3898_s25  }
  0x31   : > { %v4227_v58 = vsel %vm579_vm1, %v684_v47, %v687_v48  ;;  %778 = vst [vmem:[#allocation2 + $0x110] sm:$0x1] %v679_v45  ;;  %779 = vst [vmem:[#allocation2 + $0x118] sm:$0x1] %v681_v46  ;;  %3663 = vmatprep.subr.bf16.mxu1 %v3759_v40  ;;  %3605 = vmatprep.subr.bf16.mxu0 %v3759_v40  ;;  %v4236_v60 = vrot.slane %v841_v51, %v4136_v15  ;;  %v4282_v13 = vrot.slane %v5694_v35, 7  ;;  %s3556_s18 = sshll.u32 %s5854_s17, 2 }
  0x32   : > { %781 = vst [vmem:[#allocation2 + $0x128] sm:$0xfe] %v684_v47  ;;  %785 = vst [vmem:[#allocation2 + $0x148] sm:$0x1] %v687_v48  ;;  %v4239_v61 = vrot.slane %v951_v52, %v4149_v20  ;;  %v4242_v62 = vrot.slane %v955_v53, %v4149_v20  ;;  %v1242_v0 = vrot.slane %v4183_v39, %v4153_v22  ;;  %s4447_s12 = sadd.s32 %s3556_s18, %s4061_s9  ;;  %s3544_s20 = sshll.u32 %s386_s16, 7 }
  0x33   : > { %776 = vst [vmem:[#allocation2 + $0x100] sm:$0xff] %v4221_v56  ;;  %777 = vst [vmem:[#allocation2 + $0x108] sm:$0xff] %v4224_v57  ;;  %v1246_v1 = vrot.slane %v4183_v39, %v4167_v29  ;;  %v1538_v2 = vrot.slane %v4208_v50, %v4138_v16  ;;  %v1648_v3 = vrot.slane %v4208_v50, %v4149_v20  ;;  %s3558_s29 = sshll.u32 %s4447_s12, 2  ;;  %s3592_s10 = sshll.u32 %s3906_s27, 4 }
  0x34   : > { %783 = vst [vmem:[#allocation2 + $0x138] sm:$0xff] %v4227_v58  ;;  %5765 = vst [vmem:[#allocation14_spill] sm:$0xff] %v4242_v62  ;;  %v871_v5 = vmul.f32 %v4236_v60, %v676_v49  ;;  %v993_v6 = vmul.f32 %v4242_v62, %v676_v49  ;;  %v1652_v7 = vrot.slane %v4208_v50, %v4151_v21  ;;  %3671 = vmatpush3.bf16.msra.mxu1 %v3760_v54  ;;  %s4473_s11 = scalar_select %p484_p2, 1, 0 }
  0x35   : > { %v1938_v8 = vrot.slane %v4208_v50, %v4153_v22  ;;  %768 = vst [vmem:[#allocation2 + $0xc0] sm:$0xfe] %v4246_v63  ;;  %3606 = vmatpush3.bf16.msra.mxu0 %v3760_v54  ;;  %v4272_v10 = vrot.slane %v1242_v0, %v4153_v22  ;;  %v4275_v11 = vrot.slane %v1246_v1, %v4153_v22  ;;  %v818_v42 = vld [vmem:[#allocation2 + $0xc8] sm:$0xff]  ;;  %772 = vst [vmem:[#allocation2 + $0xe0] sm:$0x1] %v4282_v13  ;;  %s412_s21 = scalar_lea.vmem %s5683_s1, %s3558_s29  ;;  %s5630_s27 = scalar_lea.sflag [#allocation4], %s386_s16 }
  0x36   : > { %v4278_v12 = vrot.slane %v1538_v2, %v4136_v15  ;;  %3664 = vmatprep.subr.bf16.mxu1 %v3761_v59  ;;  %3607 = vmatprep.subr.bf16.mxu0 %v3761_v59  ;;  %v1107_v14 = vrot.slane %v993_v6, 1  ;;  %v4285_v34 = vrot.slane %v1648_v3, %v4149_v20  ;;  %v4288_v40 = vrot.slane %v1652_v7, %v4149_v20  ;;  %v933_v43 = vld [vmem:[#allocation2 + $0xc8] sm:$0xfe]  ;;  %v935_v44 = vld [vmem:[#allocation2 + $0xe8] sm:$0x1]  ;;  %s486_s23 = scvt.s32.f32 %s4473_s11 }
  0x37   : > { %v1942_v41 = vrot.slane %v4208_v50, %v4167_v29  ;;  %v1284_v45 = vmul.f32 %v4275_v11, %v676_v49  ;;  %v4296_v47 = vrot.slane %v1938_v8, %v4153_v22  ;;  %v2234_v48 = vrot.slane %v4259_v4, %v4138_v16  ;;  %v1224_v54 = vld [vmem:[#allocation2 + $0xc8] sm:$0xfc]  ;;  %v1226_v59 = vld [vmem:[#allocation2 + $0xe8] sm:$0x3]  ;;  %v1515_v49 = vld [vmem:[#allocation2 + $0xf8] sm:$0xff] }
  0x38   : > { %5766 = vst [vmem:[#allocation15_spill] sm:$0xff] %v4278_v12  ;;  %5767 = vst [vmem:[#allocation16_spill] sm:$0xff] %v4288_v40  ;;  %v1568_v46 = vmul.f32 %v4278_v12, %v4224_v57  ;;  %v869_v51 = vmul.f32 %v4236_v60, %v818_v42  ;;  %v991_v52 = vmul.f32 %v4242_v62, %v933_v43  ;;  %3672 = vmatpush3.bf16.msra.mxu1 %v3762_v9  ;;  %v1630_v6 = vld [vmem:[#allocation2 + $0xf8] sm:$0xfe]  ;;  %v1632_v7 = vld [vmem:[#allocation2 + $0x118] sm:$0x1] }
  0x39   : > { %v995_v53 = vmul.f32 %v4242_v62, %v935_v44  ;;  %v1690_v0 = vmul.f32 %v4288_v40, %v4224_v57  ;;  %v1282_v1 = vmul.f32 %v4275_v11, %v1224_v54  ;;  %v1286_v2 = vmul.f32 %v4275_v11, %v1226_v59  ;;  %3608 = vmatpush3.bf16.msra.mxu0 %v3762_v9  ;;  %v1920_v27 = vld [vmem:[#allocation2 + $0xf8] sm:$0xfc]  ;;  %v1922_v9 = vld [vmem:[#allocation2 + $0x118] sm:$0x3]  ;;  %s5292_s29 = scalar_select %p487_p5, 1, 0 }
  0x3a   : > { %v1398_v16 = vrot.slane %v1284_v45, 2  ;;  %v1566_v3 = vmul.f32 %v4278_v12, %v1515_v49  ;;  %v1106_v8 = vrot.slane %v991_v52, 1  ;;  %v1688_v43 = vmul.f32 %v4288_v40, %v1630_v6 }
  0x3b   : > { %v1111_v42 = vrot.slane %v995_v53, 1  ;;  %v1692_v44 = vmul.f32 %v4288_v40, %v1632_v7  ;;  %v1397_v35 = vrot.slane %v1282_v1, 2  ;;  %v1402_v26 = vrot.slane %v1286_v2, 2  ;;  %s489_s11 = scvt.s32.f32 %s5292_s29 }
  0x3c   : > { %v1803_v28 = vrot.slane %v1690_v0, 1  ;;  %v4312_v54 = vrot.slane %v1942_v41, %v4153_v22  ;;  %v1108_v45 = vsel %vm1062_vm2, %v1106_v8, %v1107_v14  ;;  %v1802_v49 = vrot.slane %v1688_v43, 1  ;;  %v2211_v8 = vld [vmem:[#allocation2 + $0x128] sm:$0xff] }
  0x3d   : > { %v1112_v59 = vsel %vm1062_vm2, %v1107_v14, %v1111_v42  ;;  %v1807_v38 = vrot.slane %v1692_v44, 1  ;;  %v1192_v52 = vadd.f32 %v1108_v45, %v869_v51  ;;  %v1399_v6 = vsel %vm1353_vm3, %v1397_v35, %v1398_v16  ;;  %v2326_v44 = vld [vmem:[#allocation2 + $0x128] sm:$0xfe]  ;;  %v2328_v45 = vld [vmem:[#allocation2 + $0x148] sm:$0x1] }
  0x3e   : > { %5768 = vst [vmem:[#allocation17_spill] sm:$0xff] %v4312_v54  ;;  %v1194_v53 = vadd.f32 %v1112_v59, %v871_v5  ;;  %v1403_v7 = vsel %vm1353_vm3, %v1398_v16, %v1402_v26  ;;  %v1804_v1 = vsel %vm1062_vm2, %v1802_v49, %v1803_v28  ;;  %v1978_v41 = vmul.f32 %v4312_v54, %v1920_v27 }
  0x3f   : > { %v1808_v0 = vsel %vm1062_vm2, %v1803_v28, %v1807_v38  ;;  %v1980_v2 = vmul.f32 %v4312_v54, %v4224_v57  ;;  %v1483_v14 = vadd.f32 %v1399_v6, %v1192_v52  ;;  %v1982_v43 = vmul.f32 %v4312_v54, %v1922_v9 }
  0x40   : > { %v1485_v42 = vadd.f32 %v1403_v7, %v1194_v53  ;;  %v4325_v5 = vrot.slane %v2234_v48, %v4136_v15  ;;  %v2092_v35 = vrot.slane %v1978_v41, 2  ;;  %v2344_v26 = vrot.slane %v4259_v4, %v4149_v20 }
  0x41   : > { %v2093_v51 = vrot.slane %v1980_v2, 2  ;;  %v2348_v28 = vrot.slane %v4259_v4, %v4151_v21  ;;  %v1598_v27 = vadd.f32 %v1566_v3, %v1483_v14  ;;  %v2097_v16 = vrot.slane %v1982_v43, 2  ;;  %v2889_v21 = vld [vmem:[%s5686_s4] sm:$0x3] }
  0x42   : > { %5769 = vst [vmem:[#allocation18_spill] sm:$0xff] %v4325_v5  ;;  %v1600_v38 = vadd.f32 %v1568_v46, %v1485_v42  ;;  %v2262_v57 = vmul.f32 %v4325_v5, %v2211_v8  ;;  %v2264_v48 = vmul.f32 %v4325_v5, %v4227_v58  ;;  %v4336_v49 = vrot.slane %v2344_v26, %v4149_v20  ;;  %v2618_v26 = vld [vmem:[#allocation2 + $0x148] sm:$0x3] }
  0x43   : > { %v2094_v59 = vsel %vm1353_vm3, %v2092_v35, %v2093_v51  ;;  %v4339_v9 = vrot.slane %v2348_v28, %v4149_v20  ;;  %v1888_v46 = vadd.f32 %v1804_v1, %v1598_v27  ;;  %v2098_v52 = vsel %vm1353_vm3, %v2093_v51, %v2097_v16  ;;  %v2616_v1 = vld [vmem:[#allocation2 + $0x128] sm:$0xfc] }
  0x44   : > { %v1890_v3 = vadd.f32 %v1808_v0, %v1600_v38  ;;  %v2634_v53 = vrot.slane %v4259_v4, %v4153_v22  ;;  %v2638_v2 = vrot.slane %v4259_v4, %v4167_v29  ;;  %v4357_v42 = vrot.slane %v2889_v21, %v4136_v15 }
  0x45   : > { %v2384_v6 = vmul.f32 %v4339_v9, %v2326_v44  ;;  %v2386_v7 = vmul.f32 %v4339_v9, %v4227_v58  ;;  %v2388_v41 = vmul.f32 %v4339_v9, %v2328_v45  ;;  %v2178_v8 = vadd.f32 %v2094_v59, %v1888_v46  ;;  %v934_v46 = vld [vmem:[#allocation2 + $0xe0] sm:$0x1] }
  0x46   : > { %v2180_v14 = vadd.f32 %v2098_v52, %v1890_v3  ;;  %v4354_v0 = vrot.slane %v2634_v53, %v4153_v22  ;;  %5770 = vst [vmem:[#allocation19_spill] sm:$0xff] %v4357_v42  ;;  %v4360_v28 = vrot.slane %v2638_v2, %v4153_v22  ;;  %v4366_v38 = vrot.slane %v2889_v21, %v4149_v20 }
  0x47   : > { %v2498_v43 = vrot.slane %v2384_v6, 1  ;;  %v2499_v35 = vrot.slane %v2386_v7, 1  ;;  %v2503_v51 = vrot.slane %v2388_v41, 1  ;;  %v2294_v27 = vadd.f32 %v2262_v57, %v2178_v8  ;;  %v932_v57 = vld [vmem:[#allocation2 + $0xc0] sm:$0xfe] }
  0x48   : > { %v2296_v29 = vadd.f32 %v2264_v48, %v2180_v14  ;;  %v674_v16 = vsel %vm579_vm1, %v4246_v63, %v4282_v13  ;;  %v2674_v59 = vmul.f32 %v4360_v28, %v2616_v1  ;;  %v2676_v22 = vmul.f32 %v4360_v28, %v4227_v58  ;;  %v1223_v63 = vld [vmem:[#allocation2 + $0xc0] sm:$0xfc] }
  0x49   : > { %v2500_v44 = vsel %vm1062_vm2, %v2498_v43, %v2499_v35  ;;  %v2504_v45 = vsel %vm1062_vm2, %v2499_v35, %v2503_v51  ;;  %770 = vst [vmem:[#allocation2 + $0xd0] sm:$0xff] %v674_v16  ;;  %v2678_v20 = vmul.f32 %v4360_v28, %v2618_v26  ;;  %v683_v21 = vrot.slane %v5702_v36, 7  ;;  %v817_v7 = vld [vmem:[#allocation2 + $0xc0] sm:$0xff] }
  0x4a   : > { %v2584_v48 = vadd.f32 %v2500_v44, %v2294_v27  ;;  %v2586_v3 = vadd.f32 %v2504_v45, %v2296_v29  ;;  %v2788_v13 = vrot.slane %v2674_v59, 2  ;;  %v2789_v52 = vrot.slane %v2676_v22, 2 }
  0x4b   : > { %v685_v53 = vrot.slane %v5701_v55, 7  ;;  %v837_v58 = vrot.slane %v4183_v39, %v4136_v15  ;;  %v2793_v6 = vrot.slane %v2678_v20, 2  ;;  %780 = vst [vmem:[#allocation2 + $0x120] sm:$0xfe] %v683_v21  ;;  %v990_v41 = vmul.f32 %v4239_v61, %v932_v57  ;;  %v1225_v39 = vld [vmem:[#allocation2 + $0xe0] sm:$0x3] }
  0x4c   : > { %v992_v2 = vmul.f32 %v4239_v61, %v674_v16  ;;  %v994_v8 = vmul.f32 %v4239_v61, %v934_v46  ;;  %v2790_v14 = vsel %vm1353_vm3, %v2788_v13, %v2789_v52  ;;  %v1281_v35 = vmul.f32 %v4272_v10, %v1223_v63 }
  0x4d   : > { %v4389_v1 = vsel %vm579_vm1, %v683_v21, %v685_v53  ;;  %784 = vst [vmem:[#allocation2 + $0x140] sm:$0x1] %v685_v53  ;;  %v4392_v43 = vrot.slane %v837_v58, %v4136_v15  ;;  %v2794_v51 = vsel %vm1353_vm3, %v2789_v52, %v2793_v6  ;;  %v2874_v26 = vadd.f32 %v2790_v14, %v2584_v48  ;;  %v1629_v21 = vld [vmem:[#allocation2 + $0xf0] sm:$0xfe] }
  0x4e   : > { %782 = vst [vmem:[#allocation2 + $0x130] sm:$0xff] %v4389_v1  ;;  %v1103_v27 = vrot.slane %v990_v41, 1  ;;  %v1104_v29 = vrot.slane %v992_v2, 1  ;;  %v2876_v44 = vadd.f32 %v2794_v51, %v2586_v3  ;;  %v1109_v22 = vrot.slane %v994_v8, 1  ;;  %v1631_v2 = vld [vmem:[#allocation2 + $0x110] sm:$0x1] }
  0x4f   : > { %v868_v45 = vmul.f32 %v4392_v43, %v817_v7  ;;  %v870_v59 = vmul.f32 %v4392_v43, %v674_v16  ;;  %v2918_v57 = vadd.f32 %v4366_v38, %v2874_v26  ;;  %v1283_v20 = vmul.f32 %v4272_v10, %v674_v16  ;;  %v1919_v26 = vld [vmem:[#allocation2 + $0xf0] sm:$0xfc] }
  0x50   : > { %v1105_v46 = vsel %vm1062_vm2, %v1103_v27, %v1104_v29  ;;  %v1285_v48 = vmul.f32 %v4272_v10, %v1225_v39  ;;  %v2920_v63 = vadd.f32 %v4366_v38, %v2876_v44  ;;  %v1110_v13 = vsel %vm1062_vm2, %v1104_v29, %v1109_v22  ;;  %v4428_v44 = vld [vmem:[#allocation2 + $0xf0] sm:$0xff] }
  0x51   : > { %v1191_v3 = vadd.f32 %v1105_v46, %v868_v45  ;;  %v1394_v52 = vrot.slane %v1281_v35, 2  ;;  %v2950_v53 = vadd.f32 %v2918_v57, %v469_v31  ;;  %v1193_v58 = vadd.f32 %v1110_v13, %v870_v59  ;;  %5771 = vst [vmem:[#allocation20_spill] sm:$0xff] %v4428_v44  ;;  %v1921_v45 = vld [vmem:[#allocation2 + $0x110] sm:$0x3] }
  0x52   : > { %v1395_v6 = vrot.slane %v1283_v20, 2  ;;  %v1400_v7 = vrot.slane %v1285_v48, 2  ;;  %v2952_v16 = vadd.f32 %v2920_v63, %v471_v33  ;;  %v1534_v41 = vrot.slane %v4208_v50, %v4136_v15 }
  0x53   : > { %v1687_v8 = vmul.f32 %v4285_v34, %v1629_v21  ;;  %v1689_v14 = vmul.f32 %v4285_v34, %v4221_v56  ;;  %v4422_v31 = vmul.f32 0.5, %v2950_v53  ;;  %v3014_v39 = vmul.f32 0.70710677, %v2950_v53 }
  0x54   : > { %v1396_v35 = vsel %vm1353_vm3, %v1394_v52, %v1395_v6  ;;  %v1401_v51 = vsel %vm1353_vm3, %v1395_v6, %v1400_v7  ;;  %v4426_v27 = vmul.f32 0.5, %v2952_v16  ;;  %v3016_v33 = vmul.f32 0.70710677, %v2952_v16  ;;  %v2325_v52 = vld [vmem:[#allocation2 + $0x120] sm:$0xfe] }
  0x55   : > { %v1482_v29 = vadd.f32 %v1396_v35, %v1191_v3  ;;  %v1484_v50 = vadd.f32 %v1401_v51, %v1193_v58  ;;  %3763 = verf.f32 %v3014_v39  ;;  %v4431_v59 = vrot.slane %v1534_v41, %v4136_v15  ;;  %v2327_v16 = vld [vmem:[#allocation2 + $0x140] sm:$0x1] }
  0x56   : > { %v1691_v22 = vmul.f32 %v4285_v34, %v1631_v2  ;;  %v1799_v57 = vrot.slane %v1687_v8, 1  ;;  %3765 = verf.f32 %v3016_v33  ;;  %v1800_v46 = vrot.slane %v1689_v14, 1  ;;  %v4450_v14 = vld [vmem:[#allocation2 + $0x120] sm:$0xff] }
  0x57   : > { %5772 = vst [vmem:[#allocation21_spill] sm:$0xff] %v4431_v59  ;;  %v1977_v20 = vmul.f32 %v4296_v47, %v1919_v26  ;;  %v1979_v48 = vmul.f32 %v4296_v47, %v4221_v56  ;;  %v1565_v21 = vmul.f32 %v4431_v59, %v4428_v44  ;;  %v1567_v63 = vmul.f32 %v4431_v59, %v4221_v56  ;;  %v2615_v26 = vld [vmem:[#allocation2 + $0x120] sm:$0xfc] }
  0x58   : > { %v1805_v13 = vrot.slane %v1691_v22, 1  ;;  %v1981_v3 = vmul.f32 %v4296_v47, %v1921_v45  ;;  %v1801_v53 = vsel %vm1062_vm2, %v1799_v57, %v1800_v46  ;;  %v2230_v7 = vrot.slane %v4259_v4, %v4136_v15  ;;  %5773 = vst [vmem:[#allocation22_spill] sm:$0xff] %v4450_v14  ;;  %v2617_v22 = vld [vmem:[#allocation2 + $0x140] sm:$0x3] }
  0x59   : > { %v2089_v58 = vrot.slane %v1977_v20, 2  ;;  %v2090_v6 = vrot.slane %v1979_v48, 2  ;;  %v1597_v41 = vadd.f32 %v1565_v21, %v1482_v29  ;;  %v1599_v2 = vadd.f32 %v1567_v63, %v1484_v50  ;;  %v4464_v57 = vld [vmem:[%s4131_s30] sm:$0xff] }
  0x5a   : > { %v1806_v56 = vsel %vm1062_vm2, %v1800_v46, %v1805_v13  ;;  %v2095_v8 = vrot.slane %v1981_v3, 2  ;;  %v4455_v35 = vrot.slane %v2230_v7, %v4136_v15  ;;  %v2383_v4 = vmul.f32 %v4336_v49, %v2325_v52 }
  0x5b   : > { %v2091_v39 = vsel %vm1353_vm3, %v2089_v58, %v2090_v6  ;;  %v2385_v51 = vmul.f32 %v4336_v49, %v4389_v1  ;;  %v1887_v33 = vadd.f32 %v1801_v53, %v1597_v41  ;;  %v1889_v29 = vadd.f32 %v1806_v56, %v1599_v2 }
  0x5c   : > { %v2096_v50 = vsel %vm1353_vm3, %v2090_v6, %v2095_v8  ;;  %v2387_v45 = vmul.f32 %v4336_v49, %v2327_v16  ;;  %v2261_v15 = vmul.f32 %v4455_v35, %v4450_v14  ;;  %v2263_v46 = vmul.f32 %v4455_v35, %v4389_v1  ;;  %v4483_v6 = vld [vmem:[%s4131_s30 + $0x8] sm:$0xff] }
  0x5d   : > { %v2495_v20 = vrot.slane %v2383_v4, 1  ;;  %v2496_v48 = vrot.slane %v2385_v51, 1  ;;  %v2177_v21 = vadd.f32 %v2091_v39, %v1887_v33  ;;  %v2179_v63 = vadd.f32 %v2096_v50, %v1889_v29 }
  0x5e   : > { %v2501_v13 = vrot.slane %v2387_v45, 1  ;;  %v2673_v3 = vmul.f32 %v4354_v0, %v2615_v26  ;;  %v2675_v53 = vmul.f32 %v4354_v0, %v4389_v1  ;;  %v2677_v58 = vmul.f32 %v4354_v0, %v2617_v22  ;;  %v4488_v26 = vld [vmem:[%s4131_s30 + $0x10] sm:$0xff]  ;;  %v4492_v22 = vld [vmem:[%s4131_s30 + $0x18] sm:$0xff] }
  0x5f   : > { %v2497_v52 = vsel %vm1062_vm2, %v2495_v20, %v2496_v48  ;;  %v5705_v7 = vunpack.c.l.bf16 %v4464_v57  ;;  %v3764_v16 = vpop.eup %3763  ;;  %v2293_v41 = vadd.f32 %v2261_v15, %v2177_v21  ;;  %v2295_v2 = vadd.f32 %v2263_v46, %v2179_v63  ;;  %v490_v46 = vld [vmem:[%s412_s21] sm:$0xff] }
  0x60   : > { %v2502_v56 = vsel %vm1062_vm2, %v2496_v48, %v2501_v13  ;;  %v2785_v8 = vrot.slane %v2673_v3, 2  ;;  %v3766_v39 = vpop.eup %3765  ;;  %v3078_v1 = vadd.f32 1.0, %v3764_v16  ;;  %v2786_v4 = vrot.slane %v2675_v53, 2 }
  0x61   : > { %v2791_v51 = vrot.slane %v2677_v58, 2  ;;  %v5707_v33 = vunpack.c.h.bf16 %v4464_v57  ;;  %v3080_v29 = vadd.f32 1.0, %v3766_v39  ;;  %v2583_v50 = vadd.f32 %v2497_v52, %v2293_v41  ;;  %v491_v58 = vld [vmem:[%s412_s21 + $0x8] sm:$0xff] }
  0x62   : > { %v2585_v45 = vadd.f32 %v2502_v56, %v2295_v2  ;;  %v5704_v15 = vunpack.c.l.bf16 %v4483_v6  ;;  %v3110_v20 = vmul.f32 %v3078_v1, %v4422_v31  ;;  %v2787_v48 = vsel %vm1353_vm3, %v2785_v8, %v2786_v4 }
  0x63   : > { %v2792_v21 = vsel %vm1353_vm3, %v2786_v4, %v2791_v51  ;;  %v5706_v63 = vunpack.c.h.bf16 %v4483_v6  ;;  %v3112_v13 = vmul.f32 %v3080_v29, %v4426_v27  ;;  %v2873_v3 = vadd.f32 %v2787_v48, %v2583_v50 }
  0x64   : > { %v2875_v53 = vadd.f32 %v2792_v21, %v2585_v45  ;;  %v5700_v16 = vunpack.c.h.bf16 %v4488_v26  ;;  %v5699_v31 = vunpack.c.h.bf16 %v4492_v22  ;;  %v492_v2 = vunpack.c.l.bf16 %v490_v46 }
  0x65   : > { %v3134_v56 = vpack.c.bf16 %v3112_v13, %v3110_v20  ;;  %v2917_v8 = vadd.f32 %v4357_v42, %v2873_v3  ;;  %v493_v1 = vunpack.c.h.bf16 %v490_v46  ;;  %v494_v4 = vunpack.c.l.bf16 %v491_v58 }
  0x66   : > { %v2919_v39 = vadd.f32 %v4357_v42, %v2875_v53  ;;  %v495_v27 = vunpack.c.h.bf16 %v491_v58  ;;  %v496_v51 = vstv %s486_s23  ;;  %v653_v29 = vrot.slane %v5705_v7, 7 }
  0x67   : > { %3340 = vmatprep.mubr.bf16.mxu1 %v3134_v56  ;;  %v2949_v50 = vadd.f32 %v2917_v8, %v468_v30  ;;  %v498_v48 = vmul.f32 %v496_v51, %v493_v1  ;;  %v654_v20 = vrot.slane %v5707_v33, 7  ;;  %v655_v46 = vrot.slane %v5704_v15, 7 }
  0x68   : > { %v2951_v45 = vadd.f32 %v2919_v39, %v470_v32  ;;  %v500_v21 = vmul.f32 %v496_v51, %v495_v27  ;;  %v657_v13 = vrot.slane %v5706_v63, 7  ;;  %v660_v3 = vrot.slane %v5700_v16, 7  ;;  %750 = vst [vmem:[#allocation2 + $0x30] sm:$0xfe] %v653_v29 }
  0x69   : > { %v4521_v19 = vmul.f32 0.5, %v2949_v50  ;;  %v3013_v23 = vmul.f32 0.70710677, %v2949_v50  ;;  %751 = vst [vmem:[#allocation2 + $0x38] sm:$0xfe] %v654_v20  ;;  %v581_v53 = vrot.slane %v498_v48, 7  ;;  %v4526_v56 = vsel %vm579_vm1, %v653_v29, %v655_v46 }
  0x6a   : > { %v4523_v30 = vmul.f32 0.5, %v2951_v45  ;;  %v3015_v32 = vmul.f32 0.70710677, %v2951_v45  ;;  %v584_v58 = vrot.slane %v500_v21, 7  ;;  %v4529_v8 = vsel %vm579_vm1, %v654_v20, %v657_v13  ;;  %754 = vst [vmem:[#allocation2 + $0x50] sm:$0x1] %v655_v46 }
  0x6b   : > { %5774 = vst [vmem:[#allocation23_spill] sm:$0xff] %v4529_v8  ;;  %755 = vst [vmem:[#allocation2 + $0x58] sm:$0x1] %v657_v13  ;;  %3767 = verf.f32 %v3013_v23  ;;  %v663_v39 = vrot.slane %v5699_v31, 7  ;;  %v4536_v1 = vmul.f32 %v4278_v12, %v4529_v8  ;;  %v4540_v27 = vmul.f32 %v4288_v40, %v4529_v8 }
  0x6c   : > { %757 = vst [vmem:[#allocation2 + $0x68] sm:$0xfe] %v660_v3  ;;  %752 = vst [vmem:[#allocation2 + $0x40] sm:$0xff] %v4526_v56  ;;  %3769 = verf.f32 %v3015_v32  ;;  %v585_v29 = vsel %vm579_vm1, %v581_v53, %v584_v58  ;;  %v4545_v50 = vmul.f32 %v4312_v54, %v4529_v8  ;;  %v4547_v45 = vmul.f32 %v496_v51, %v492_v2 }
  0x6d   : > { %593 = vst [vmem:[#allocation2 + $0x8] sm:$0xfe] %v581_v53  ;;  %597 = vst [vmem:[#allocation2 + $0x28] sm:$0x1] %v584_v58  ;;  %v4550_v48 = vsel %vm579_vm1, %v660_v3, %v663_v39  ;;  %v4553_v20 = vmul.f32 %v4236_v60, %v585_v29  ;;  %v4556_v21 = vmul.f32 %v4242_v62, %v585_v29  ;;  %v1763_v13 = vrot.slane %v4540_v27, 1 }
  0x6e   : > { %5775 = vst [vmem:[#allocation24_spill] sm:$0xff] %v4550_v48  ;;  %761 = vst [vmem:[#allocation2 + $0x88] sm:$0x1] %v663_v39  ;;  %v4559_v46 = vmul.f32 %v4275_v11, %v585_v29  ;;  %v4566_v3 = vmul.f32 %v4325_v5, %v4550_v48  ;;  %v4570_v23 = vmul.f32 %v4339_v9, %v4550_v48  ;;  %v580_v18 = vrot.slane %v4547_v45, 7 }
  0x6f   : > { %759 = vst [vmem:[#allocation2 + $0x78] sm:$0xff] %v4550_v48  ;;  %v1067_v32 = vrot.slane %v4556_v21, 1  ;;  %v4576_v58 = vmul.f32 %v4360_v28, %v4550_v48  ;;  %v4578_v39 = vmul.f32 %v496_v51, %v494_v4  ;;  %v1498_v27 = vld [vmem:[#allocation2 + $0x30] sm:$0xff]  ;;  %v4588_v21 = vmul.f32 %v4431_v59, %v4526_v56 }
  0x70   : > { %v1613_v29 = vld [vmem:[#allocation2 + $0x30] sm:$0xfe]  ;;  %v4580_v31 = vld [vmem:[#allocation2 + $0x38] sm:$0xff]  ;;  %v4584_v37 = vmul.f32 %v4431_v59, %v1498_v27  ;;  %592 = vst [vmem:[#allocation2] sm:$0xfe] %v580_v18 }
  0x71   : > { %5776 = vst [vmem:[#allocation25_spill] sm:$0xff] %v4580_v31  ;;  %v1614_v16 = vld [vmem:[#allocation2 + $0x38] sm:$0xfe]  ;;  %v4591_v15 = vmul.f32 %v4285_v34, %v1613_v29  ;;  %v4595_v4 = vmul.f32 %v4278_v12, %v4580_v31 }
  0x72   : > { %v1904_v55 = vld [vmem:[#allocation2 + $0x38] sm:$0xfc]  ;;  %v1616_v51 = vld [vmem:[#allocation2 + $0x58] sm:$0x1]  ;;  %v1664_v7 = vmul.f32 %v4288_v40, %v1614_v16 }
  0x73   : > { %v1906_v63 = vld [vmem:[#allocation2 + $0x58] sm:$0x3]  ;;  %v1954_v33 = vmul.f32 %v4312_v54, %v1904_v55  ;;  %v4599_v41 = vld [vmem:[#allocation2 + $0x68] sm:$0xff]  ;;  %v1668_v52 = vmul.f32 %v4288_v40, %v1616_v51  ;;  %v4613_v51 = vmul.f32 %v4285_v34, %v4526_v56 }
  0x74   : > { %5777 = vst [vmem:[#allocation26_spill] sm:$0xff] %v4599_v41  ;;  %v1958_v36 = vmul.f32 %v4312_v54, %v1906_v63  ;;  %v4606_v29 = vmul.f32 %v4325_v5, %v4599_v41  ;;  %v2310_v53 = vld [vmem:[#allocation2 + $0x68] sm:$0xfe]  ;;  %v919_v48 = vld [vmem:[#allocation2 + $0x28] sm:$0x1]  ;;  %v1762_v55 = vrot.slane %v1664_v7, 1 }
  0x75   : > { %v2600_v2 = vld [vmem:[#allocation2 + $0x68] sm:$0xfc]  ;;  %v2360_v8 = vmul.f32 %v4339_v9, %v2310_v53  ;;  %v971_v31 = vmul.f32 %v4242_v62, %v919_v48  ;;  %v1210_v45 = vld [vmem:[#allocation2 + $0x28] sm:$0x3]  ;;  %v1767_v59 = vrot.slane %v1668_v52, 1  ;;  %v3768_v25 = vpop.eup %3767  ;;  %v2052_v24 = vrot.slane %v1954_v33, 2 }
  0x76   : > { %v802_v16 = vld [vmem:[#allocation2 + $0x8] sm:$0xff]  ;;  %v2650_v27 = vmul.f32 %v4360_v28, %v2600_v2  ;;  %v1262_v53 = vmul.f32 %v4275_v11, %v1210_v45  ;;  %v1764_v2 = vsel %vm1062_vm2, %v1762_v55, %v1763_v13  ;;  %v3770_v44 = vpop.eup %3769  ;;  %v3077_v5 = vadd.f32 1.0, %v3768_v25 }
  0x77   : > { %v917_v17 = vld [vmem:[#allocation2 + $0x8] sm:$0xfe]  ;;  %v853_v63 = vmul.f32 %v4236_v60, %v802_v16  ;;  %v1071_v16 = vrot.slane %v971_v31, 1  ;;  %v3079_v40 = vadd.f32 1.0, %v3770_v44  ;;  %v5778_v52 = vrot.slane %v4545_v50, 2 }
  0x78   : > { %v967_v41 = vmul.f32 %v4242_v62, %v917_v17  ;;  %v1208_v14 = vld [vmem:[#allocation2 + $0x8] sm:$0xfc]  ;;  %v1768_v17 = vsel %vm1062_vm2, %v1763_v13, %v1767_v59  ;;  %v1362_v12 = vrot.slane %v1262_v53, 2  ;;  %v2312_v62 = vld [vmem:[#allocation2 + $0x88] sm:$0x1]  ;;  %v2057_v55 = vrot.slane %v1958_v36, 2 }
  0x79   : > { %v1258_v7 = vmul.f32 %v4275_v11, %v1208_v14  ;;  %v2054_v42 = vsel %vm1353_vm3, %v2052_v24, %v5778_v52  ;;  %v3109_v14 = vmul.f32 %v3077_v5, %v4521_v19  ;;  %v1072_v33 = vsel %vm1062_vm2, %v1067_v32, %v1071_v16  ;;  %v2602_v25 = vld [vmem:[#allocation2 + $0x88] sm:$0x3] }
  0x7a   : > { %v1066_v54 = vrot.slane %v967_v41, 1  ;;  %v3111_v41 = vmul.f32 %v3079_v40, %v4523_v30  ;;  %v1178_v44 = vadd.f32 %v1072_v33, %v4553_v20  ;;  %v5779_v59 = vrot.slane %v4559_v46, 2 }
  0x7b   : > { %v1357_v48 = vrot.slane %v1258_v7, 2  ;;  %v5781_v5 = vmov %v5778_v52  ;;  %v2364_v36 = vmul.f32 %v4339_v9, %v2312_v62  ;;  %v2458_v19 = vrot.slane %v2360_v8, 1 }
  0x7c   : > { %v1068_v45 = vsel %vm1062_vm2, %v1066_v54, %v1067_v32  ;;  %v5780_v24 = vmov %v5779_v59  ;;  %v2058_v54 = vsel %vm1353_vm3, %v5781_v5, %v2057_v55  ;;  %v3133_v32 = vpack.c.bf16 %v3111_v41, %v3109_v14 }
  0x7d   : > { %v1176_v31 = vadd.f32 %v1068_v45, %v853_v63  ;;  %v1359_v13 = vsel %vm1353_vm3, %v1357_v48, %v5779_v59  ;;  %v1363_v7 = vsel %vm1353_vm3, %v5780_v24, %v1362_v12  ;;  %v2654_v20 = vmul.f32 %v4360_v28, %v2602_v25  ;;  %v801_v48 = vld [vmem:[#allocation2] sm:$0xff]  ;;  %v1615_v24 = vld [vmem:[#allocation2 + $0x50] sm:$0x1] }
  0x7e   : > { %v1469_v30 = vadd.f32 %v1363_v7, %v1178_v44  ;;  %v5782_v63 = vrot.slane %v4570_v23, 1  ;;  %v2463_v16 = vrot.slane %v2364_v36, 1  ;;  %v2748_v46 = vrot.slane %v2650_v27, 2  ;;  %3341 = vmatmul.mubr.bf16.vlgmr.msra.gmra.mrb[0].mxu1 %v3133_v32  ;;  %v916_v45 = vld [vmem:[#allocation2] sm:$0xfe] }
  0x7f   : > { %v1467_v40 = vadd.f32 %v1359_v13, %v1176_v31  ;;  %v582_v12 = vrot.slane %v4578_v39, 7  ;;  %v2753_v8 = vrot.slane %v2654_v20, 2  ;;  %v5783_v52 = vunpack.c.l.bf16 %v4488_v26  ;;  %v1903_v32 = vld [vmem:[#allocation2 + $0x30] sm:$0xfc] }
  0x80   : > { %v2460_v53 = vsel %vm1062_vm2, %v2458_v19, %v5782_v63  ;;  %v1584_v62 = vadd.f32 %v4536_v1, %v1469_v30  ;;  %v5784_v33 = vmov %v5782_v63  ;;  %v5785_v25 = vrot.slane %v4576_v58, 2  ;;  %v1207_v1 = vld [vmem:[#allocation2] sm:$0xfc] }
  0x81   : > { %v1582_v50 = vadd.f32 %v4595_v4, %v1467_v40  ;;  %v659_v14 = vrot.slane %v5783_v52, 7  ;;  %v2464_v55 = vsel %vm1062_vm2, %v5784_v33, %v2463_v16  ;;  %v583_v39 = vsel %vm579_vm1, %v580_v18, %v582_v12  ;;  %596 = vst [vmem:[#allocation2 + $0x20] sm:$0x1] %v582_v12 }
  0x82   : > { %v2750_v27 = vsel %vm1353_vm3, %v2748_v46, %v5785_v25  ;;  %v5786_v4 = vunpack.c.l.bf16 %v4492_v22  ;;  %v1874_v44 = vadd.f32 %v1768_v17, %v1584_v62  ;;  %v5787_v59 = vmov %v5785_v25  ;;  %v1905_v25 = vld [vmem:[#allocation2 + $0x50] sm:$0x3] }
  0x83   : > { %v1872_v31 = vadd.f32 %v1764_v2, %v1582_v50  ;;  %v2754_v13 = vsel %vm1353_vm3, %v5787_v59, %v2753_v8  ;;  %756 = vst [vmem:[#allocation2 + $0x60] sm:$0xfe] %v659_v14  ;;  %v852_v23 = vmul.f32 %v4392_v43, %v801_v48  ;;  %v854_v18 = vmul.f32 %v4392_v43, %v583_v39 }
  0x84   : > { %v661_v41 = vrot.slane %v5786_v4, 7  ;;  %v966_v5 = vmul.f32 %v4239_v61, %v916_v45  ;;  %v968_v36 = vmul.f32 %v4239_v61, %v583_v39  ;;  %v2164_v17 = vadd.f32 %v2058_v54, %v1874_v44 }
  0x85   : > { %v2162_v2 = vadd.f32 %v2054_v42, %v1872_v31  ;;  %v1257_v58 = vmul.f32 %v4272_v10, %v1207_v1  ;;  %v1259_v19 = vmul.f32 %v4272_v10, %v583_v39  ;;  %v1667_v20 = vmul.f32 %v4285_v34, %v1615_v24 }
  0x86   : > { %v4663_v7 = vsel %vm579_vm1, %v659_v14, %v661_v41  ;;  %760 = vst [vmem:[#allocation2 + $0x80] sm:$0x1] %v661_v41  ;;  %v1063_v40 = vrot.slane %v966_v5, 1  ;;  %v1064_v30 = vrot.slane %v968_v36, 1  ;;  %v1759_v63 = vrot.slane %v4591_v15, 1 }
  0x87   : > { %758 = vst [vmem:[#allocation2 + $0x70] sm:$0xff] %v4663_v7  ;;  %v2278_v16 = vadd.f32 %v4606_v29, %v2162_v2  ;;  %v2280_v46 = vadd.f32 %v4566_v3, %v2164_v17  ;;  %v1354_v12 = vrot.slane %v1257_v58, 2  ;;  %v1355_v42 = vrot.slane %v1259_v19, 2 }
  0x88   : > { %v1065_v54 = vsel %vm1062_vm2, %v1063_v40, %v1064_v30  ;;  %v1760_v48 = vrot.slane %v4613_v51, 1  ;;  %v1765_v50 = vrot.slane %v1667_v20, 1  ;;  %v1953_v62 = vmul.f32 %v4296_v47, %v1903_v32  ;;  %v918_v14 = vld [vmem:[#allocation2 + $0x20] sm:$0x1] }
  0x89   : > { %v2568_v8 = vadd.f32 %v2460_v53, %v2278_v16  ;;  %v2570_v52 = vadd.f32 %v2464_v55, %v2280_v46  ;;  %v1175_v45 = vadd.f32 %v1065_v54, %v852_v23  ;;  %v1209_v33 = vld [vmem:[#allocation2 + $0x20] sm:$0x3]  ;;  %v1356_v15 = vsel %vm1353_vm3, %v1354_v12, %v1355_v42 }
  0x8a   : > { %v970_v29 = vmul.f32 %v4239_v61, %v918_v14  ;;  %v1261_v3 = vmul.f32 %v4272_v10, %v1209_v33  ;;  %v1761_v39 = vsel %vm1062_vm2, %v1759_v63, %v1760_v48  ;;  %v1766_v4 = vsel %vm1062_vm2, %v1760_v48, %v1765_v50  ;;  %v4685_v55 = vld [vmem:[#allocation2 + $0x60] sm:$0xff] }
  0x8b   : > { %v2858_v51 = vadd.f32 %v2750_v27, %v2568_v8  ;;  %v2860_v41 = vadd.f32 %v2754_v13, %v2570_v52  ;;  %v1466_v1 = vadd.f32 %v1356_v15, %v1175_v45  ;;  %v1955_v53 = vmul.f32 %v4296_v47, %v4526_v56  ;;  %v2309_v27 = vld [vmem:[#allocation2 + $0x60] sm:$0xfe] }
  0x8c   : > { %v1069_v31 = vrot.slane %v970_v29, 1  ;;  %v1360_v44 = vrot.slane %v1261_v3, 2  ;;  %v1957_v59 = vmul.f32 %v4296_v47, %v1905_v25  ;;  %v2049_v23 = vrot.slane %v1953_v62, 2  ;;  %v2599_v54 = vld [vmem:[#allocation2 + $0x60] sm:$0xfc] }
  0x8d   : > { %v2902_v24 = vadd.f32 %v4366_v38, %v2858_v51  ;;  %v2904_v5 = vadd.f32 %v4366_v38, %v2860_v41  ;;  %v1581_v36 = vadd.f32 %v4584_v37, %v1466_v1  ;;  %v2050_v2 = vrot.slane %v1955_v53, 2  ;;  %v2311_v46 = vld [vmem:[#allocation2 + $0x80] sm:$0x1] }
  0x8e   : > { %v1070_v13 = vsel %vm1062_vm2, %v1064_v30, %v1069_v31  ;;  %v1361_v17 = vsel %vm1353_vm3, %v1355_v42, %v1360_v44  ;;  %v2055_v56 = vrot.slane %v1957_v59, 2  ;;  %v2245_v58 = vmul.f32 %v4455_v35, %v4685_v55  ;;  %v2601_v33 = vld [vmem:[#allocation2 + $0x80] sm:$0x3] }
  0x8f   : > { %v5788_v19 = vunpack.c.h.bf16 %v4464_v57  ;;  %v5789_v40 = vunpack.c.h.bf16 %v4483_v6  ;;  %v1177_v63 = vadd.f32 %v1070_v13, %v854_v18  ;;  %v1871_v16 = vadd.f32 %v1761_v39, %v1581_v36  ;;  %v4715_v3 = vld [vmem:[%s4131_s30 + $0x60] sm:$0xff]  ;;  %v4718_v39 = vld [vmem:[%s4131_s30 + $0x68] sm:$0xff] }
  0x90   : > { %v2051_v37 = vsel %vm1353_vm3, %v2049_v23, %v2050_v2  ;;  %v2056_v12 = vsel %vm1353_vm3, %v2050_v2, %v2055_v56  ;;  %v2247_v30 = vmul.f32 %v4455_v35, %v4663_v7  ;;  %v2359_v42 = vmul.f32 %v4336_v49, %v2309_v27  ;;  %v822_v23 = vld [vmem:[#allocation2 + $0xf8] sm:$0xff] }
  0x91   : > { %v2934_v32 = vadd.f32 %v2902_v24, %v5788_v19  ;;  %v2936_v20 = vadd.f32 %v2904_v5, %v5789_v40  ;;  %v1468_v8 = vadd.f32 %v1361_v17, %v1177_v63  ;;  %v2161_v52 = vadd.f32 %v2051_v37, %v1871_v16  ;;  %v937_v27 = vld [vmem:[#allocation2 + $0xf8] sm:$0xfe]  ;;  %v939_v19 = vld [vmem:[#allocation2 + $0x118] sm:$0x1] }
  0x92   : > { %v2361_v14 = vmul.f32 %v4336_v49, %v4663_v7  ;;  %v2363_v45 = vmul.f32 %v4336_v49, %v2311_v46  ;;  %v2455_v15 = vrot.slane %v2359_v42, 1  ;;  %v2649_v25 = vmul.f32 %v4354_v0, %v2599_v54  ;;  %v1228_v63 = vld [vmem:[#allocation2 + $0xf8] sm:$0xfc]  ;;  %v5790_v42 = vld [vmem:[#allocation14_spill] sm:$0xff] }
  0x93   : > { %v4704_v48 = vmul.f32 0.5, %v2934_v32  ;;  %v4706_v50 = vmul.f32 0.5, %v2936_v20  ;;  %v2998_v62 = vmul.f32 0.70710677, %v2934_v32  ;;  %v3000_v18 = vmul.f32 0.70710677, %v2936_v20 }
  0x94   : > { %v2651_v29 = vmul.f32 %v4354_v0, %v4663_v7  ;;  %v1583_v51 = vadd.f32 %v4588_v21, %v1468_v8  ;;  %v2277_v41 = vadd.f32 %v2245_v58, %v2161_v52  ;;  %v2456_v1 = vrot.slane %v2361_v14, 1  ;;  %v824_v58 = vld [vmem:[#allocation2 + $0x108] sm:$0xff] }
  0x95   : > { %3771 = verf.f32 %v2998_v62  ;;  %v2461_v53 = vrot.slane %v2363_v45, 1  ;;  %v2653_v31 = vmul.f32 %v4354_v0, %v2601_v33  ;;  %v2745_v44 = vrot.slane %v2649_v25, 2  ;;  %v1230_v62 = vld [vmem:[#allocation2 + $0x118] sm:$0x3]  ;;  %v4740_v14 = vld [vmem:[#allocation2 + $0x128] sm:$0xff] }
  0x96   : > { %3773 = verf.f32 %v3000_v18  ;;  %v2746_v59 = vrot.slane %v2651_v29, 2  ;;  %v1873_v24 = vadd.f32 %v1766_v4, %v1583_v51  ;;  %v2457_v5 = vsel %vm1062_vm2, %v2455_v15, %v2456_v1  ;;  %v5791_v45 = vld [vmem:[#allocation19_spill] sm:$0xff] }
  0x97   : > { %v5741_v36 = vunpack.c.h.bf16 %v4715_v3  ;;  %v5740_v2 = vunpack.c.h.bf16 %v4718_v39  ;;  %v2462_v13 = vsel %vm1062_vm2, %v2456_v1, %v2461_v53  ;;  %v2567_v17 = vadd.f32 %v2457_v5, %v2277_v41 }
  0x98   : > { %v2747_v21 = vsel %vm1353_vm3, %v2745_v44, %v2746_v59  ;;  %v2751_v56 = vrot.slane %v2653_v31, 2  ;;  %v2163_v32 = vadd.f32 %v2056_v12, %v1873_v24  ;;  %v873_v20 = vmul.f32 %v4236_v60, %v822_v23  ;;  %v5793_v24 = vld [vmem:[#allocation15_spill] sm:$0xff] }
  0x99   : > { %v690_v40 = vrot.slane %v5741_v36, 7  ;;  %v693_v4 = vrot.slane %v5740_v2, 7  ;;  %v2857_v46 = vadd.f32 %v2747_v21, %v2567_v17  ;;  %v875_v37 = vmul.f32 %v4236_v60, %v824_v58  ;;  %v921_v36 = vld [vmem:[#allocation2 + $0x38] sm:$0xfe] }
  0x9a   : > { %v2752_v16 = vsel %vm1353_vm3, %v2746_v59, %v2751_v56  ;;  %v997_v54 = vmul.f32 %v5790_v42, %v937_v27  ;;  %v2279_v18 = vadd.f32 %v2247_v30, %v2163_v32  ;;  %v999_v8 = vmul.f32 %v5790_v42, %v824_v58 }
  0x9b   : > { %v4736_v12 = vsel %vm579_vm1, %v690_v40, %v693_v4  ;;  %787 = vst [vmem:[#allocation2 + $0x158] sm:$0xfe] %v690_v40  ;;  %791 = vst [vmem:[#allocation2 + $0x178] sm:$0x1] %v693_v4  ;;  %v1001_v52 = vmul.f32 %v5790_v42, %v939_v19  ;;  %v2901_v33 = vadd.f32 %v5791_v45, %v2857_v46  ;;  %v5792_v31 = vunpack.c.l.bf16 %v4464_v57  ;;  %v1634_v4 = vld [vmem:[#allocation2 + $0x128] sm:$0xfe] }
  0x9c   : > { %789 = vst [vmem:[#allocation2 + $0x168] sm:$0xff] %v4736_v12  ;;  %v1116_v15 = vrot.slane %v997_v54, 1  ;;  %v1288_v25 = vmul.f32 %v4275_v11, %v1228_v63  ;;  %v1290_v30 = vmul.f32 %v4275_v11, %v824_v58  ;;  %v2569_v29 = vadd.f32 %v2462_v13, %v2279_v18  ;;  %v4753_v58 = vld [vmem:[#allocation2 + $0x138] sm:$0xff] }
  0x9d   : > { %v1117_v51 = vrot.slane %v999_v8, 1  ;;  %v1121_v41 = vrot.slane %v1001_v52, 1  ;;  %v1292_v1 = vmul.f32 %v4275_v11, %v1230_v62  ;;  %v2933_v44 = vadd.f32 %v2901_v33, %v5792_v31 }
  0x9e   : > { %v1407_v59 = vrot.slane %v1288_v25, 2  ;;  %v1408_v23 = vrot.slane %v1290_v30, 2  ;;  %v1570_v5 = vmul.f32 %v5793_v24, %v4740_v14  ;;  %v2859_v21 = vadd.f32 %v2752_v16, %v2569_v29  ;;  %v1636_v16 = vld [vmem:[#allocation2 + $0x148] sm:$0x1]  ;;  %v5795_v25 = vld [vmem:[#allocation16_spill] sm:$0xff] }
  0x9f   : > { %v3772_v53 = vpop.eup %3771  ;;  %v1118_v56 = vsel %vm1062_vm2, %v1116_v15, %v1117_v51  ;;  %v1122_v13 = vsel %vm1062_vm2, %v1117_v51, %v1121_v41  ;;  %v4755_v32 = vmul.f32 0.5, %v2933_v44  ;;  %v2997_v40 = vmul.f32 0.70710677, %v2933_v44 }
  0xa0   : > { %v3774_v27 = vpop.eup %3773  ;;  %v3062_v17 = vadd.f32 1.0, %v3772_v53  ;;  %v1196_v57 = vadd.f32 %v1118_v56, %v873_v20  ;;  %v2903_v46 = vadd.f32 %v5791_v45, %v2859_v21  ;;  %v1198_v54 = vadd.f32 %v1122_v13, %v875_v37  ;;  %v1924_v37 = vld [vmem:[#allocation2 + $0x128] sm:$0xfc]  ;;  %v5796_v21 = vld [vmem:[#allocation17_spill] sm:$0xff] }
  0xa1   : > { %v3064_v19 = vadd.f32 1.0, %v3774_v27  ;;  %v1409_v62 = vsel %vm1353_vm3, %v1407_v59, %v1408_v23  ;;  %3775 = verf.f32 %v2997_v40  ;;  %v1412_v8 = vrot.slane %v1292_v1, 2  ;;  %v1926_v1 = vld [vmem:[#allocation2 + $0x148] sm:$0x3] }
  0xa2   : > { %v3094_v63 = vmul.f32 %v3062_v17, %v4704_v48  ;;  %v1487_v52 = vadd.f32 %v1409_v62, %v1196_v57  ;;  %v5794_v33 = vunpack.c.l.bf16 %v4483_v6  ;;  %v1572_v20 = vmul.f32 %v5793_v24, %v4753_v58  ;;  %v4770_v53 = vld [vmem:[#allocation2 + $0x158] sm:$0xff] }
  0xa3   : > { %v3096_v18 = vmul.f32 %v3064_v19, %v4706_v50  ;;  %v1694_v30 = vmul.f32 %v5795_v25, %v1634_v4  ;;  %v1696_v48 = vmul.f32 %v5795_v25, %v4753_v58  ;;  %v1413_v51 = vsel %vm1353_vm3, %v1408_v23, %v1412_v8  ;;  %v5797_v19 = vld [vmem:[#allocation18_spill] sm:$0xff]  ;;  %v2330_v57 = vld [vmem:[#allocation2 + $0x158] sm:$0xfe]  ;;  %v2332_v4 = vld [vmem:[#allocation2 + $0x178] sm:$0x1] }
  0xa4   : > { %v2935_v15 = vadd.f32 %v2903_v46, %v5794_v33  ;;  %v1602_v41 = vadd.f32 %v1570_v5, %v1487_v52  ;;  %v1698_v50 = vmul.f32 %v5795_v25, %v1636_v16  ;;  %v1489_v44 = vadd.f32 %v1413_v51, %v1198_v54  ;;  %v2620_v16 = vld [vmem:[#allocation2 + $0x158] sm:$0xfc] }
  0xa5   : > { %v3126_v29 = vpack.c.bf16 %v3096_v18, %v3094_v63  ;;  %v1812_v59 = vrot.slane %v1694_v30, 1  ;;  %v1813_v27 = vrot.slane %v1696_v48, 1  ;;  %v1984_v56 = vmul.f32 %v5796_v21, %v1924_v37  ;;  %v2622_v37 = vld [vmem:[#allocation2 + $0x178] sm:$0x3] }
  0xa6   : > { %v4772_v6 = vmul.f32 0.5, %v2935_v15  ;;  %v2999_v31 = vmul.f32 0.70710677, %v2935_v15  ;;  %v1817_v17 = vrot.slane %v1698_v50, 1  ;;  %v1986_v13 = vmul.f32 %v5796_v21, %v4753_v58 }
  0xa7   : > { %3308 = vmatprep.mubr.bf16.mxu0 %v3126_v29  ;;  %v1604_v23 = vadd.f32 %v1572_v20, %v1489_v44  ;;  %v1988_v5 = vmul.f32 %v5796_v21, %v1926_v1  ;;  %v2266_v40 = vmul.f32 %v5797_v19, %v4770_v53  ;;  %v1814_v63 = vsel %vm1062_vm2, %v1812_v59, %v1813_v27 }
  0xa8   : > { %3777 = verf.f32 %v2999_v31  ;;  %v1818_v46 = vsel %vm1062_vm2, %v1813_v27, %v1817_v17  ;;  %v2102_v54 = vrot.slane %v1984_v56, 2  ;;  %v2103_v62 = vrot.slane %v1986_v13, 2 }
  0xa9   : > { %v1892_v18 = vadd.f32 %v1814_v63, %v1602_v41  ;;  %v1894_v8 = vadd.f32 %v1818_v46, %v1604_v23  ;;  %v2107_v52 = vrot.slane %v1988_v5, 2  ;;  %v2268_v33 = vmul.f32 %v5797_v19, %v4736_v12 }
  0xaa   : > { %v2104_v15 = vsel %vm1353_vm3, %v2102_v54, %v2103_v62  ;;  %v2390_v20 = vmul.f32 %v4339_v9, %v2330_v57  ;;  %v2392_v30 = vmul.f32 %v4339_v9, %v4736_v12  ;;  %v2394_v48 = vmul.f32 %v4339_v9, %v2332_v4 }
  0xab   : > { %v2108_v29 = vsel %vm1353_vm3, %v2103_v62, %v2107_v52  ;;  %v2182_v51 = vadd.f32 %v2104_v15, %v1892_v18  ;;  %v2680_v41 = vmul.f32 %v4360_v28, %v2620_v16  ;;  %v2682_v50 = vmul.f32 %v4360_v28, %v4736_v12  ;;  %v3776_v1 = vpop.eup %3775  ;;  %v936_v18 = vld [vmem:[#allocation2 + $0xf0] sm:$0xfe]  ;;  %v823_v15 = vld [vmem:[#allocation2 + $0x100] sm:$0xff] }
  0xac   : > { %v2184_v31 = vadd.f32 %v2108_v29, %v1894_v8  ;;  %v2508_v44 = vrot.slane %v2390_v20, 1  ;;  %v2509_v59 = vrot.slane %v2392_v30, 1  ;;  %v2513_v27 = vrot.slane %v2394_v48, 1  ;;  %v938_v30 = vld [vmem:[#allocation2 + $0x110] sm:$0x1] }
  0xad   : > { %v3061_v17 = vadd.f32 1.0, %v3776_v1  ;;  %v2298_v56 = vadd.f32 %v2266_v40, %v2182_v51  ;;  %v2684_v13 = vmul.f32 %v4360_v28, %v2622_v37  ;;  %v2798_v23 = vrot.slane %v2680_v41, 2  ;;  %v1227_v48 = vld [vmem:[#allocation2 + $0xf0] sm:$0xfc] }
  0xae   : > { %v2300_v5 = vadd.f32 %v2268_v33, %v2184_v31  ;;  %v2510_v57 = vsel %vm1062_vm2, %v2508_v44, %v2509_v59  ;;  %v2514_v4 = vsel %vm1062_vm2, %v2509_v59, %v2513_v27  ;;  %v2799_v63 = vrot.slane %v2682_v50, 2  ;;  %v5798_v33 = vld [vmem:[#allocation20_spill] sm:$0xff] }
  0xaf   : > { %v3093_v46 = vmul.f32 %v3061_v17, %v4755_v32  ;;  %v2588_v54 = vadd.f32 %v2510_v57, %v2298_v56  ;;  %v2803_v62 = vrot.slane %v2684_v13, 2  ;;  %v5739_v16 = vunpack.c.l.bf16 %v4715_v3  ;;  %v1229_v56 = vld [vmem:[#allocation2 + $0x110] sm:$0x3] }
  0xb0   : > { %v2590_v8 = vadd.f32 %v2514_v4, %v2300_v5  ;;  %v2800_v52 = vsel %vm1353_vm3, %v2798_v23, %v2799_v63  ;;  %v5738_v40 = vunpack.c.l.bf16 %v4718_v39  ;;  %v872_v20 = vmul.f32 %v5798_v33, %v4392_v43 }
  0xb1   : > { %v2804_v29 = vsel %vm1353_vm3, %v2799_v63, %v2803_v62  ;;  %v2878_v32 = vadd.f32 %v2800_v52, %v2588_v54  ;;  %v689_v51 = vrot.slane %v5739_v16, 7  ;;  %v874_v41 = vmul.f32 %v4392_v43, %v823_v15  ;;  %v5799_v63 = vld [vmem:[#allocation12_spill] sm:$0xff] }
  0xb2   : > { %v3778_v37 = vpop.eup %3777  ;;  %v2880_v1 = vadd.f32 %v2804_v29, %v2590_v8  ;;  %v691_v31 = vrot.slane %v5738_v40, 7  ;;  %v996_v44 = vmul.f32 %v4239_v61, %v936_v18  ;;  %v998_v27 = vmul.f32 %v4239_v61, %v823_v15 }
  0xb3   : > { %v3063_v50 = vadd.f32 1.0, %v3778_v37  ;;  %v2922_v59 = vadd.f32 %v4366_v38, %v2878_v32  ;;  %786 = vst [vmem:[#allocation2 + $0x150] sm:$0xfe] %v689_v51  ;;  %v1000_v17 = vmul.f32 %v4239_v61, %v938_v30  ;;  %v1287_v13 = vmul.f32 %v4272_v10, %v1227_v48  ;;  %v5801_v30 = vld [vmem:[#allocation13_spill] sm:$0xff]  ;;  %v1633_v32 = vld [vmem:[#allocation2 + $0x120] sm:$0xfe] }
  0xb4   : > { %v2924_v5 = vadd.f32 %v4366_v38, %v2880_v1  ;;  %v4816_v57 = vsel %vm579_vm1, %v689_v51, %v691_v31  ;;  %790 = vst [vmem:[#allocation2 + $0x170] sm:$0x1] %v691_v31  ;;  %v1113_v4 = vrot.slane %v996_v44, 1  ;;  %v5800_v54 = vunpack.c.h.bf16 %v5799_v63  ;;  %v4829_v44 = vld [vmem:[#allocation2 + $0x130] sm:$0xff] }
  0xb5   : > { %v3095_v23 = vmul.f32 %v3063_v50, %v4772_v6  ;;  %788 = vst [vmem:[#allocation2 + $0x160] sm:$0xff] %v4816_v57  ;;  %v1114_v18 = vrot.slane %v998_v27, 1  ;;  %v1119_v8 = vrot.slane %v1000_v17, 1  ;;  %v1289_v52 = vmul.f32 %v4272_v10, %v823_v15 }
  0xb6   : > { %v2954_v62 = vadd.f32 %v2922_v59, %v5800_v54  ;;  %v5802_v48 = vunpack.c.h.bf16 %v5801_v30  ;;  %v1291_v37 = vmul.f32 %v4272_v10, %v1229_v56  ;;  %v1404_v29 = vrot.slane %v1287_v13, 2  ;;  %v1635_v59 = vld [vmem:[#allocation2 + $0x140] sm:$0x1] }
  0xb7   : > { %v3125_v33 = vpack.c.bf16 %v3095_v23, %v3093_v46  ;;  %v1115_v1 = vsel %vm1062_vm2, %v1113_v4, %v1114_v18  ;;  %v1120_v31 = vsel %vm1062_vm2, %v1114_v18, %v1119_v8  ;;  %v1923_v23 = vld [vmem:[#allocation2 + $0x120] sm:$0xfc]  ;;  %v1405_v56 = vrot.slane %v1289_v52, 2 }
  0xb8   : > { %v2956_v6 = vadd.f32 %v2924_v5, %v5802_v48  ;;  %v4825_v51 = vmul.f32 0.5, %v2954_v62  ;;  %v3018_v50 = vmul.f32 0.70710677, %v2954_v62  ;;  %v1195_v27 = vadd.f32 %v1115_v1, %v872_v20  ;;  %v5803_v5 = vld [vmem:[#allocation21_spill] sm:$0xff]  ;;  %v5804_v54 = vld [vmem:[#allocation22_spill] sm:$0xff] }
  0xb9   : > { %3309 = vmatmul.mubr.bf16.vlgmr.msra.gmra.mrb[0].mxu0 %v3125_v33  ;;  %v1197_v17 = vadd.f32 %v1120_v31, %v874_v41  ;;  %v1410_v13 = vrot.slane %v1291_v37, 2  ;;  %v1569_v62 = vmul.f32 %v5804_v54, %v5803_v5  ;;  %v1571_v4 = vmul.f32 %v5803_v5, %v4829_v44  ;;  %v1925_v33 = vld [vmem:[#allocation2 + $0x140] sm:$0x3] }
  0xba   : > { %v4831_v15 = vmul.f32 0.5, %v2956_v6  ;;  %v3020_v46 = vmul.f32 0.70710677, %v2956_v6  ;;  %3779 = verf.f32 %v3018_v50  ;;  %v1693_v18 = vmul.f32 %v4285_v34, %v1633_v32  ;;  %v4844_v6 = vld [vmem:[#allocation2 + $0x150] sm:$0xff] }
  0xbb   : > { %v1695_v8 = vmul.f32 %v4285_v34, %v4829_v44  ;;  %v1406_v20 = vsel %vm1353_vm3, %v1404_v29, %v1405_v56  ;;  %v1411_v41 = vsel %vm1353_vm3, %v1405_v56, %v1410_v13  ;;  %v1697_v52 = vmul.f32 %v4285_v34, %v1635_v59  ;;  %v2329_v29 = vld [vmem:[#allocation2 + $0x150] sm:$0xfe]  ;;  %v2331_v13 = vld [vmem:[#allocation2 + $0x170] sm:$0x1] }
  0xbc   : > { %3781 = verf.f32 %v3020_v46  ;;  %v1983_v48 = vmul.f32 %v4296_v47, %v1923_v23  ;;  %v1486_v37 = vadd.f32 %v1406_v20, %v1195_v27  ;;  %v1488_v50 = vadd.f32 %v1411_v41, %v1197_v17  ;;  %v2619_v27 = vld [vmem:[#allocation2 + $0x150] sm:$0xfc] }
  0xbd   : > { %v1809_v1 = vrot.slane %v1693_v18, 1  ;;  %v1810_v31 = vrot.slane %v1695_v8, 1  ;;  %v1815_v46 = vrot.slane %v1697_v52, 1  ;;  %v1985_v32 = vmul.f32 %v4296_v47, %v4829_v44 }
  0xbe   : > { %v1987_v54 = vmul.f32 %v4296_v47, %v1925_v33  ;;  %v2099_v40 = vrot.slane %v1983_v48, 2  ;;  %v1601_v16 = vadd.f32 %v1569_v62, %v1486_v37  ;;  %v1603_v56 = vadd.f32 %v1571_v4, %v1488_v50  ;;  %v2621_v4 = vld [vmem:[#allocation2 + $0x170] sm:$0x3] }
  0xbf   : > { %v1811_v59 = vsel %vm1062_vm2, %v1809_v1, %v1810_v31  ;;  %v2265_v23 = vmul.f32 %v4455_v35, %v4844_v6  ;;  %v1816_v17 = vsel %vm1062_vm2, %v1810_v31, %v1815_v46  ;;  %v2100_v18 = vrot.slane %v1985_v32, 2 }
  0xc0   : > { %v2105_v8 = vrot.slane %v1987_v54, 2  ;;  %v2267_v20 = vmul.f32 %v4455_v35, %v4816_v57  ;;  %v1891_v41 = vadd.f32 %v1811_v59, %v1601_v16  ;;  %v1893_v33 = vadd.f32 %v1816_v17, %v1603_v56 }
  0xc1   : > { %v2389_v52 = vmul.f32 %v4336_v49, %v2329_v29  ;;  %v2391_v62 = vmul.f32 %v4336_v49, %v4816_v57  ;;  %v2101_v48 = vsel %vm1353_vm3, %v2099_v40, %v2100_v18  ;;  %v2393_v50 = vmul.f32 %v4336_v49, %v2331_v13  ;;  %v4866_v40 = vld [vmem:[%s4131_s30 + $0x20] sm:$0xff] }
  0xc2   : > { %v2106_v37 = vsel %vm1353_vm3, %v2100_v18, %v2105_v8  ;;  %v2679_v1 = vmul.f32 %v4354_v0, %v2619_v27  ;;  %v2181_v31 = vadd.f32 %v2101_v48, %v1891_v41  ;;  %v2681_v56 = vmul.f32 %v4354_v0, %v4816_v57  ;;  %v4870_v41 = vld [vmem:[%s4131_s30 + $0x28] sm:$0xff] }
  0xc3   : > { %v2183_v46 = vadd.f32 %v2106_v37, %v1893_v33  ;;  %v2505_v16 = vrot.slane %v2389_v52, 1  ;;  %v2506_v32 = vrot.slane %v2391_v62, 1  ;;  %v2511_v29 = vrot.slane %v2393_v50, 1 }
  0xc4   : > { %v3780_v54 = vpop.eup %3779  ;;  %v2683_v59 = vmul.f32 %v4354_v0, %v2621_v4  ;;  %v2795_v17 = vrot.slane %v2679_v1, 2  ;;  %v2297_v13 = vadd.f32 %v2265_v23, %v2181_v31  ;;  %v2796_v62 = vrot.slane %v2681_v56, 2  ;;  %v1212_v56 = vld [vmem:[#allocation2 + $0x38] sm:$0xfc] }
  0xc5   : > { %v3082_v8 = vadd.f32 1.0, %v3780_v54  ;;  %v2299_v2 = vadd.f32 %v2267_v20, %v2183_v46  ;;  %v2507_v27 = vsel %vm1062_vm2, %v2505_v16, %v2506_v32  ;;  %v2512_v52 = vsel %vm1062_vm2, %v2506_v32, %v2511_v29  ;;  %v923_v46 = vld [vmem:[#allocation2 + $0x58] sm:$0x1] }
  0xc6   : > { %v3782_v18 = vpop.eup %3781  ;;  %v2801_v48 = vrot.slane %v2683_v59, 2  ;;  %v2587_v50 = vadd.f32 %v2507_v27, %v2297_v13  ;;  %v5743_v1 = vunpack.c.h.bf16 %v4866_v40  ;;  %v2797_v23 = vsel %vm1353_vm3, %v2795_v17, %v2796_v62 }
  0xc7   : > { %v3084_v33 = vadd.f32 1.0, %v3782_v18  ;;  %v3114_v37 = vmul.f32 %v3082_v8, %v4825_v51  ;;  %v2589_v4 = vadd.f32 %v2512_v52, %v2299_v2  ;;  %v5742_v31 = vunpack.c.h.bf16 %v4870_v41  ;;  %v5805_v51 = vld [vmem:[#allocation25_spill] sm:$0xff]  ;;  %v5806_v18 = vld [vmem:[#allocation23_spill] sm:$0xff] }
  0xc8   : > { %v2802_v20 = vsel %vm1353_vm3, %v2796_v62, %v2801_v48  ;;  %v2877_v16 = vadd.f32 %v2797_v23, %v2587_v50  ;;  %v666_v29 = vrot.slane %v5743_v1, 7  ;;  %v857_v2 = vmul.f32 %v5805_v51, %v4236_v60  ;;  %v1214_v62 = vld [vmem:[#allocation2 + $0x58] sm:$0x3] }
  0xc9   : > { %v3116_v54 = vmul.f32 %v3084_v33, %v4831_v15  ;;  %v2879_v32 = vadd.f32 %v2802_v20, %v2589_v4  ;;  %v669_v15 = vrot.slane %v5742_v31, 7  ;;  %v859_v17 = vmul.f32 %v4236_v60, %v5806_v18  ;;  %v1910_v31 = vld [vmem:[#allocation2 + $0x88] sm:$0x3] }
  0xca   : > { %v973_v8 = vmul.f32 %v5790_v42, %v921_v36  ;;  %v2921_v13 = vadd.f32 %v5791_v45, %v2877_v16  ;;  %763 = vst [vmem:[#allocation2 + $0x98] sm:$0xfe] %v666_v29  ;;  %v975_v33 = vmul.f32 %v5790_v42, %v5806_v18  ;;  %v977_v52 = vmul.f32 %v5790_v42, %v923_v46 }
  0xcb   : > { %v3136_v59 = vpack.c.bf16 %v3116_v54, %v3114_v37  ;;  %v2923_v27 = vadd.f32 %v5791_v45, %v2879_v32  ;;  %v4894_v48 = vsel %vm579_vm1, %v666_v29, %v669_v15  ;;  %767 = vst [vmem:[#allocation2 + $0xb8] sm:$0x1] %v669_v15  ;;  %v1264_v50 = vmul.f32 %v4275_v11, %v1212_v56  ;;  %v1618_v15 = vld [vmem:[#allocation2 + $0x68] sm:$0xfe] }
  0xcc   : > { %5807 = vst [vmem:[#allocation14_spill] sm:$0xff] %v4894_v48  ;;  %v1076_v37 = vrot.slane %v973_v8, 1  ;;  %v1266_v36 = vmul.f32 %v4275_v11, %v5806_v18  ;;  %v5808_v4 = vunpack.c.l.bf16 %v5799_v63  ;;  %v5809_v23 = vunpack.c.l.bf16 %v5801_v30  ;;  %765 = vst [vmem:[#allocation2 + $0xa8] sm:$0xff] %v4894_v48 }
  0xcd   : > { %3348 = vmatprep.mubr.bf16.mxu1 %v3136_v59  ;;  %v1077_v46 = vrot.slane %v975_v33, 1  ;;  %v1081_v16 = vrot.slane %v977_v52, 1  ;;  %v1268_v32 = vmul.f32 %v4275_v11, %v1214_v62  ;;  %v1367_v29 = vrot.slane %v1264_v50, 2  ;;  %v5810_v59 = vld [vmem:[#allocation26_spill] sm:$0xff]  ;;  %v1620_v62 = vld [vmem:[#allocation2 + $0x88] sm:$0x1] }
  0xce   : > { %v2953_v54 = vadd.f32 %v2921_v13, %v5808_v4  ;;  %v2955_v20 = vadd.f32 %v2923_v27, %v5809_v23  ;;  %v1368_v51 = vrot.slane %v1266_v36, 2  ;;  %v1554_v56 = vmul.f32 %v5810_v59, %v5793_v24  ;;  %v1908_v50 = vld [vmem:[#allocation2 + $0x68] sm:$0xfc]  ;;  %v5811_v23 = vld [vmem:[#allocation24_spill] sm:$0xff] }
  0xcf   : > { %v1078_v30 = vsel %vm1062_vm2, %v1076_v37, %v1077_v46  ;;  %v1082_v27 = vsel %vm1062_vm2, %v1077_v46, %v1081_v16  ;;  %v1372_v52 = vrot.slane %v1268_v32, 2  ;;  %v1556_v59 = vmul.f32 %v5793_v24, %v5811_v23 }
  0xd0   : > { %v4907_v8 = vmul.f32 0.5, %v2953_v54  ;;  %v4909_v18 = vmul.f32 0.5, %v2955_v20  ;;  %v3017_v63 = vmul.f32 0.70710677, %v2953_v54  ;;  %v3019_v13 = vmul.f32 0.70710677, %v2955_v20 }
  0xd1   : > { %v1369_v33 = vsel %vm1353_vm3, %v1367_v29, %v1368_v51  ;;  %v1180_v36 = vadd.f32 %v1078_v30, %v857_v2  ;;  %v1182_v4 = vadd.f32 %v1082_v27, %v859_v17  ;;  %v1373_v54 = vsel %vm1353_vm3, %v1368_v51, %v1372_v52  ;;  %v4922_v2 = vld [vmem:[#allocation2 + $0x98] sm:$0xff] }
  0xd2   : > { %3783 = verf.f32 %v3017_v63  ;;  %v1670_v20 = vmul.f32 %v5795_v25, %v1618_v15  ;;  %v1672_v37 = vmul.f32 %v5795_v25, %v5811_v23  ;;  %v1674_v32 = vmul.f32 %v5795_v25, %v1620_v62  ;;  %v2314_v30 = vld [vmem:[#allocation2 + $0x98] sm:$0xfe] }
  0xd3   : > { %3785 = verf.f32 %v3019_v13  ;;  %v1471_v46 = vadd.f32 %v1369_v33, %v1180_v36  ;;  %v1473_v16 = vadd.f32 %v1373_v54, %v1182_v4  ;;  %v1960_v29 = vmul.f32 %v5796_v21, %v1908_v50  ;;  %v2316_v4 = vld [vmem:[#allocation2 + $0xb8] sm:$0x1]  ;;  %v2604_v54 = vld [vmem:[#allocation2 + $0x98] sm:$0xfc] }
  0xd4   : > { %v1772_v17 = vrot.slane %v1670_v20, 1  ;;  %v1773_v63 = vrot.slane %v1672_v37, 1  ;;  %v1962_v13 = vmul.f32 %v5796_v21, %v5811_v23  ;;  %v1964_v51 = vmul.f32 %v5796_v21, %v1910_v31  ;;  %v2606_v23 = vld [vmem:[#allocation2 + $0xb8] sm:$0x3] }
  0xd5   : > { %v1586_v15 = vadd.f32 %v1554_v56, %v1471_v46  ;;  %v1588_v27 = vadd.f32 %v1556_v59, %v1473_v16  ;;  %v1777_v52 = vrot.slane %v1674_v32, 1  ;;  %v2062_v1 = vrot.slane %v1960_v29, 2 }
  0xd6   : > { %v1774_v33 = vsel %vm1062_vm2, %v1772_v17, %v1773_v63  ;;  %v2063_v36 = vrot.slane %v1962_v13, 2  ;;  %v2067_v62 = vrot.slane %v1964_v51, 2  ;;  %v2250_v50 = vmul.f32 %v5797_v19, %v4922_v2 }
  0xd7   : > { %v1778_v20 = vsel %vm1062_vm2, %v1773_v63, %v1777_v52  ;;  %v1876_v37 = vadd.f32 %v1774_v33, %v1586_v15  ;;  %v2252_v31 = vmul.f32 %v5797_v19, %v4894_v48  ;;  %v2366_v56 = vmul.f32 %v4339_v9, %v2314_v30 }
  0xd8   : > { %v1878_v59 = vadd.f32 %v1778_v20, %v1588_v27  ;;  %v2064_v46 = vsel %vm1353_vm3, %v2062_v1, %v2063_v36  ;;  %v2068_v16 = vsel %vm1353_vm3, %v2063_v36, %v2067_v62  ;;  %v2368_v32 = vmul.f32 %v4339_v9, %v4894_v48 }
  0xd9   : > { %v2166_v29 = vadd.f32 %v2064_v46, %v1876_v37  ;;  %v2370_v17 = vmul.f32 %v4339_v9, %v2316_v4  ;;  %v2468_v13 = vrot.slane %v2366_v56, 1  ;;  %v2656_v63 = vmul.f32 %v4360_v28, %v2604_v54 }
  0xda   : > { %v2168_v51 = vadd.f32 %v2068_v16, %v1878_v59  ;;  %v2469_v15 = vrot.slane %v2368_v32, 1  ;;  %v2658_v30 = vmul.f32 %v4360_v28, %v4894_v48  ;;  %v2660_v27 = vmul.f32 %v4360_v28, %v2606_v23 }
  0xdb   : > { %v2282_v1 = vadd.f32 %v2250_v50, %v2166_v29  ;;  %v2473_v33 = vrot.slane %v2370_v17, 1  ;;  %v2758_v36 = vrot.slane %v2656_v63, 2  ;;  %v5747_v62 = vunpack.c.l.bf16 %v4866_v40  ;;  %v807_v17 = vld [vmem:[#allocation2 + $0x40] sm:$0xff]  ;;  %v920_v63 = vld [vmem:[#allocation2 + $0x30] sm:$0xfe] }
  0xdc   : > { %v3784_v52 = vpop.eup %3783  ;;  %v2284_v46 = vadd.f32 %v2252_v31, %v2168_v51  ;;  %v2470_v4 = vsel %vm1062_vm2, %v2468_v13, %v2469_v15  ;;  %v2759_v56 = vrot.slane %v2658_v30, 2  ;;  %v2763_v32 = vrot.slane %v2660_v27, 2  ;;  %v1211_v30 = vld [vmem:[#allocation2 + $0x30] sm:$0xfc] }
  0xdd   : > { %v3786_v20 = vpop.eup %3785  ;;  %v3081_v37 = vadd.f32 1.0, %v3784_v52  ;;  %v2474_v59 = vsel %vm1062_vm2, %v2469_v15, %v2473_v33  ;;  %v2572_v16 = vadd.f32 %v2470_v4, %v2282_v1  ;;  %v5746_v29 = vunpack.c.l.bf16 %v4870_v41  ;;  %v922_v15 = vld [vmem:[#allocation2 + $0x50] sm:$0x1] }
  0xde   : > { %v3083_v54 = vadd.f32 1.0, %v3786_v20  ;;  %v2574_v23 = vadd.f32 %v2474_v59, %v2284_v46  ;;  %v2760_v50 = vsel %vm1353_vm3, %v2758_v36, %v2759_v56  ;;  %v2764_v31 = vsel %vm1353_vm3, %v2759_v56, %v2763_v32  ;;  %v3827_v1 = vld [vmem:[#allocation2 + $0x30] sm:$0xff] }
  0xdf   : > { %v3113_v48 = vmul.f32 %v3081_v37, %v4907_v8  ;;  %v2862_v13 = vadd.f32 %v2760_v50, %v2572_v16  ;;  %v665_v51 = vrot.slane %v5747_v62, 7  ;;  %v667_v8 = vrot.slane %v5746_v29, 7  ;;  %v1213_v4 = vld [vmem:[#allocation2 + $0x50] sm:$0x3] }
  0xe0   : > { %v3115_v52 = vmul.f32 %v3083_v54, %v4909_v18  ;;  %v2864_v27 = vadd.f32 %v2764_v31, %v2574_v23  ;;  %v856_v33 = vmul.f32 %v3827_v1, %v4392_v43  ;;  %v858_v36 = vmul.f32 %v4392_v43, %v807_v17 }
  0xe1   : > { %v2906_v18 = vadd.f32 %v4366_v38, %v2862_v13  ;;  %762 = vst [vmem:[#allocation2 + $0x90] sm:$0xfe] %v665_v51  ;;  %v972_v37 = vmul.f32 %v4239_v61, %v920_v63  ;;  %v974_v46 = vmul.f32 %v4239_v61, %v807_v17  ;;  %v4962_v54 = vsel %vm579_vm1, %v665_v51, %v667_v8 }
  0xe2   : > { %v3135_v20 = vpack.c.bf16 %v3115_v52, %v3113_v48  ;;  %v2908_v56 = vadd.f32 %v4366_v38, %v2864_v27  ;;  %766 = vst [vmem:[#allocation2 + $0xb0] sm:$0x1] %v667_v8  ;;  %v976_v59 = vmul.f32 %v4239_v61, %v922_v15  ;;  %v1263_v16 = vmul.f32 %v4272_v10, %v1211_v30 }
  0xe3   : > { %v5812_v48 = vunpack.c.h.bf16 %v4488_v26  ;;  %764 = vst [vmem:[#allocation2 + $0xa0] sm:$0xff] %v4962_v54  ;;  %v1073_v23 = vrot.slane %v972_v37, 1  ;;  %v1074_v50 = vrot.slane %v974_v46, 1  ;;  %v1265_v63 = vmul.f32 %v4272_v10, %v807_v17 }
  0xe4   : > { %3349 = vmatmul.mubr.bf16.gmra.mrb[4].mxu1 %v3135_v20  ;;  %v5813_v52 = vunpack.c.h.bf16 %v4492_v22  ;;  %v1079_v13 = vrot.slane %v976_v59, 1  ;;  %v1267_v51 = vmul.f32 %v4272_v10, %v1213_v4  ;;  %v1364_v27 = vrot.slane %v1263_v16, 2  ;;  %v1617_v20 = vld [vmem:[#allocation2 + $0x60] sm:$0xfe] }
  0xe5   : > { %v2938_v32 = vadd.f32 %v2906_v18, %v5812_v48  ;;  %v1075_v8 = vsel %vm1062_vm2, %v1073_v23, %v1074_v50  ;;  %v1365_v1 = vrot.slane %v1265_v63, 2  ;;  %v1619_v48 = vld [vmem:[#allocation2 + $0x80] sm:$0x1]  ;;  %v1907_v16 = vld [vmem:[#allocation2 + $0x60] sm:$0xfc]  ;;  %v1555_v23 = vmul.f32 %v5803_v5, %v4663_v7 }
  0xe6   : > { %v2940_v31 = vadd.f32 %v2908_v56, %v5813_v52  ;;  %v1080_v46 = vsel %vm1062_vm2, %v1074_v50, %v1079_v13  ;;  %v1179_v17 = vadd.f32 %v1075_v8, %v856_v33  ;;  %v1370_v4 = vrot.slane %v1267_v51, 2  ;;  %v1909_v63 = vld [vmem:[#allocation2 + $0x80] sm:$0x3] }
  0xe7   : > { %v4973_v15 = vmul.f32 0.5, %v2938_v32  ;;  %v3002_v30 = vmul.f32 0.70710677, %v2938_v32  ;;  %v1181_v56 = vadd.f32 %v1080_v46, %v858_v36  ;;  %v1366_v59 = vsel %vm1353_vm3, %v1364_v27, %v1365_v1 }
  0xe8   : > { %v4976_v18 = vmul.f32 0.5, %v2940_v31  ;;  %v3004_v37 = vmul.f32 0.70710677, %v2940_v31  ;;  %v1470_v52 = vadd.f32 %v1366_v59, %v1179_v17  ;;  %v1553_v32 = vmul.f32 %v4685_v55, %v5803_v5  ;;  %v4989_v13 = vld [vmem:[#allocation2 + $0x90] sm:$0xff] }
  0xe9   : > { %3787 = verf.f32 %v3002_v30  ;;  %v1371_v31 = vsel %vm1353_vm3, %v1365_v1, %v1370_v4  ;;  %v1669_v33 = vmul.f32 %v4285_v34, %v1617_v20  ;;  %v1671_v36 = vmul.f32 %v4285_v34, %v4663_v7  ;;  %5814 = vst [vmem:[#allocation19_spill] sm:$0xff] %v4989_v13  ;;  %v2313_v20 = vld [vmem:[#allocation2 + $0x90] sm:$0xfe]  ;;  %v2315_v29 = vld [vmem:[#allocation2 + $0xb0] sm:$0x1] }
  0xea   : > { %3789 = verf.f32 %v3004_v37  ;;  %v1673_v50 = vmul.f32 %v4285_v34, %v1619_v48  ;;  %v1472_v51 = vadd.f32 %v1371_v31, %v1181_v56  ;;  %v1585_v27 = vadd.f32 %v1553_v32, %v1470_v52  ;;  %v2603_v56 = vld [vmem:[#allocation2 + $0x90] sm:$0xfc] }
  0xeb   : > { %v1959_v30 = vmul.f32 %v4296_v47, %v1907_v16  ;;  %v1961_v55 = vmul.f32 %v4296_v47, %v4663_v7  ;;  %v1769_v8 = vrot.slane %v1669_v33, 1  ;;  %v1770_v37 = vrot.slane %v1671_v36, 1  ;;  %v2605_v36 = vld [vmem:[#allocation2 + $0xb0] sm:$0x3] }
  0xec   : > { %v1775_v46 = vrot.slane %v1673_v50, 1  ;;  %v1963_v1 = vmul.f32 %v4296_v47, %v1909_v63  ;;  %v1587_v17 = vadd.f32 %v1555_v23, %v1472_v51  ;;  %v2249_v48 = vmul.f32 %v4455_v35, %v4989_v13  ;;  %v5012_v13 = vld [vmem:[%s4131_s30 + $0x70] sm:$0xff] }
  0xed   : > { %v2059_v59 = vrot.slane %v1959_v30, 2  ;;  %v2060_v4 = vrot.slane %v1961_v55, 2  ;;  %v1771_v52 = vsel %vm1062_vm2, %v1769_v8, %v1770_v37  ;;  %v2251_v7 = vmul.f32 %v4455_v35, %v4962_v54 }
  0xee   : > { %v1776_v16 = vsel %vm1062_vm2, %v1770_v37, %v1775_v46  ;;  %v2065_v32 = vrot.slane %v1963_v1, 2  ;;  %v1875_v31 = vadd.f32 %v1771_v52, %v1585_v27  ;;  %v2365_v23 = vmul.f32 %v4336_v49, %v2313_v20 }
  0xef   : > { %v1877_v33 = vadd.f32 %v1776_v16, %v1587_v17  ;;  %v2061_v63 = vsel %vm1353_vm3, %v2059_v59, %v2060_v4  ;;  %v2367_v51 = vmul.f32 %v4336_v49, %v4962_v54  ;;  %v2369_v30 = vmul.f32 %v4336_v49, %v2315_v29 }
  0xf0   : > { %v2066_v50 = vsel %vm1353_vm3, %v2060_v4, %v2065_v32  ;;  %v2655_v55 = vmul.f32 %v4354_v0, %v2603_v56  ;;  %v2165_v8 = vadd.f32 %v2061_v63, %v1875_v31  ;;  %v2465_v27 = vrot.slane %v2365_v23, 1  ;;  %v5015_v56 = vld [vmem:[%s4131_s30 + $0x78] sm:$0xff]  ;;  %s418_s30 = sadd.s32 8, %s4043_s22 }
  0xf1   : > { %v2167_v37 = vadd.f32 %v2066_v50, %v1877_v33  ;;  %v2657_v46 = vmul.f32 %v4354_v0, %v4962_v54  ;;  %v2466_v20 = vrot.slane %v2367_v51, 1  ;;  %v2471_v17 = vrot.slane %v2369_v30, 1  ;;  %p5204_p4 = scmp.lt.s32.totalorder %s418_s30, 15 }
  0xf2   : > { %v2659_v59 = vmul.f32 %v4354_v0, %v2605_v36  ;;  %v2755_v4 = vrot.slane %v2655_v55, 2  ;;  %v2281_v32 = vadd.f32 %v2249_v48, %v2165_v8  ;;  %v941_v55 = vld [vmem:[#allocation2 + $0x128] sm:$0xfe]  ;;  %v5752_v8 = vunpack.c.h.bf16 %v5012_v13 }
  0xf3   : > { %v3788_v1 = vpop.eup %3787  ;;  %v2283_v29 = vadd.f32 %v2251_v7, %v2167_v37  ;;  %v2756_v62 = vrot.slane %v2657_v46, 2  ;;  %v2467_v33 = vsel %vm1062_vm2, %v2465_v27, %v2466_v20  ;;  %v2472_v63 = vsel %vm1062_vm2, %v2466_v20, %v2471_v17  ;;  %v943_v46 = vld [vmem:[#allocation2 + $0x148] sm:$0x1]  ;;  %v1232_v17 = vld [vmem:[#allocation2 + $0x128] sm:$0xfc]  ;;  %s5856_s30 = smov (!%p5204_p4, %s418_s30), 15 }
  0xf4   : > { %v3790_v52 = vpop.eup %3789  ;;  %v3066_v16 = vadd.f32 1.0, %v3788_v1  ;;  %v2761_v23 = vrot.slane %v2659_v59, 2  ;;  %v2571_v51 = vadd.f32 %v2467_v33, %v2281_v32  ;;  %v5751_v37 = vunpack.c.h.bf16 %v5015_v56  ;;  %s5858_s30 = smov (!%p5204_p4, %s5856_s30), 15 }
  0xf5   : > { %v3068_v31 = vadd.f32 1.0, %v3790_v52  ;;  %v2573_v36 = vadd.f32 %v2472_v63, %v2283_v29  ;;  %v2757_v30 = vsel %vm1353_vm3, %v2755_v4, %v2756_v62  ;;  %v877_v20 = vmul.f32 %v4740_v14, %v4236_v60  ;;  %v1234_v29 = vld [vmem:[#allocation2 + $0x148] sm:$0x3]  ;;  %s5246_s22 = sshll.u32 %s5858_s30, 2  ;;  %s5574_s30 = scalar_lea.vmem [#allocation3], %s3544_s20 }
  0xf6   : > { %v3098_v50 = vmul.f32 %v3066_v16, %v4973_v15  ;;  %v2762_v7 = vsel %vm1353_vm3, %v2756_v62, %v2761_v23  ;;  %v2861_v27 = vadd.f32 %v2757_v30, %v2571_v51  ;;  %v879_v15 = vmul.f32 %v4753_v58, %v4236_v60  ;;  %s427_s13 = sadd.s32 %s5246_s22, %s4061_s9  ;;  %s3586_s22 = sshll.u32 %s3910_s28, 5 }
  0xf7   : > { %v3100_v48 = vmul.f32 %v3068_v31, %v4976_v18  ;;  %v2863_v1 = vadd.f32 %v2762_v7, %v2573_v36  ;;  %v696_v18 = vrot.slane %v5752_v8, 7  ;;  %v699_v62 = vrot.slane %v5751_v37, 7  ;;  %s3565_s9 = sshll.u32 %s427_s13, 2  ;;  %v945_v37 = vld [vmem:[#allocation2 + $0x158] sm:$0xfe]  ;;  %s3403_s13 = sadd.s32 %s3592_s10, %s3586_s22 }
  0xf8   : > { %v1003_v4 = vmul.f32 %v5790_v42, %v941_v55  ;;  %v2905_v52 = vadd.f32 %v5791_v45, %v2861_v27  ;;  %v1005_v14 = vmul.f32 %v4753_v58, %v5790_v42  ;;  %v1007_v32 = vmul.f32 %v5790_v42, %v943_v46  ;;  %s5285_s12 = scalar_lea.vmem %s5684_s2, %s3565_s9  ;;  %s3587_s9 = sshll.u32 %s3403_s13, 7 }
  0xf9   : > { %v3128_v59 = vpack.c.bf16 %v3100_v48, %v3098_v50  ;;  %v2907_v16 = vadd.f32 %v5791_v45, %v2863_v1  ;;  %v5040_v31 = vsel %vm579_vm1, %v696_v18, %v699_v62  ;;  %793 = vst [vmem:[#allocation2 + $0x188] sm:$0xfe] %v696_v18  ;;  %797 = vst [vmem:[#allocation2 + $0x1a8] sm:$0x1] %v699_v62  ;;  %v5815_v50 = vunpack.c.l.bf16 %v4488_v26  ;;  %s3406_s17 = sshll.u32 %s5574_s30, 4  ;;  %s5621_s29 = scalar_lea.hbm %s5689_s7, %s3587_s9  ;;  %s5623_s17 = int_to_ptr.vmem [resolvable:$true] %s3406_s17 }
  0xfa   : > { %v1126_v33 = vrot.slane %v1003_v4, 1  ;;  %v1294_v63 = vmul.f32 %v4275_v11, %v1232_v17  ;;  %v1296_v23 = vmul.f32 %v4753_v58, %v4275_v11  ;;  %v5816_v36 = vunpack.c.l.bf16 %v4492_v22  ;;  %s3828_s28 = scalar_lea.vmem %s5623_s17, 2048 }
  0xfb   : > { %3316 = vmatprep.mubr.bf16.mxu0 %v3128_v59  ;;  %v2937_v51 = vadd.f32 %v2905_v52, %v5815_v50  ;;  %v1127_v55 = vrot.slane %v1005_v14, 1  ;;  %v1131_v48 = vrot.slane %v1007_v32, 1  ;;  %v1298_v7 = vmul.f32 %v4275_v11, %v1234_v29  ;;  %v1638_v59 = vld [vmem:[#allocation2 + $0x158] sm:$0xfe]  ;;  %p3829_p6 = scmp.ne.s32.totalorder %s5623_s17, %s3828_s28 }
  0xfc   : > { %v2939_v30 = vadd.f32 %v2907_v16, %v5816_v36  ;;  %v1417_v46 = vrot.slane %v1294_v63, 2  ;;  %v1418_v27 = vrot.slane %v1296_v23, 2  ;;  %v1574_v1 = vmul.f32 %v4770_v53, %v5793_v24  ;;  %v1640_v16 = vld [vmem:[#allocation2 + $0x178] sm:$0x1]  ;;  %v1928_v14 = vld [vmem:[#allocation2 + $0x158] sm:$0xfc] }
  0xfd   : > { %v5052_v17 = vmul.f32 0.5, %v2937_v51  ;;  %v3001_v58 = vmul.f32 0.70710677, %v2937_v51  ;;  %v1128_v62 = vsel %vm1062_vm2, %v1126_v33, %v1127_v55  ;;  %v1132_v22 = vsel %vm1062_vm2, %v1127_v55, %v1131_v48  ;;  %v1930_v63 = vld [vmem:[#allocation2 + $0x178] sm:$0x3]  ;;  %p3830_p7 = pnand %p3829_p6, %p4019_p3 }
  0xfe   : > { %v5054_v18 = vmul.f32 0.5, %v2939_v30  ;;  %v3003_v26 = vmul.f32 0.70710677, %v2939_v30  ;;  %v1419_v4 = vsel %vm1353_vm3, %v1417_v46, %v1418_v27  ;;  %v1422_v52 = vrot.slane %v1298_v7, 2 }
  0xff   : > { %3791 = verf.f32 %v3001_v58  ;;  %v1200_v32 = vadd.f32 %v1128_v62, %v877_v20  ;;  %v1202_v29 = vadd.f32 %v1132_v22, %v879_v15  ;;  %v1576_v53 = vmul.f32 %v5793_v24, %v4736_v12  ;;  %p3831_p9 = pneg %p3830_p7 }
 0x100   : > { %3793 = verf.f32 %v3003_v26  ;;  %v1423_v23 = vsel %vm1353_vm3, %v1418_v27, %v1422_v52  ;;  %v1700_v50 = vmul.f32 %v5795_v25, %v1638_v59  ;;  %v1702_v33 = vmul.f32 %v5795_v25, %v4736_v12  ;;  %v5067_v20 = vld [vmem:[#allocation2 + $0x188] sm:$0xff] }
 0x101   : > { %v1491_v51 = vadd.f32 %v1419_v4, %v1200_v32  ;;  %v1493_v36 = vadd.f32 %v1423_v23, %v1202_v29  ;;  %v1704_v30 = vmul.f32 %v5795_v25, %v1640_v16  ;;  %v1990_v55 = vmul.f32 %v5796_v21, %v1928_v14  ;;  %v2334_v27 = vld [vmem:[#allocation2 + $0x188] sm:$0xfe]  ;;  %v2336_v14 = vld [vmem:[#allocation2 + $0x1a8] sm:$0x1] }
 0x102   : > { %v1822_v15 = vrot.slane %v1700_v50, 1  ;;  %v1823_v48 = vrot.slane %v1702_v33, 1  ;;  %v1992_v7 = vmul.f32 %v5796_v21, %v4736_v12  ;;  %v1994_v46 = vmul.f32 %v5796_v21, %v1930_v63  ;;  %v2624_v32 = vld [vmem:[#allocation2 + $0x188] sm:$0xfc] }
 0x103   : > { %v1606_v59 = vadd.f32 %v1574_v1, %v1491_v51  ;;  %v1608_v58 = vadd.f32 %v1576_v53, %v1493_v36  ;;  %v1827_v26 = vrot.slane %v1704_v30, 1  ;;  %v2112_v62 = vrot.slane %v1990_v55, 2  ;;  %v2626_v53 = vld [vmem:[#allocation2 + $0x1a8] sm:$0x3] }
 0x104   : > { %v1824_v22 = vsel %vm1062_vm2, %v1822_v15, %v1823_v48  ;;  %v2113_v4 = vrot.slane %v1992_v7, 2  ;;  %v2117_v52 = vrot.slane %v1994_v46, 2  ;;  %v2270_v16 = vmul.f32 %v5797_v19, %v5067_v20 }
 0x105   : > { %v1828_v29 = vsel %vm1062_vm2, %v1823_v48, %v1827_v26  ;;  %v1896_v23 = vadd.f32 %v1824_v22, %v1606_v59  ;;  %v2272_v12 = vmul.f32 %v5797_v19, %v5040_v31  ;;  %v2396_v1 = vmul.f32 %v4339_v9, %v2334_v27 }
 0x106   : > { %v1898_v63 = vadd.f32 %v1828_v29, %v1608_v58  ;;  %v2114_v50 = vsel %vm1353_vm3, %v2112_v62, %v2113_v4  ;;  %v2118_v33 = vsel %vm1353_vm3, %v2113_v4, %v2117_v52  ;;  %v2398_v51 = vmul.f32 %v4339_v9, %v5040_v31 }
 0x107   : > { %v2186_v36 = vadd.f32 %v2114_v50, %v1896_v23  ;;  %v2400_v30 = vmul.f32 %v4339_v9, %v2336_v14  ;;  %v2518_v55 = vrot.slane %v2396_v1, 1  ;;  %v2686_v15 = vmul.f32 %v4360_v28, %v2624_v32 }
 0x108   : > { %v2188_v48 = vadd.f32 %v2118_v33, %v1898_v63  ;;  %v2519_v7 = vrot.slane %v2398_v51, 1  ;;  %v2688_v46 = vmul.f32 %v4360_v28, %v5040_v31  ;;  %v2690_v27 = vmul.f32 %v4360_v28, %v2626_v53  ;;  %v825_v33 = vld [vmem:[#allocation2 + $0x120] sm:$0xff] }
 0x109   : > { %v3792_v59 = vpop.eup %3791  ;;  %v2302_v58 = vadd.f32 %v2270_v16, %v2186_v36  ;;  %v2523_v26 = vrot.slane %v2400_v30, 1  ;;  %v2808_v62 = vrot.slane %v2686_v15, 2  ;;  %v5750_v22 = vunpack.c.l.bf16 %v5012_v13  ;;  %v940_v30 = vld [vmem:[#allocation2 + $0x120] sm:$0xfe] }
 0x10a   : > { %v3794_v4 = vpop.eup %3793  ;;  %v3065_v52 = vadd.f32 1.0, %v3792_v59  ;;  %v2304_v29 = vadd.f32 %v2272_v12, %v2188_v48  ;;  %v2520_v14 = vsel %vm1062_vm2, %v2518_v55, %v2519_v7  ;;  %v2809_v23 = vrot.slane %v2688_v46, 2  ;;  %v1231_v46 = vld [vmem:[#allocation2 + $0x120] sm:$0xfc] }
 0x10b   : > { %v3067_v32 = vadd.f32 1.0, %v3794_v4  ;;  %v2524_v1 = vsel %vm1062_vm2, %v2519_v7, %v2523_v26  ;;  %v2592_v63 = vadd.f32 %v2520_v14, %v2302_v58  ;;  %v2813_v50 = vrot.slane %v2690_v27, 2  ;;  %v942_v7 = vld [vmem:[#allocation2 + $0x140] sm:$0x1] }
 0x10c   : > { %v3097_v53 = vmul.f32 %v3065_v52, %v5052_v17  ;;  %v2594_v51 = vadd.f32 %v2524_v1, %v2304_v29  ;;  %v2810_v16 = vsel %vm1353_vm3, %v2808_v62, %v2809_v23  ;;  %v5749_v36 = vunpack.c.l.bf16 %v5015_v56  ;;  %v1233_v52 = vld [vmem:[#allocation2 + $0x140] sm:$0x3] }
 0x10d   : > { %v3099_v15 = vmul.f32 %v3067_v32, %v5054_v18  ;;  %v2814_v12 = vsel %vm1353_vm3, %v2809_v23, %v2813_v50  ;;  %v2882_v55 = vadd.f32 %v2810_v16, %v2592_v63  ;;  %v695_v48 = vrot.slane %v5750_v22, 7 }
 0x10e   : > { %v2884_v27 = vadd.f32 %v2814_v12, %v2594_v51  ;;  %v697_v17 = vrot.slane %v5749_v36, 7  ;;  %v876_v59 = vmul.f32 %v4392_v43, %v825_v33  ;;  %v878_v58 = vmul.f32 %v4829_v44, %v4392_v43 }
 0x10f   : > { %v3127_v26 = vpack.c.bf16 %v3099_v15, %v3097_v53  ;;  %v2926_v18 = vadd.f32 %v4366_v38, %v2882_v55  ;;  %792 = vst [vmem:[#allocation2 + $0x180] sm:$0xfe] %v695_v48  ;;  %v1002_v62 = vmul.f32 %v4239_v61, %v940_v30  ;;  %v1004_v4 = vmul.f32 %v4829_v44, %v4239_v61 }
 0x110   : > { %v2928_v29 = vadd.f32 %v4366_v38, %v2884_v27  ;;  %v5109_v14 = vsel %vm579_vm1, %v695_v48, %v697_v17  ;;  %796 = vst [vmem:[#allocation2 + $0x1a0] sm:$0x1] %v697_v17  ;;  %v1006_v23 = vmul.f32 %v4239_v61, %v942_v7  ;;  %v1293_v32 = vmul.f32 %v4272_v10, %v1231_v46  ;;  %v1637_v27 = vld [vmem:[#allocation2 + $0x150] sm:$0xfe] }
 0x111   : > { %3317 = vmatmul.mubr.bf16.gmra.mrb[4].mxu0 %v3127_v26  ;;  %v5817_v1 = vunpack.c.h.bf16 %v4715_v3  ;;  %v1123_v50 = vrot.slane %v1002_v62, 1  ;;  %v1124_v33 = vrot.slane %v1004_v4, 1  ;;  %v1295_v53 = vmul.f32 %v4829_v44, %v4272_v10  ;;  %v1639_v62 = vld [vmem:[#allocation2 + $0x170] sm:$0x1] }
 0x112   : > { %v5818_v51 = vunpack.c.h.bf16 %v4718_v39  ;;  %v1129_v30 = vrot.slane %v1006_v23, 1  ;;  %v1297_v15 = vmul.f32 %v4272_v10, %v1233_v52  ;;  %v1414_v12 = vrot.slane %v1293_v32, 2  ;;  %v1927_v23 = vld [vmem:[#allocation2 + $0x150] sm:$0xfc] }
 0x113   : > { %v2958_v63 = vadd.f32 %v2926_v18, %v5817_v1  ;;  %v1125_v7 = vsel %vm1062_vm2, %v1123_v50, %v1124_v33  ;;  %v1415_v46 = vrot.slane %v1295_v53, 2  ;;  %v1573_v1 = vmul.f32 %v4844_v6, %v5803_v5  ;;  %v1929_v50 = vld [vmem:[#allocation2 + $0x170] sm:$0x3] }
 0x114   : > { %v2960_v16 = vadd.f32 %v2928_v29, %v5818_v51  ;;  %v1130_v18 = vsel %vm1062_vm2, %v1124_v33, %v1129_v30  ;;  %v1199_v44 = vadd.f32 %v1125_v7, %v876_v59  ;;  %v1420_v52 = vrot.slane %v1297_v15, 2 }
 0x115   : > { %v5120_v55 = vmul.f32 0.5, %v2958_v63  ;;  %v3022_v48 = vmul.f32 0.70710677, %v2958_v63  ;;  %v1201_v4 = vadd.f32 %v1130_v18, %v878_v58  ;;  %v1416_v29 = vsel %vm1353_vm3, %v1414_v12, %v1415_v46 }
 0x116   : > { %v5123_v17 = vmul.f32 0.5, %v2960_v16  ;;  %v3024_v26 = vmul.f32 0.70710677, %v2960_v16  ;;  %v1490_v32 = vadd.f32 %v1416_v29, %v1199_v44  ;;  %v1575_v63 = vmul.f32 %v5803_v5, %v4816_v57  ;;  %v5136_v51 = vld [vmem:[#allocation2 + $0x180] sm:$0xff] }
 0x117   : > { %3795 = verf.f32 %v3022_v48  ;;  %v1421_v53 = vsel %vm1353_vm3, %v1415_v46, %v1420_v52  ;;  %v1699_v59 = vmul.f32 %v4285_v34, %v1637_v27  ;;  %v1701_v58 = vmul.f32 %v4285_v34, %v4816_v57  ;;  %v2333_v27 = vld [vmem:[#allocation2 + $0x180] sm:$0xfe]  ;;  %v2335_v29 = vld [vmem:[#allocation2 + $0x1a0] sm:$0x1] }
 0x118   : > { %3797 = verf.f32 %v3024_v26  ;;  %v1703_v33 = vmul.f32 %v4285_v34, %v1639_v62  ;;  %v1492_v16 = vadd.f32 %v1421_v53, %v1201_v4  ;;  %v1605_v30 = vadd.f32 %v1573_v1, %v1490_v32  ;;  %v2623_v4 = vld [vmem:[#allocation2 + $0x180] sm:$0xfc] }
 0x119   : > { %v1989_v15 = vmul.f32 %v4296_v47, %v1927_v23  ;;  %v1991_v6 = vmul.f32 %v4296_v47, %v4816_v57  ;;  %v1819_v12 = vrot.slane %v1699_v59, 1  ;;  %v1820_v48 = vrot.slane %v1701_v58, 1  ;;  %v2625_v59 = vld [vmem:[#allocation2 + $0x1a0] sm:$0x3] }
 0x11a   : > { %v1825_v7 = vrot.slane %v1703_v33, 1  ;;  %v1993_v46 = vmul.f32 %v4296_v47, %v1929_v50  ;;  %v1607_v26 = vadd.f32 %v1575_v63, %v1492_v16  ;;  %v2269_v62 = vmul.f32 %v4455_v35, %v5136_v51 }
 0x11b   : > { %v2109_v18 = vrot.slane %v1989_v15, 2  ;;  %v2110_v44 = vrot.slane %v1991_v6, 2  ;;  %v1821_v52 = vsel %vm1062_vm2, %v1819_v12, %v1820_v48  ;;  %v2271_v57 = vmul.f32 %v4455_v35, %v5109_v14 }
 0x11c   : > { %v1826_v23 = vsel %vm1062_vm2, %v1820_v48, %v1825_v7  ;;  %v2115_v32 = vrot.slane %v1993_v46, 2  ;;  %v1895_v1 = vadd.f32 %v1821_v52, %v1605_v30  ;;  %v2395_v63 = vmul.f32 %v4336_v49, %v2333_v27 }
 0x11d   : > { %v1897_v53 = vadd.f32 %v1826_v23, %v1607_v26  ;;  %v2111_v50 = vsel %vm1353_vm3, %v2109_v18, %v2110_v44  ;;  %v2397_v33 = vmul.f32 %v4336_v49, %v5109_v14  ;;  %v2399_v16 = vmul.f32 %v4336_v49, %v2335_v29  ;;  %v810_v29 = vld [vmem:[#allocation2 + $0x68] sm:$0xff] }
 0x11e   : > { %v2116_v58 = vsel %vm1353_vm3, %v2110_v44, %v2115_v32  ;;  %v2685_v15 = vmul.f32 %v4354_v0, %v2623_v4  ;;  %v2185_v6 = vadd.f32 %v2111_v50, %v1895_v1  ;;  %v2515_v48 = vrot.slane %v2395_v63, 1  ;;  %v812_v50 = vld [vmem:[#allocation2 + $0x78] sm:$0xff]  ;;  %v925_v63 = vld [vmem:[#allocation2 + $0x68] sm:$0xfe] }
 0x11f   : > { %v2187_v12 = vadd.f32 %v2116_v58, %v1897_v53  ;;  %v2687_v30 = vmul.f32 %v4354_v0, %v5109_v14  ;;  %v2516_v46 = vrot.slane %v2397_v33, 1  ;;  %v2521_v26 = vrot.slane %v2399_v16, 1 }
 0x120   : > { %v2689_v27 = vmul.f32 %v4354_v0, %v2625_v59  ;;  %v2805_v18 = vrot.slane %v2685_v15, 2  ;;  %v2301_v23 = vadd.f32 %v2269_v62, %v2185_v6  ;;  %v927_v15 = vld [vmem:[#allocation2 + $0x88] sm:$0x1]  ;;  %v861_v6 = vmul.f32 %v4236_v60, %v810_v29 }
 0x121   : > { %v3796_v7 = vpop.eup %3795  ;;  %v2303_v32 = vadd.f32 %v2271_v57, %v2187_v12  ;;  %v2806_v36 = vrot.slane %v2687_v30, 2  ;;  %v2517_v4 = vsel %vm1062_vm2, %v2515_v48, %v2516_v46  ;;  %v2522_v1 = vsel %vm1062_vm2, %v2516_v46, %v2521_v26  ;;  %v1218_v26 = vld [vmem:[#allocation2 + $0x88] sm:$0x3] }
 0x122   : > { %v3798_v44 = vpop.eup %3797  ;;  %v3086_v52 = vadd.f32 1.0, %v3796_v7  ;;  %v2811_v53 = vrot.slane %v2689_v27, 2  ;;  %v2591_v33 = vadd.f32 %v2517_v4, %v2301_v23  ;;  %v1216_v7 = vld [vmem:[#allocation2 + $0x68] sm:$0xfc]  ;;  %v863_v12 = vmul.f32 %v4236_v60, %v812_v50 }
 0x123   : > { %v3088_v22 = vadd.f32 1.0, %v3798_v44  ;;  %v2593_v16 = vadd.f32 %v2522_v1, %v2303_v32  ;;  %v2807_v59 = vsel %vm1353_vm3, %v2805_v18, %v2806_v36  ;;  %v979_v46 = vmul.f32 %v5790_v42, %v925_v63 }
 0x124   : > { %v3118_v58 = vmul.f32 %v3086_v52, %v5120_v55  ;;  %v2812_v57 = vsel %vm1353_vm3, %v2806_v36, %v2811_v53  ;;  %v2881_v48 = vadd.f32 %v2807_v59, %v2591_v33  ;;  %v981_v55 = vmul.f32 %v5790_v42, %v812_v50  ;;  %v1622_v59 = vld [vmem:[#allocation2 + $0x98] sm:$0xfe] }
 0x125   : > { %v3120_v62 = vmul.f32 %v3088_v22, %v5123_v17  ;;  %v2883_v30 = vadd.f32 %v2812_v57, %v2593_v16  ;;  %v983_v18 = vmul.f32 %v5790_v42, %v927_v15  ;;  %v1270_v44 = vmul.f32 %v4275_v11, %v1216_v7 }
 0x126   : > { %v1272_v22 = vmul.f32 %v4275_v11, %v812_v50  ;;  %v2925_v36 = vadd.f32 %v5791_v45, %v2881_v48  ;;  %v1086_v52 = vrot.slane %v979_v46, 1  ;;  %v1087_v23 = vrot.slane %v981_v55, 1  ;;  %v1624_v48 = vld [vmem:[#allocation2 + $0xb8] sm:$0x1] }
 0x127   : > { %v3138_v27 = vpack.c.bf16 %v3120_v62, %v3118_v58  ;;  %v2927_v17 = vadd.f32 %v5791_v45, %v2883_v30  ;;  %v1091_v32 = vrot.slane %v983_v18, 1  ;;  %v1274_v29 = vmul.f32 %v4275_v11, %v1218_v26  ;;  %v1912_v30 = vld [vmem:[#allocation2 + $0x98] sm:$0xfc]  ;;  %v5821_v18 = vld [vmem:[#allocation14_spill] sm:$0xff] }
 0x128   : > { %v1377_v4 = vrot.slane %v1270_v44, 2  ;;  %v1378_v1 = vrot.slane %v1272_v22, 2  ;;  %v5819_v53 = vunpack.c.l.bf16 %v4715_v3  ;;  %v5820_v58 = vunpack.c.l.bf16 %v4718_v39 }
 0x129   : > { %3356 = vmatprep.mubr.bf16.mxu1 %v3138_v27  ;;  %v1088_v50 = vsel %vm1062_vm2, %v1086_v52, %v1087_v23  ;;  %v1558_v16 = vmul.f32 %v4922_v2, %v5793_v24  ;;  %v1092_v15 = vsel %vm1062_vm2, %v1087_v23, %v1091_v32  ;;  %v1382_v57 = vrot.slane %v1274_v29, 2  ;;  %v5195_v52 = vld [vmem:[#allocation2 + $0xc8] sm:$0xff]  ;;  %v5198_v29 = vld [vmem:[#allocation2 + $0xd8] sm:$0xff] }
 0x12a   : > { %v2957_v63 = vadd.f32 %v2925_v36, %v5819_v53  ;;  %v2959_v33 = vadd.f32 %v2927_v17, %v5820_v58  ;;  %v1184_v7 = vadd.f32 %v1088_v50, %v861_v6  ;;  %v1379_v62 = vsel %vm1353_vm3, %v1377_v4, %v1378_v1  ;;  %v1914_v17 = vld [vmem:[#allocation2 + $0xb8] sm:$0x3]  ;;  %v2318_v58 = vld [vmem:[#allocation2 + $0xc8] sm:$0xfe] }
 0x12b   : > { %v1186_v26 = vadd.f32 %v1092_v15, %v863_v12  ;;  %v1383_v27 = vsel %vm1353_vm3, %v1378_v1, %v1382_v57  ;;  %v1560_v44 = vmul.f32 %v5793_v24, %v5821_v18  ;;  %v1676_v6 = vmul.f32 %v5795_v25, %v1622_v59  ;;  %v2320_v15 = vld [vmem:[#allocation2 + $0xe8] sm:$0x1] }
 0x12c   : > { %v5183_v3 = vmul.f32 0.5, %v2957_v63  ;;  %v5185_v46 = vmul.f32 0.5, %v2959_v33  ;;  %v3021_v39 = vmul.f32 0.70710677, %v2957_v63  ;;  %v3023_v55 = vmul.f32 0.70710677, %v2959_v33 }
 0x12d   : > { %v1475_v2 = vadd.f32 %v1379_v62, %v1184_v7  ;;  %v1678_v22 = vmul.f32 %v5795_v25, %v5821_v18  ;;  %v1680_v36 = vmul.f32 %v5795_v25, %v1624_v48  ;;  %v1477_v12 = vadd.f32 %v1383_v27, %v1186_v26  ;;  %v2608_v7 = vld [vmem:[#allocation2 + $0xc8] sm:$0xfc] }
 0x12e   : > { %3799 = verf.f32 %v3021_v39  ;;  %v1966_v32 = vmul.f32 %v5796_v21, %v1912_v30  ;;  %v1782_v4 = vrot.slane %v1676_v6, 1  ;;  %v1968_v63 = vmul.f32 %v5796_v21, %v5821_v18 }
 0x12f   : > { %3801 = verf.f32 %v3023_v55  ;;  %v1590_v23 = vadd.f32 %v1558_v16, %v1475_v2  ;;  %v1783_v1 = vrot.slane %v1678_v22, 1  ;;  %v1787_v53 = vrot.slane %v1680_v36, 1  ;;  %v2610_v2 = vld [vmem:[#allocation2 + $0xe8] sm:$0x3]  ;;  %v809_v36 = vld [vmem:[#allocation2 + $0x60] sm:$0xff] }
 0x130   : > { %v1592_v33 = vadd.f32 %v1560_v44, %v1477_v12  ;;  %v1970_v50 = vmul.f32 %v5796_v21, %v1914_v17  ;;  %v2072_v16 = vrot.slane %v1966_v32, 2  ;;  %v2254_v59 = vmul.f32 %v5797_v19, %v5195_v52 }
 0x131   : > { %v1784_v62 = vsel %vm1062_vm2, %v1782_v4, %v1783_v1  ;;  %v1788_v57 = vsel %vm1062_vm2, %v1783_v1, %v1787_v53  ;;  %v2073_v48 = vrot.slane %v1968_v63, 2  ;;  %v2256_v30 = vmul.f32 %v5797_v19, %v5198_v29 }
 0x132   : > { %v1880_v39 = vadd.f32 %v1784_v62, %v1590_v23  ;;  %v1882_v55 = vadd.f32 %v1788_v57, %v1592_v33  ;;  %v2077_v26 = vrot.slane %v1970_v50, 2  ;;  %v2372_v27 = vmul.f32 %v4339_v9, %v2318_v58 }
 0x133   : > { %v2074_v18 = vsel %vm1353_vm3, %v2072_v16, %v2073_v48  ;;  %v2374_v44 = vmul.f32 %v4339_v9, %v5198_v29  ;;  %v2376_v6 = vmul.f32 %v4339_v9, %v2320_v15  ;;  %v2662_v22 = vmul.f32 %v4360_v28, %v2608_v7  ;;  %v924_v15 = vld [vmem:[#allocation2 + $0x60] sm:$0xfe] }
 0x134   : > { %v2078_v17 = vsel %vm1353_vm3, %v2073_v48, %v2077_v26  ;;  %v2170_v12 = vadd.f32 %v2074_v18, %v1880_v39  ;;  %v2478_v23 = vrot.slane %v2372_v27, 1  ;;  %v2664_v32 = vmul.f32 %v4360_v28, %v5198_v29  ;;  %v926_v26 = vld [vmem:[#allocation2 + $0x80] sm:$0x1] }
 0x135   : > { %v2172_v4 = vadd.f32 %v2078_v17, %v1882_v55  ;;  %v2479_v1 = vrot.slane %v2374_v44, 1  ;;  %v2483_v53 = vrot.slane %v2376_v6, 1  ;;  %v2666_v63 = vmul.f32 %v4360_v28, %v2610_v2  ;;  %v811_v55 = vld [vmem:[#allocation2 + $0x70] sm:$0xff]  ;;  %v1215_v6 = vld [vmem:[#allocation2 + $0x60] sm:$0xfc] }
 0x136   : > { %v2286_v58 = vadd.f32 %v2254_v59, %v2170_v12  ;;  %v2768_v33 = vrot.slane %v2662_v22, 2  ;;  %v2769_v50 = vrot.slane %v2664_v32, 2  ;;  %v860_v16 = vmul.f32 %v4392_v43, %v809_v36 }
 0x137   : > { %v2288_v62 = vadd.f32 %v2256_v30, %v2172_v4  ;;  %v2480_v57 = vsel %vm1062_vm2, %v2478_v23, %v2479_v1  ;;  %v2484_v48 = vsel %vm1062_vm2, %v2479_v1, %v2483_v53  ;;  %v2773_v39 = vrot.slane %v2666_v63, 2  ;;  %v1217_v1 = vld [vmem:[#allocation2 + $0x80] sm:$0x3] }
 0x138   : > { %v3800_v7 = vpop.eup %3799  ;;  %v2576_v2 = vadd.f32 %v2480_v57, %v2286_v58  ;;  %v2770_v59 = vsel %vm1353_vm3, %v2768_v33, %v2769_v50  ;;  %v862_v44 = vmul.f32 %v4392_v43, %v811_v55  ;;  %v978_v17 = vmul.f32 %v4239_v61, %v924_v15 }
 0x139   : > { %v3802_v27 = vpop.eup %3801  ;;  %v3085_v18 = vadd.f32 1.0, %v3800_v7  ;;  %v2578_v36 = vadd.f32 %v2484_v48, %v2288_v62  ;;  %v2774_v30 = vsel %vm1353_vm3, %v2769_v50, %v2773_v39  ;;  %v980_v32 = vmul.f32 %v4239_v61, %v811_v55 }
 0x13a   : > { %v3087_v22 = vadd.f32 1.0, %v3802_v27  ;;  %v2866_v23 = vadd.f32 %v2770_v59, %v2576_v2  ;;  %v982_v4 = vmul.f32 %v4239_v61, %v926_v26  ;;  %v1083_v58 = vrot.slane %v978_v17, 1 }
 0x13b   : > { %v3117_v12 = vmul.f32 %v3085_v18, %v5183_v3  ;;  %v2868_v63 = vadd.f32 %v2774_v30, %v2578_v36  ;;  %v1269_v33 = vmul.f32 %v4272_v10, %v1215_v6  ;;  %v1084_v15 = vrot.slane %v980_v32, 1  ;;  %v1621_v30 = vld [vmem:[#allocation2 + $0x90] sm:$0xfe]  ;;  %v5825_v32 = vld [vmem:[#allocation19_spill] sm:$0xff] }
 0x13c   : > { %v3119_v53 = vmul.f32 %v3087_v22, %v5185_v46  ;;  %v2910_v50 = vadd.f32 %v4366_v38, %v2866_v23  ;;  %v1089_v3 = vrot.slane %v982_v4, 1  ;;  %v1271_v7 = vmul.f32 %v4272_v10, %v811_v55 }
 0x13d   : > { %v2912_v57 = vadd.f32 %v4366_v38, %v2868_v63  ;;  %v1273_v48 = vmul.f32 %v4272_v10, %v1217_v1  ;;  %v1374_v46 = vrot.slane %v1269_v33, 2  ;;  %v5823_v39 = vunpack.c.h.bf16 %v4866_v40  ;;  %v1623_v1 = vld [vmem:[#allocation2 + $0xb0] sm:$0x1] }
 0x13e   : > { %v3137_v62 = vpack.c.bf16 %v3119_v53, %v3117_v12  ;;  %v1085_v27 = vsel %vm1062_vm2, %v1083_v58, %v1084_v15  ;;  %v1090_v18 = vsel %vm1062_vm2, %v1084_v15, %v1089_v3  ;;  %v1375_v2 = vrot.slane %v1271_v7, 2  ;;  %v1913_v3 = vld [vmem:[#allocation2 + $0xb0] sm:$0x3]  ;;  %v5272_v7 = vld [vmem:[#allocation2 + $0xc0] sm:$0xff] }
 0x13f   : > { %v2942_v26 = vadd.f32 %v2910_v50, %v5823_v39  ;;  %v5824_v59 = vunpack.c.h.bf16 %v4870_v41  ;;  %v1183_v6 = vadd.f32 %v1085_v27, %v860_v16  ;;  %v1185_v22 = vadd.f32 %v1090_v18, %v862_v44  ;;  %v1911_v16 = vld [vmem:[#allocation2 + $0x90] sm:$0xfc]  ;;  %v2317_v39 = vld [vmem:[#allocation2 + $0xc0] sm:$0xfe] }
 0x140   : > { %3357 = vmatmul.mubr.bf16.gmra.mrb[8].mxu1 %v3137_v62  ;;  %v1380_v36 = vrot.slane %v1273_v48, 2  ;;  %v1376_v23 = vsel %vm1353_vm3, %v1374_v46, %v1375_v2  ;;  %v1557_v4 = vmul.f32 %v5825_v32, %v5803_v5  ;;  %v1559_v50 = vmul.f32 %v5803_v5, %v4962_v54  ;;  %v5277_v46 = vld [vmem:[#allocation2 + $0xd0] sm:$0xff]  ;;  %v2607_v32 = vld [vmem:[#allocation2 + $0xc0] sm:$0xfc] }
 0x141   : > { %v2944_v55 = vadd.f32 %v2912_v57, %v5824_v59  ;;  %v5260_v17 = vmul.f32 0.5, %v2942_v26  ;;  %v3006_v12 = vmul.f32 0.70710677, %v2942_v26  ;;  %v1474_v33 = vadd.f32 %v1376_v23, %v1183_v6 }
 0x142   : > { %v1381_v58 = vsel %vm1353_vm3, %v1375_v2, %v1380_v36  ;;  %v1675_v15 = vmul.f32 %v4285_v34, %v1621_v30  ;;  %v1677_v57 = vmul.f32 %v4285_v34, %v4962_v54  ;;  %v1679_v48 = vmul.f32 %v4285_v34, %v1623_v1  ;;  %v2319_v36 = vld [vmem:[#allocation2 + $0xe0] sm:$0x1] }
 0x143   : > { %v5266_v53 = vmul.f32 0.5, %v2944_v55  ;;  %v3008_v63 = vmul.f32 0.70710677, %v2944_v55  ;;  %3803 = verf.f32 %v3006_v12  ;;  %v1476_v44 = vadd.f32 %v1381_v58, %v1185_v22 }
 0x144   : > { %v1589_v62 = vadd.f32 %v1557_v4, %v1474_v33  ;;  %v1779_v27 = vrot.slane %v1675_v15, 1  ;;  %v1965_v18 = vmul.f32 %v4296_v47, %v1911_v16  ;;  %v1967_v2 = vmul.f32 %v4296_v47, %v4962_v54  ;;  %v2609_v15 = vld [vmem:[#allocation2 + $0xe0] sm:$0x3] }
 0x145   : > { %3805 = verf.f32 %v3008_v63  ;;  %v1591_v26 = vadd.f32 %v1559_v50, %v1476_v44  ;;  %v1780_v59 = vrot.slane %v1677_v57, 1  ;;  %v1785_v55 = vrot.slane %v1679_v48, 1 }
 0x146   : > { %v1969_v6 = vmul.f32 %v4296_v47, %v1913_v3  ;;  %v2253_v22 = vmul.f32 %v4455_v35, %v5272_v7  ;;  %v2069_v30 = vrot.slane %v1965_v18, 2  ;;  %v2070_v12 = vrot.slane %v1967_v2, 2  ;;  %v5304_v3 = vld [vmem:[%s5285_s12] sm:$0xff] }
 0x147   : > { %v2255_v54 = vmul.f32 %v4455_v35, %v5277_v46  ;;  %v2371_v23 = vmul.f32 %v4336_v49, %v2317_v39  ;;  %v1781_v4 = vsel %vm1062_vm2, %v1779_v27, %v1780_v59  ;;  %v1786_v1 = vsel %vm1062_vm2, %v1780_v59, %v1785_v55 }
 0x148   : > { %v2075_v63 = vrot.slane %v1969_v6, 2  ;;  %v2373_v58 = vmul.f32 %v4336_v49, %v5277_v46  ;;  %v1879_v33 = vadd.f32 %v1781_v4, %v1589_v62  ;;  %v1881_v16 = vadd.f32 %v1786_v1, %v1591_v26  ;;  %v5312_v26 = vld [vmem:[%s5285_s12 + $0x8] sm:$0xff] }
 0x149   : > { %v2071_v44 = vsel %vm1353_vm3, %v2069_v30, %v2070_v12  ;;  %v2375_v50 = vmul.f32 %v4336_v49, %v2319_v36  ;;  %v2475_v48 = vrot.slane %v2371_v23, 1  ;;  %v2661_v27 = vmul.f32 %v4354_v0, %v2607_v32 }
 0x14a   : > { %v2076_v57 = vsel %vm1353_vm3, %v2070_v12, %v2075_v63  ;;  %v2476_v39 = vrot.slane %v2373_v58, 1  ;;  %v2169_v18 = vadd.f32 %v2071_v44, %v1879_v33  ;;  %v2663_v62 = vmul.f32 %v4354_v0, %v5277_v46 }
 0x14b   : > { %v2171_v2 = vadd.f32 %v2076_v57, %v1881_v16  ;;  %v2481_v59 = vrot.slane %v2375_v50, 1  ;;  %v2665_v6 = vmul.f32 %v4354_v0, %v2609_v15  ;;  %v2765_v36 = vrot.slane %v2661_v27, 2  ;;  %v830_v50 = vld [vmem:[#allocation2 + $0x158] sm:$0xff] }
 0x14c   : > { %v2477_v55 = vsel %vm1062_vm2, %v2475_v48, %v2476_v39  ;;  %v504_v30 = vunpack.c.h.bf16 %v5304_v3  ;;  %v2285_v23 = vadd.f32 %v2253_v22, %v2169_v18  ;;  %v2766_v1 = vrot.slane %v2663_v62, 2 }
 0x14d   : > { %v3804_v12 = vpop.eup %3803  ;;  %v2287_v4 = vadd.f32 %v2255_v54, %v2171_v2  ;;  %v2482_v32 = vsel %vm1062_vm2, %v2476_v39, %v2481_v59  ;;  %v2771_v33 = vrot.slane %v2665_v6, 2  ;;  %v506_v16 = vunpack.c.h.bf16 %v5312_v26  ;;  %v832_v2 = vld [vmem:[#allocation2 + $0x168] sm:$0xff] }
 0x14e   : > { %v3070_v58 = vadd.f32 1.0, %v3804_v12  ;;  %v5319_v44 = vstv %s489_s11  ;;  %v2575_v48 = vadd.f32 %v2477_v55, %v2285_v23  ;;  %v2767_v27 = vsel %vm1353_vm3, %v2765_v36, %v2766_v1  ;;  %v947_v55 = vld [vmem:[#allocation2 + $0x178] sm:$0x1]  ;;  %v1236_v23 = vld [vmem:[#allocation2 + $0x158] sm:$0xfc]  ;;  %s3925_s11 = smov [#allocation3]  }
 0x14f   : > { %v3806_v63 = vpop.eup %3805  ;;  %v2577_v15 = vadd.f32 %v2482_v32, %v2287_v4  ;;  %v2772_v54 = vsel %vm1353_vm3, %v2766_v1, %v2771_v33  ;;  %v509_v39 = vmul.f32 %v5319_v44, %v504_v30  ;;  %v511_v18 = vmul.f32 %v5319_v44, %v506_v16  ;;  %s3832_s20 = sshll.u32 %s3925_s11, 4  ;;  %s3833_s20 = int_to_ptr.vmem [resolvable:$false] %s3832_s20 }
 0x150   : > { %v3072_v57 = vadd.f32 1.0, %v3806_v63  ;;  %v3102_v22 = vmul.f32 %v3070_v58, %v5260_v17  ;;  %v2865_v62 = vadd.f32 %v2767_v27, %v2575_v48  ;;  %v881_v12 = vmul.f32 %v4236_v60, %v830_v50  ;;  %s3834_s21 = scalar_lea.vmem %s3833_s20, 4096  ;;  %p3835_p10 = scmp.lt.s32.totalorder %s5623_s17, %s3833_s20 }
 0x151   : > { %v2867_v6 = vadd.f32 %v2772_v54, %v2577_v15  ;;  %v603_v4 = vrot.slane %v509_v39, 7  ;;  %v606_v36 = vrot.slane %v511_v18, 7  ;;  %v883_v32 = vmul.f32 %v4236_v60, %v832_v2  ;;  %p3836_p11 = scmp.lt.s32.totalorder %s3834_s21, %s3828_s28 }
 0x152   : > { %v3104_v59 = vmul.f32 %v3072_v57, %v5266_v53  ;;  %v1009_v17 = vmul.f32 %v5790_v42, %v945_v37  ;;  %v2909_v30 = vadd.f32 %v5791_v45, %v2865_v62  ;;  %v1011_v58 = vmul.f32 %v5790_v42, %v832_v2  ;;  %v1238_v53 = vld [vmem:[#allocation2 + $0x178] sm:$0x3] }
 0x153   : > { %v2911_v63 = vadd.f32 %v5791_v45, %v2867_v6  ;;  %v5334_v33 = vsel %vm579_vm1, %v603_v4, %v606_v36  ;;  %616 = vst [vmem:[#allocation2 + $0x1b8] sm:$0xfe] %v603_v4  ;;  %620 = vst [vmem:[#allocation2 + $0x1d8] sm:$0x1] %v606_v36  ;;  %v1013_v16 = vmul.f32 %v5790_v42, %v947_v55  ;;  %v5826_v37 = vunpack.c.l.bf16 %v4866_v40  ;;  %v1642_v6 = vld [vmem:[#allocation2 + $0x188] sm:$0xfe]  ;;  %p3837_p12 = por %p3836_p11, %p3835_p10 }
 0x154   : > { %v3130_v1 = vpack.c.bf16 %v3104_v59, %v3102_v22  ;;  %v1136_v50 = vrot.slane %v1009_v17, 1  ;;  %v1300_v57 = vmul.f32 %v4275_v11, %v1236_v23  ;;  %v5827_v15 = vunpack.c.l.bf16 %v4870_v41 }
 0x155   : > { %v2941_v48 = vadd.f32 %v2909_v30, %v5826_v37  ;;  %v1137_v22 = vrot.slane %v1011_v58, 1  ;;  %v1302_v54 = vmul.f32 %v4275_v11, %v832_v2  ;;  %v1141_v39 = vrot.slane %v1013_v16, 1  ;;  %v1932_v58 = vld [vmem:[#allocation2 + $0x188] sm:$0xfc]  ;;  %v5354_v16 = vpop.f32.mrb[0].mxu1  ;;  %p3838_p13 = pnand %p3837_p12, %p3831_p9 }
 0x156   : > { %3324 = vmatprep.mubr.bf16.mxu0 %v3130_v1  ;;  %v2943_v27 = vadd.f32 %v2911_v63, %v5827_v15  ;;  %v1304_v18 = vmul.f32 %v4275_v11, %v1238_v53  ;;  %v1427_v59 = vrot.slane %v1300_v57, 2  ;;  %v1578_v62 = vmul.f32 %v5067_v20, %v5793_v24  ;;  %v1644_v1 = vld [vmem:[#allocation2 + $0x1a8] sm:$0x1] }
 0x157   : > { %v5346_v55 = vmul.f32 0.5, %v2941_v48  ;;  %v3005_v40 = vmul.f32 0.70710677, %v2941_v48  ;;  %v1138_v41 = vsel %vm1062_vm2, %v1136_v50, %v1137_v22  ;;  %v1142_v36 = vsel %vm1062_vm2, %v1137_v22, %v1141_v39  ;;  %v1934_v53 = vld [vmem:[#allocation2 + $0x1a8] sm:$0x3]  ;;  %v5359_v48 = vpop.f32.mrb[1].mxu1 }
 0x158   : > { %v5348_v23 = vmul.f32 0.5, %v2943_v27  ;;  %v3007_v4 = vmul.f32 0.70710677, %v2943_v27  ;;  %v1428_v17 = vrot.slane %v1302_v54, 2  ;;  %v1432_v2 = vrot.slane %v1304_v18, 2  ;;  %v5364_v54 = vpop.f32.mrb[2].mxu1 }
 0x159   : > { %3807 = verf.f32 %v3005_v40  ;;  %v1204_v30 = vadd.f32 %v1138_v41, %v881_v12  ;;  %v1206_v63 = vadd.f32 %v1142_v36, %v883_v32  ;;  %v1580_v20 = vmul.f32 %v5793_v24, %v5040_v31 }
 0x15a   : > { %3809 = verf.f32 %v3007_v4  ;;  %v1429_v57 = vsel %vm1353_vm3, %v1427_v59, %v1428_v17  ;;  %v1433_v50 = vsel %vm1353_vm3, %v1428_v17, %v1432_v2  ;;  %v1706_v37 = vmul.f32 %v5795_v25, %v1642_v6  ;;  %v2223_v22 = vld [vmem:[#allocation2 + $0x1b8] sm:$0xff]  ;;  %v5370_v4 = vpop.f32.mrb[3].mxu1 }
 0x15b   : > { %v1495_v15 = vadd.f32 %v1429_v57, %v1204_v30  ;;  %v1497_v27 = vadd.f32 %v1433_v50, %v1206_v63  ;;  %v1708_v12 = vmul.f32 %v5795_v25, %v5040_v31  ;;  %v1710_v32 = vmul.f32 %v5795_v25, %v1644_v1  ;;  %v2338_v40 = vld [vmem:[#allocation2 + $0x1b8] sm:$0xfe]  ;;  %5828 = vst [vmem:[#allocation15_spill] sm:$0xff] %v5370_v4  ;;  %v2340_v30 = vld [vmem:[#allocation2 + $0x1d8] sm:$0x1] }
 0x15c   : > { %v1832_v39 = vrot.slane %v1706_v37, 1  ;;  %v1996_v18 = vmul.f32 %v5796_v21, %v1932_v58  ;;  %v1998_v59 = vmul.f32 %v5796_v21, %v5040_v31  ;;  %v2000_v6 = vmul.f32 %v5796_v21, %v1934_v53  ;;  %v2628_v37 = vld [vmem:[#allocation2 + $0x1b8] sm:$0xfc] }
 0x15d   : > { %v1610_v41 = vadd.f32 %v1578_v62, %v1495_v15  ;;  %v1612_v36 = vadd.f32 %v1580_v20, %v1497_v27  ;;  %v1833_v17 = vrot.slane %v1708_v12, 1  ;;  %v1837_v2 = vrot.slane %v1710_v32, 1  ;;  %v2630_v62 = vld [vmem:[#allocation2 + $0x1d8] sm:$0x3] }
 0x15e   : > { %v2122_v1 = vrot.slane %v1996_v18, 2  ;;  %v2123_v63 = vrot.slane %v1998_v59, 2  ;;  %v2127_v57 = vrot.slane %v2000_v6, 2  ;;  %v2274_v50 = vmul.f32 %v5797_v19, %v2223_v22 }
 0x15f   : > { %v1834_v58 = vsel %vm1062_vm2, %v1832_v39, %v1833_v17  ;;  %v1838_v31 = vsel %vm1062_vm2, %v1833_v17, %v1837_v2  ;;  %v2276_v53 = vmul.f32 %v5797_v19, %v5334_v33  ;;  %v2402_v8 = vmul.f32 %v4339_v9, %v2338_v40 }
 0x160   : > { %v1900_v20 = vadd.f32 %v1834_v58, %v1610_v41  ;;  %v1902_v15 = vadd.f32 %v1838_v31, %v1612_v36  ;;  %v2124_v27 = vsel %vm1353_vm3, %v2122_v1, %v2123_v63  ;;  %v2128_v12 = vsel %vm1353_vm3, %v2123_v63, %v2127_v57 }
 0x161   : > { %v2404_v32 = vmul.f32 %v4339_v9, %v5334_v33  ;;  %v2406_v22 = vmul.f32 %v4339_v9, %v2340_v30  ;;  %v2528_v39 = vrot.slane %v2402_v8, 1  ;;  %v2692_v18 = vmul.f32 %v4360_v28, %v2628_v37 }
 0x162   : > { %v2190_v59 = vadd.f32 %v2124_v27, %v1900_v20  ;;  %v2192_v6 = vadd.f32 %v2128_v12, %v1902_v15  ;;  %v2694_v40 = vmul.f32 %v4360_v28, %v5334_v33  ;;  %v2696_v41 = vmul.f32 %v4360_v28, %v2630_v62  ;;  %v829_v33 = vld [vmem:[#allocation2 + $0x150] sm:$0xff] }
 0x163   : > { %v3808_v36 = vpop.eup %3807  ;;  %v2529_v17 = vrot.slane %v2404_v32, 1  ;;  %v2533_v2 = vrot.slane %v2406_v22, 1  ;;  %v2818_v1 = vrot.slane %v2692_v18, 2  ;;  %v503_v63 = vunpack.c.l.bf16 %v5304_v3  ;;  %v944_v22 = vld [vmem:[#allocation2 + $0x150] sm:$0xfe] }
 0x164   : > { %v3810_v57 = vpop.eup %3809  ;;  %v3069_v58 = vadd.f32 1.0, %v3808_v36  ;;  %v2306_v31 = vadd.f32 %v2274_v50, %v2190_v59  ;;  %v2308_v30 = vadd.f32 %v2276_v53, %v2192_v6  ;;  %v2819_v8 = vrot.slane %v2694_v40, 2  ;;  %v946_v59 = vld [vmem:[#allocation2 + $0x170] sm:$0x1]  ;;  %v1235_v36 = vld [vmem:[#allocation2 + $0x150] sm:$0xfc] }
 0x165   : > { %v3071_v4 = vadd.f32 1.0, %v3810_v57  ;;  %v2530_v37 = vsel %vm1062_vm2, %v2528_v39, %v2529_v17  ;;  %v2534_v20 = vsel %vm1062_vm2, %v2529_v17, %v2533_v2  ;;  %v2823_v15 = vrot.slane %v2696_v41, 2  ;;  %v831_v39 = vld [vmem:[#allocation2 + $0x160] sm:$0xff] }
 0x166   : > { %v3101_v62 = vmul.f32 %v3069_v58, %v5346_v55  ;;  %v2596_v27 = vadd.f32 %v2530_v37, %v2306_v31  ;;  %v2598_v12 = vadd.f32 %v2534_v20, %v2308_v30  ;;  %v2820_v32 = vsel %vm1353_vm3, %v2818_v1, %v2819_v8  ;;  %v1237_v58 = vld [vmem:[#allocation2 + $0x170] sm:$0x3] }
 0x167   : > { %v3103_v3 = vmul.f32 %v3071_v4, %v5348_v23  ;;  %v2824_v50 = vsel %vm1353_vm3, %v2819_v8, %v2823_v15  ;;  %v505_v53 = vunpack.c.l.bf16 %v5312_v26  ;;  %v508_v18 = vmul.f32 %v5319_v44, %v503_v63 }
 0x168   : > { %v2886_v6 = vadd.f32 %v2820_v32, %v2596_v27  ;;  %v2888_v40 = vadd.f32 %v2824_v50, %v2598_v12  ;;  %v880_v41 = vmul.f32 %v4392_v43, %v829_v33  ;;  %v882_v55 = vmul.f32 %v4392_v43, %v831_v39  ;;  %v1641_v50 = vld [vmem:[#allocation2 + $0x180] sm:$0xfe] }
 0x169   : > { %v3129_v17 = vpack.c.bf16 %v3103_v3, %v3101_v62  ;;  %v510_v2 = vmul.f32 %v5319_v44, %v505_v53  ;;  %v602_v1 = vrot.slane %v508_v18, 7  ;;  %v1008_v23 = vmul.f32 %v4239_v61, %v944_v22 }
 0x16a   : > { %v2930_v4 = vadd.f32 %v4366_v38, %v2886_v6  ;;  %v2932_v26 = vadd.f32 %v4366_v38, %v2888_v40  ;;  %v1010_v63 = vmul.f32 %v4239_v61, %v831_v39  ;;  %v1012_v57 = vmul.f32 %v4239_v61, %v946_v59 }
 0x16b   : > { %3325 = vmatmul.mubr.bf16.gmra.mrb[8].mxu0 %v3129_v17  ;;  %v604_v31 = vrot.slane %v510_v2, 7  ;;  %615 = vst [vmem:[#allocation2 + $0x1b0] sm:$0xfe] %v602_v1  ;;  %v1133_v30 = vrot.slane %v1008_v23, 1  ;;  %v1299_v8 = vmul.f32 %v4272_v10, %v1235_v36  ;;  %v1301_v44 = vmul.f32 %v4272_v10, %v831_v39  ;;  %v1643_v2 = vld [vmem:[#allocation2 + $0x1a0] sm:$0x1] }
 0x16c   : > { %v5829_v37 = vunpack.c.h.bf16 %v5012_v13  ;;  %v5830_v15 = vunpack.c.h.bf16 %v5015_v56  ;;  %v1134_v62 = vrot.slane %v1010_v63, 1  ;;  %v1139_v27 = vrot.slane %v1012_v57, 1  ;;  %v1933_v63 = vld [vmem:[#allocation2 + $0x1a0] sm:$0x3] }
 0x16d   : > { %v605_v12 = vsel %vm579_vm1, %v602_v1, %v604_v31  ;;  %619 = vst [vmem:[#allocation2 + $0x1d0] sm:$0x1] %v604_v31  ;;  %v1303_v32 = vmul.f32 %v4272_v10, %v1237_v58  ;;  %v1424_v22 = vrot.slane %v1299_v8, 2  ;;  %v1425_v3 = vrot.slane %v1301_v44, 2 }
 0x16e   : > { %v2962_v20 = vadd.f32 %v2930_v4, %v5829_v37  ;;  %v2964_v33 = vadd.f32 %v2932_v26, %v5830_v15  ;;  %v1135_v6 = vsel %vm1062_vm2, %v1133_v30, %v1134_v62  ;;  %v1140_v40 = vsel %vm1062_vm2, %v1134_v62, %v1139_v27  ;;  %v1931_v26 = vld [vmem:[#allocation2 + $0x180] sm:$0xfc] }
 0x16f   : > { %v1426_v36 = vsel %vm1353_vm3, %v1424_v22, %v1425_v3  ;;  %v1430_v17 = vrot.slane %v1303_v32, 2  ;;  %v1203_v1 = vadd.f32 %v1135_v6, %v880_v41  ;;  %v1205_v23 = vadd.f32 %v1140_v40, %v882_v55 }
 0x170   : > { %v5412_v53 = vmul.f32 0.5, %v2962_v20  ;;  %v5414_v18 = vmul.f32 0.5, %v2964_v33  ;;  %v3026_v39 = vmul.f32 0.70710677, %v2962_v20  ;;  %v3028_v59 = vmul.f32 0.70710677, %v2964_v33 }
 0x171   : > { %v1577_v4 = vmul.f32 %v5136_v51, %v5803_v5  ;;  %v1431_v57 = vsel %vm1353_vm3, %v1425_v3, %v1430_v17  ;;  %v1579_v58 = vmul.f32 %v5803_v5, %v5109_v14  ;;  %v1705_v31 = vmul.f32 %v4285_v34, %v1641_v50 }
 0x172   : > { %3811 = verf.f32 %v3026_v39  ;;  %v1494_v30 = vadd.f32 %v1426_v36, %v1203_v1  ;;  %v1496_v8 = vadd.f32 %v1431_v57, %v1205_v23  ;;  %v1707_v44 = vmul.f32 %v4285_v34, %v5109_v14  ;;  %v2222_v55 = vld [vmem:[#allocation2 + $0x1b0] sm:$0xff]  ;;  %v814_v57 = vld [vmem:[#allocation2 + $0x98] sm:$0xff] }
 0x173   : > { %3813 = verf.f32 %v3028_v59  ;;  %v1709_v41 = vmul.f32 %v4285_v34, %v1643_v2  ;;  %v1829_v37 = vrot.slane %v1705_v31, 1  ;;  %v1995_v51 = vmul.f32 %v4296_v47, %v1931_v26  ;;  %v2337_v33 = vld [vmem:[#allocation2 + $0x1b0] sm:$0xfe] }
 0x174   : > { %v1997_v20 = vmul.f32 %v4296_v47, %v5109_v14  ;;  %v1999_v15 = vmul.f32 %v4296_v47, %v1933_v63  ;;  %v1609_v62 = vadd.f32 %v1577_v4, %v1494_v30  ;;  %v1611_v27 = vadd.f32 %v1579_v58, %v1496_v8  ;;  %v2627_v3 = vld [vmem:[#allocation2 + $0x1b0] sm:$0xfc]  ;;  %v2339_v40 = vld [vmem:[#allocation2 + $0x1d0] sm:$0x1] }
 0x175   : > { %v1830_v32 = vrot.slane %v1707_v44, 1  ;;  %v1835_v22 = vrot.slane %v1709_v41, 1  ;;  %v2119_v50 = vrot.slane %v1995_v51, 2  ;;  %v2273_v6 = vmul.f32 %v4455_v35, %v2222_v55  ;;  %v2629_v1 = vld [vmem:[#allocation2 + $0x1d0] sm:$0x3] }
 0x176   : > { %v2120_v39 = vrot.slane %v1997_v20, 2  ;;  %v2125_v59 = vrot.slane %v1999_v15, 2  ;;  %v2275_v14 = vmul.f32 %v4455_v35, %v605_v12  ;;  %v2401_v2 = vmul.f32 %v4336_v49, %v2337_v33 }
 0x177   : > { %v1831_v36 = vsel %vm1062_vm2, %v1829_v37, %v1830_v32  ;;  %v1836_v17 = vsel %vm1062_vm2, %v1830_v32, %v1835_v22  ;;  %v2403_v58 = vmul.f32 %v4336_v49, %v605_v12  ;;  %v2405_v31 = vmul.f32 %v4336_v49, %v2339_v40 }
 0x178   : > { %v1899_v23 = vadd.f32 %v1831_v36, %v1609_v62  ;;  %v1901_v4 = vadd.f32 %v1836_v17, %v1611_v27  ;;  %v2121_v26 = vsel %vm1353_vm3, %v2119_v50, %v2120_v39  ;;  %v2126_v63 = vsel %vm1353_vm3, %v2120_v39, %v2125_v59  ;;  %v929_v59 = vld [vmem:[#allocation2 + $0x98] sm:$0xfe]  ;;  %v816_v17 = vld [vmem:[#allocation2 + $0xa8] sm:$0xff] }
 0x179   : > { %v2525_v30 = vrot.slane %v2401_v2, 1  ;;  %v2691_v8 = vmul.f32 %v4354_v0, %v2627_v3  ;;  %v2693_v55 = vmul.f32 %v4354_v0, %v605_v12  ;;  %v2695_v37 = vmul.f32 %v4354_v0, %v2629_v1  ;;  %v931_v2 = vld [vmem:[#allocation2 + $0xb8] sm:$0x1] }
 0x17a   : > { %v2189_v44 = vadd.f32 %v2121_v26, %v1899_v23  ;;  %v2191_v41 = vadd.f32 %v2126_v63, %v1901_v4  ;;  %v2526_v20 = vrot.slane %v2403_v58, 1  ;;  %v2531_v15 = vrot.slane %v2405_v31, 1  ;;  %v1220_v63 = vld [vmem:[#allocation2 + $0x98] sm:$0xfc] }
 0x17b   : > { %v2815_v33 = vrot.slane %v2691_v8, 2  ;;  %v865_v62 = vmul.f32 %v4236_v60, %v814_v57  ;;  %v2816_v39 = vrot.slane %v2693_v55, 2  ;;  %v2821_v12 = vrot.slane %v2695_v37, 2 }
 0x17c   : > { %v3812_v51 = vpop.eup %3811  ;;  %v2305_v22 = vadd.f32 %v2273_v6, %v2189_v44  ;;  %v2307_v50 = vadd.f32 %v2275_v14, %v2191_v41  ;;  %v2527_v3 = vsel %vm1062_vm2, %v2525_v30, %v2526_v20  ;;  %v2532_v36 = vsel %vm1062_vm2, %v2526_v20, %v2531_v15 }
 0x17d   : > { %v3814_v27 = vpop.eup %3813  ;;  %v3090_v32 = vadd.f32 1.0, %v3812_v51  ;;  %v2817_v26 = vsel %vm1353_vm3, %v2815_v33, %v2816_v39  ;;  %v2822_v14 = vsel %vm1353_vm3, %v2816_v39, %v2821_v12  ;;  %v867_v57 = vmul.f32 %v4236_v60, %v816_v17 }
 0x17e   : > { %v3092_v40 = vadd.f32 1.0, %v3814_v27  ;;  %v2595_v23 = vadd.f32 %v2527_v3, %v2305_v22  ;;  %v2597_v4 = vadd.f32 %v2532_v36, %v2307_v50  ;;  %v985_v58 = vmul.f32 %v5790_v42, %v929_v59  ;;  %v1626_v36 = vld [vmem:[#allocation2 + $0xc8] sm:$0xfe] }
 0x17f   : > { %v3122_v1 = vmul.f32 %v3090_v32, %v5412_v53  ;;  %v987_v8 = vmul.f32 %v5790_v42, %v816_v17  ;;  %v989_v44 = vmul.f32 %v5790_v42, %v931_v2  ;;  %v1222_v53 = vld [vmem:[#allocation2 + $0xb8] sm:$0x3]  ;;  %v1276_v37 = vmul.f32 %v4275_v11, %v1220_v63 }
 0x180   : > { %v3124_v6 = vmul.f32 %v3092_v40, %v5414_v18  ;;  %v2885_v31 = vadd.f32 %v2817_v26, %v2595_v23  ;;  %v2887_v30 = vadd.f32 %v2822_v14, %v2597_v4  ;;  %v1096_v55 = vrot.slane %v985_v58, 1  ;;  %v1916_v23 = vld [vmem:[#allocation2 + $0xc8] sm:$0xfc] }
 0x181   : > { %v1278_v51 = vmul.f32 %v4275_v11, %v816_v17  ;;  %v1097_v60 = vrot.slane %v987_v8, 1  ;;  %v1101_v15 = vrot.slane %v989_v44, 1  ;;  %v1280_v33 = vmul.f32 %v4275_v11, %v1222_v53  ;;  %v2209_v8 = vld [vmem:[#allocation2 + $0x108] sm:$0xff] }
 0x182   : > { %v3140_v41 = vpack.c.bf16 %v3124_v6, %v3122_v1  ;;  %v2929_v18 = vadd.f32 %v5791_v45, %v2885_v31  ;;  %v2931_v20 = vadd.f32 %v5791_v45, %v2887_v30  ;;  %v1387_v27 = vrot.slane %v1276_v37, 2  ;;  %v1628_v1 = vld [vmem:[#allocation2 + $0xe8] sm:$0x1]  ;;  %v2207_v30 = vld [vmem:[#allocation2 + $0xf8] sm:$0xff] }
 0x183   : > { %v1388_v32 = vrot.slane %v1278_v51, 2  ;;  %v1562_v42 = vmul.f32 %v5195_v52, %v5793_v24  ;;  %v5831_v22 = vunpack.c.l.bf16 %v5012_v13  ;;  %v5832_v39 = vunpack.c.l.bf16 %v5015_v56  ;;  %v1918_v31 = vld [vmem:[#allocation2 + $0xe8] sm:$0x3] }
 0x184   : > { %3364 = vmatprep.mubr.bf16.mxu1 %v3140_v41  ;;  %v1098_v40 = vsel %vm1062_vm2, %v1096_v55, %v1097_v60  ;;  %v1102_v3 = vsel %vm1062_vm2, %v1097_v60, %v1101_v15  ;;  %v1392_v2 = vrot.slane %v1280_v33, 2  ;;  %v1564_v6 = vmul.f32 %v5198_v29, %v5793_v24  ;;  %v2322_v55 = vld [vmem:[#allocation2 + $0xf8] sm:$0xfe]  ;;  %v2324_v33 = vld [vmem:[#allocation2 + $0x118] sm:$0x1] }
 0x185   : > { %v2961_v50 = vadd.f32 %v2929_v18, %v5831_v22  ;;  %v2963_v59 = vadd.f32 %v2931_v20, %v5832_v39  ;;  %v1188_v12 = vadd.f32 %v1098_v40, %v865_v62  ;;  %v1190_v17 = vadd.f32 %v1102_v3, %v867_v57 }
 0x186   : > { %v1389_v11 = vsel %vm1353_vm3, %v1387_v27, %v1388_v32  ;;  %v1393_v56 = vsel %vm1353_vm3, %v1388_v32, %v1392_v2  ;;  %v1682_v62 = vmul.f32 %v5795_v25, %v1626_v36  ;;  %v1684_v57 = vmul.f32 %v5198_v29, %v5795_v25  ;;  %v2612_v27 = vld [vmem:[#allocation2 + $0xf8] sm:$0xfc] }
 0x187   : > { %v5469_v4 = vmul.f32 0.5, %v2961_v50  ;;  %v5471_v52 = vmul.f32 0.5, %v2963_v59  ;;  %v3025_v13 = vmul.f32 0.70710677, %v2961_v50  ;;  %v3027_v26 = vmul.f32 0.70710677, %v2963_v59 }
 0x188   : > { %v1479_v63 = vadd.f32 %v1389_v11, %v1188_v12  ;;  %v1481_v14 = vadd.f32 %v1393_v56, %v1190_v17  ;;  %v1686_v58 = vmul.f32 %v5795_v25, %v1628_v1  ;;  %v1792_v53 = vrot.slane %v1682_v62, 1  ;;  %v813_v17 = vld [vmem:[#allocation2 + $0x90] sm:$0xff] }
 0x189   : > { %3815 = verf.f32 %v3025_v13  ;;  %v1972_v41 = vmul.f32 %v5796_v21, %v1916_v23  ;;  %v1793_v24 = vrot.slane %v1684_v57, 1  ;;  %v1974_v18 = vmul.f32 %v5198_v29, %v5796_v21 }
 0x18a   : > { %3817 = verf.f32 %v3027_v26  ;;  %v1594_v44 = vadd.f32 %v1562_v42, %v1479_v63  ;;  %v1596_v37 = vadd.f32 %v1564_v6, %v1481_v14  ;;  %v1797_v51 = vrot.slane %v1686_v58, 1  ;;  %v928_v6 = vld [vmem:[#allocation2 + $0x90] sm:$0xfe]  ;;  %v815_v58 = vld [vmem:[#allocation2 + $0xa0] sm:$0xff] }
 0x18b   : > { %v1976_v20 = vmul.f32 %v5796_v21, %v1918_v31  ;;  %v2082_v60 = vrot.slane %v1972_v41, 2  ;;  %v2258_v25 = vmul.f32 %v5797_v19, %v2207_v30  ;;  %v2260_v15 = vmul.f32 %v5797_v19, %v2209_v8  ;;  %v2614_v21 = vld [vmem:[#allocation2 + $0x118] sm:$0x3] }
 0x18c   : > { %v1794_v32 = vsel %vm1062_vm2, %v1792_v53, %v1793_v24  ;;  %v1798_v42 = vsel %vm1062_vm2, %v1793_v24, %v1797_v51  ;;  %v2083_v22 = vrot.slane %v1974_v18, 2  ;;  %v2378_v50 = vmul.f32 %v4339_v9, %v2322_v55  ;;  %v5496_v62 = vpop.f32.mrb[0].mxu0  ;;  %v930_v55 = vld [vmem:[#allocation2 + $0xb0] sm:$0x1] }
 0x18d   : > { %v1884_v39 = vadd.f32 %v1794_v32, %v1594_v44  ;;  %v1886_v59 = vadd.f32 %v1798_v42, %v1596_v37  ;;  %v2087_v40 = vrot.slane %v1976_v20, 2  ;;  %v2380_v29 = vmul.f32 %v4339_v9, %v2209_v8  ;;  %v5500_v30 = vpop.f32.mrb[1].mxu0 }
 0x18e   : > { %v2084_v3 = vsel %vm1353_vm3, %v2082_v60, %v2083_v22  ;;  %v2382_v36 = vmul.f32 %v4339_v9, %v2324_v33  ;;  %v2488_v19 = vrot.slane %v2378_v50, 1  ;;  %v2668_v12 = vmul.f32 %v4360_v28, %v2612_v27  ;;  %v5504_v37 = vpop.f32.mrb[2].mxu0 }
 0x18f   : > { %v2088_v11 = vsel %vm1353_vm3, %v2083_v22, %v2087_v40  ;;  %v2174_v2 = vadd.f32 %v2084_v3, %v1884_v39  ;;  %v2489_v1 = vrot.slane %v2380_v29, 1  ;;  %v2670_v23 = vmul.f32 %v4360_v28, %v2209_v8  ;;  %v5508_v33 = vpop.f32.mrb[3].mxu0 }
 0x190   : > { %v2176_v13 = vadd.f32 %v2088_v11, %v1886_v59  ;;  %v2493_v26 = vrot.slane %v2382_v36, 1  ;;  %v2672_v56 = vmul.f32 %v4360_v28, %v2614_v21  ;;  %v2778_v63 = vrot.slane %v2668_v12, 2 }
 0x191   : > { %v2290_v14 = vadd.f32 %v2258_v25, %v2174_v2  ;;  %v2490_v9 = vsel %vm1062_vm2, %v2488_v19, %v2489_v1  ;;  %v2779_v57 = vrot.slane %v2670_v23, 2  ;;  %v864_v31 = vmul.f32 %v4392_v43, %v813_v17  ;;  %v1219_v25 = vld [vmem:[#allocation2 + $0x90] sm:$0xfc] }
 0x192   : > { %v2292_v53 = vadd.f32 %v2260_v15, %v2176_v13  ;;  %v2494_v8 = vsel %vm1062_vm2, %v2489_v1, %v2493_v26  ;;  %v2783_v41 = vrot.slane %v2672_v56, 2  ;;  %v866_v28 = vmul.f32 %v4392_v43, %v815_v58  ;;  %v1221_v43 = vld [vmem:[#allocation2 + $0xb0] sm:$0x3]  ;;  %v5833_v1 = vld [vmem:[#allocation10_spill] sm:$0xff] }
 0x193   : > { %v3816_v44 = vpop.eup %3815  ;;  %v2580_v18 = vadd.f32 %v2490_v9, %v2290_v14  ;;  %v2780_v20 = vsel %vm1353_vm3, %v2778_v63, %v2779_v57  ;;  %v984_v60 = vmul.f32 %v4239_v61, %v928_v6  ;;  %v986_v42 = vmul.f32 %v4239_v61, %v815_v58  ;;  %v5835_v63 = vld [vmem:[#allocation11_spill] sm:$0xff] }
 0x194   : > { %v3818_v24 = vpop.eup %3817  ;;  %v3089_v51 = vadd.f32 1.0, %v3816_v44  ;;  %v2582_v15 = vadd.f32 %v2494_v8, %v2292_v53  ;;  %v2784_v32 = vsel %vm1353_vm3, %v2779_v57, %v2783_v41  ;;  %v988_v39 = vmul.f32 %v4239_v61, %v930_v55  ;;  %v1915_v41 = vld [vmem:[#allocation2 + $0xc0] sm:$0xfc] }
 0x195   : > { %v3091_v27 = vadd.f32 1.0, %v3818_v24  ;;  %v2870_v50 = vadd.f32 %v2780_v20, %v2580_v18  ;;  %v1093_v59 = vrot.slane %v984_v60, 1  ;;  %v1094_v21 = vrot.slane %v986_v42, 1  ;;  %v1917_v60 = vld [vmem:[#allocation2 + $0xe0] sm:$0x3] }
 0x196   : > { %v3121_v22 = vmul.f32 %v3089_v51, %v5469_v4  ;;  %v2872_v29 = vadd.f32 %v2784_v32, %v2582_v15  ;;  %v1275_v3 = vmul.f32 %v4272_v10, %v1219_v25  ;;  %v1099_v19 = vrot.slane %v988_v39, 1  ;;  %v2206_v25 = vld [vmem:[#allocation2 + $0xf0] sm:$0xff]  ;;  %v2208_v32 = vld [vmem:[#allocation2 + $0x100] sm:$0xff] }
 0x197   : > { %v3123_v40 = vmul.f32 %v3091_v27, %v5471_v52  ;;  %v2914_v36 = vadd.f32 %v4366_v38, %v2870_v50  ;;  %v1277_v12 = vmul.f32 %v4272_v10, %v815_v58  ;;  %v1279_v17 = vmul.f32 %v4272_v10, %v1221_v43  ;;  %v1627_v58 = vld [vmem:[#allocation2 + $0xe0] sm:$0x1]  ;;  %v2321_v42 = vld [vmem:[#allocation2 + $0xf0] sm:$0xfe] }
 0x198   : > { %v2916_v4 = vadd.f32 %v4366_v38, %v2872_v29  ;;  %v1095_v2 = vsel %vm1062_vm2, %v1093_v59, %v1094_v21  ;;  %v1384_v61 = vrot.slane %v1275_v3, 2  ;;  %v5834_v23 = vunpack.c.h.bf16 %v5833_v1  ;;  %v1625_v38 = vld [vmem:[#allocation2 + $0xc0] sm:$0xfe]  ;;  %v2323_v3 = vld [vmem:[#allocation2 + $0x110] sm:$0x1] }
 0x199   : > { %v3139_v11 = vpack.c.bf16 %v3123_v40, %v3121_v22  ;;  %v1100_v13 = vsel %vm1062_vm2, %v1094_v21, %v1099_v19  ;;  %v1187_v26 = vadd.f32 %v1095_v2, %v864_v31  ;;  %v1385_v56 = vrot.slane %v1277_v12, 2  ;;  %v2613_v2 = vld [vmem:[#allocation2 + $0x110] sm:$0x3] }
 0x19a   : > { %v2946_v52 = vadd.f32 %v2914_v36, %v5834_v23  ;;  %v5836_v6 = vunpack.c.h.bf16 %v5835_v63  ;;  %v1189_v9 = vadd.f32 %v1100_v13, %v866_v28  ;;  %v1390_v57 = vrot.slane %v1279_v17, 2  ;;  %v2611_v17 = vld [vmem:[#allocation2 + $0xf0] sm:$0xfc] }
 0x19b   : > { %3365 = vmatmul.mubr.bf16.gmra.mrb[12].mxu1 %v3139_v11  ;;  %v1561_v10 = vmul.f32 %v5272_v7, %v5803_v5  ;;  %v1386_v8 = vsel %vm1353_vm3, %v1384_v61, %v1385_v56  ;;  %v1563_v31 = vmul.f32 %v5277_v46, %v5803_v5  ;;  %v1681_v7 = vmul.f32 %v4285_v34, %v1625_v38  ;;  %v5562_v38 = vld [vmem:[%s5688_s6] ss:$0 sm:$0xff] }
 0x19c   : > { %v2948_v14 = vadd.f32 %v2916_v4, %v5836_v6  ;;  %v5528_v44 = vmul.f32 0.5, %v2946_v52  ;;  %v3010_v53 = vmul.f32 0.70710677, %v2946_v52  ;;  %v1391_v28 = vsel %vm1353_vm3, %v1385_v56, %v1390_v57 }
 0x19d   : > { %v1478_v51 = vadd.f32 %v1386_v8, %v1187_v26  ;;  %v1480_v18 = vadd.f32 %v1391_v28, %v1189_v9  ;;  %v1683_v20 = vmul.f32 %v5277_v46, %v4285_v34  ;;  %v1685_v5 = vmul.f32 %v4285_v34, %v1627_v58 }
 0x19e   : > { %v5533_v55 = vmul.f32 0.5, %v2948_v14  ;;  %v3012_v24 = vmul.f32 0.70710677, %v2948_v14  ;;  %3819 = verf.f32 %v3010_v53  ;;  %v1971_v15 = vmul.f32 %v4296_v47, %v1915_v41 }
 0x19f   : > { %v1593_v27 = vadd.f32 %v1561_v10, %v1478_v51  ;;  %v1595_v43 = vadd.f32 %v1563_v31, %v1480_v18  ;;  %v1789_v22 = vrot.slane %v1681_v7, 1  ;;  %v1790_v50 = vrot.slane %v1683_v20, 1 }
 0x1a0   : > { %3821 = verf.f32 %v3012_v24  ;;  %v1973_v39 = vmul.f32 %v5277_v46, %v4296_v47  ;;  %v1795_v59 = vrot.slane %v1685_v5, 1  ;;  %v1975_v40 = vmul.f32 %v4296_v47, %v1917_v60  ;;  %v5837_v60 = vld [vmem:[#allocation15_spill] sm:$0xff] }
 0x1a1   : > { %v2079_v29 = vrot.slane %v1971_v15, 2  ;;  %v2257_v21 = vmul.f32 %v4455_v35, %v2206_v25  ;;  %v1791_v34 = vsel %vm1062_vm2, %v1789_v22, %v1790_v50  ;;  %v2259_v19 = vmul.f32 %v4455_v35, %v2208_v32 }
 0x1a2   : > { %v2080_v36 = vrot.slane %v1973_v39, 2  ;;  %v2377_v12 = vmul.f32 %v4336_v49, %v2321_v42  ;;  %v1796_v11 = vsel %vm1062_vm2, %v1790_v50, %v1795_v59  ;;  %v1883_v46 = vadd.f32 %v1791_v34, %v1593_v27 }
 0x1a3   : > { %v2085_v4 = vrot.slane %v1975_v40, 2  ;;  %v2379_v47 = vmul.f32 %v4336_v49, %v2208_v32  ;;  %v1885_v61 = vadd.f32 %v1796_v11, %v1595_v43  ;;  %v2381_v52 = vmul.f32 %v4336_v49, %v2323_v3 }
 0x1a4   : > { %v2081_v23 = vsel %vm1353_vm3, %v2079_v29, %v2080_v36  ;;  %v2485_v13 = vrot.slane %v2377_v12, 1  ;;  %v2667_v6 = vmul.f32 %v4354_v0, %v2611_v17  ;;  %v2669_v57 = vmul.f32 %v4354_v0, %v2208_v32 }
 0x1a5   : > { %v2086_v35 = vsel %vm1353_vm3, %v2080_v36, %v2085_v4  ;;  %v2173_v26 = vadd.f32 %v2081_v23, %v1883_v46  ;;  %v2486_v56 = vrot.slane %v2379_v47, 1  ;;  %v2491_v9 = vrot.slane %v2381_v52, 1 }
 0x1a6   : > { %v2175_v14 = vadd.f32 %v2086_v35, %v1885_v61  ;;  %v2671_v10 = vmul.f32 %v4354_v0, %v2613_v2  ;;  %v2775_v53 = vrot.slane %v2667_v6, 2  ;;  %v3635_v8 = vadd.f32 %v5359_v48, %v5354_v16 }
 0x1a7   : > { %v2289_v49 = vadd.f32 %v2257_v21, %v2173_v26  ;;  %v2487_v58 = vsel %vm1062_vm2, %v2485_v13, %v2486_v56  ;;  %v2492_v24 = vsel %vm1062_vm2, %v2486_v56, %v2491_v9  ;;  %v2776_v28 = vrot.slane %v2669_v57, 2 }
 0x1a8   : > { %v3820_v31 = vpop.eup %3819  ;;  %v2291_v41 = vadd.f32 %v2259_v19, %v2175_v14  ;;  %v2781_v51 = vrot.slane %v2671_v10, 2  ;;  %v3343_v20 = vadd.f32 %v3635_v8, %v5562_v38  ;;  %v3638_v25 = vadd.f32 %v5837_v60, %v5364_v54 }
 0x1a9   : > { %v3074_v0 = vadd.f32 1.0, %v3820_v31  ;;  %v2579_v7 = vadd.f32 %v2487_v58, %v2289_v49  ;;  %v2777_v15 = vsel %vm1353_vm3, %v2775_v53, %v2776_v28  ;;  %v3611_v54 = vadd.f32 %v5500_v30, %v5496_v62 }
 0x1aa   : > { %v3822_v18 = vpop.eup %3821  ;;  %v2581_v5 = vadd.f32 %v2492_v24, %v2291_v41  ;;  %v2782_v16 = vsel %vm1353_vm3, %v2776_v28, %v2781_v51  ;;  %3381 = vst [vmem:[%s5574_s30 + $0x40] sm:$0xff] %v3343_v20  ;;  %v3346_v42 = vadd.f32 %v3638_v25, %v5562_v38  ;;  %v3614_v50 = vadd.f32 %v5508_v33, %v5504_v37 }
 0x1ab   : > { %v3076_v27 = vadd.f32 1.0, %v3822_v18  ;;  %v3106_v48 = vmul.f32 %v3074_v0, %v5528_v44  ;;  %v2869_v32 = vadd.f32 %v2777_v15, %v2579_v7  ;;  %v3311_v39 = vadd.f32 %v3611_v54, %v5562_v38 }
 0x1ac   : > { %v2871_v22 = vadd.f32 %v2782_v16, %v2581_v5  ;;  %3382 = vst [vmem:[%s5574_s30 + $0x48] sm:$0xff] %v3346_v42  ;;  %v3314_v29 = vadd.f32 %v3614_v50, %v5562_v38  ;;  %v5838_v21 = vunpack.c.l.bf16 %v5833_v1  ;;  %v5839_v62 = vunpack.c.l.bf16 %v5835_v63 }
 0x1ad   : > { %v3108_v43 = vmul.f32 %v3076_v27, %v5533_v55  ;;  %v2913_v44 = vadd.f32 %v5791_v45, %v2869_v32  ;;  %3373 = vst [vmem:[%s5574_s30] sm:$0xff] %v3311_v39 }
 0x1ae   : > { %v2915_v40 = vadd.f32 %v5791_v45, %v2871_v22  ;;  %3374 = vst [vmem:[%s5574_s30 + $0x8] sm:$0xff] %v3314_v29 }
 0x1af   : > { %v3132_v59 = vpack.c.bf16 %v3108_v43, %v3106_v48  ;;  %v2945_v3 = vadd.f32 %v2913_v44, %v5838_v21 }
 0x1b0   : > { %v2947_v30 = vadd.f32 %v2915_v40, %v5839_v62 }
 0x1b1   : > { %3332 = vmatprep.mubr.bf16.mxu0 %v3132_v59  ;;  %v3009_v37 = vmul.f32 0.70710677, %v2945_v3  ;;  %v2977_v34 = vmul.f32 0.5, %v2945_v3 }
 0x1b2   : > { %v3011_v33 = vmul.f32 0.70710677, %v2947_v30  ;;  %v2979_v19 = vmul.f32 0.5, %v2947_v30 }
 0x1b3   : > { %3823 = verf.f32 %v3009_v37 }
 0x1b4   : > { %3825 = verf.f32 %v3011_v33 }
 0x1b7   : > { %v3639_v55 = vpop.f32.mrb[4].mxu1 }
 0x1b8   : > { %v3640_v36 = vpop.f32.mrb[5].mxu1 }
 0x1b9   : > { %v3641_v12 = vadd.f32 %v3640_v36, %v3639_v55  ;;  %v3642_v1 = vpop.f32.mrb[6].mxu1 }
 0x1ba   : > { %v3643_v46 = vpop.f32.mrb[7].mxu1 }
 0x1bb   : > { %v3351_v63 = vadd.f32 %v3641_v12, %v5562_v38  ;;  %v3644_v47 = vadd.f32 %v3643_v46, %v3642_v1 }
 0x1bd   : > { %v3824_v45 = vpop.eup %3823  ;;  %3383 = vst [vmem:[%s5574_s30 + $0x50] sm:$0xff] %v3351_v63  ;;  %v3354_v23 = vadd.f32 %v3644_v47, %v5562_v38 }
 0x1be   : > { %v3826_v17 = vpop.eup %3825  ;;  %v3073_v11 = vadd.f32 1.0, %v3824_v45 }
 0x1bf   : > { %v3075_v4 = vadd.f32 1.0, %v3826_v17  ;;  %3384 = vst [vmem:[%s5574_s30 + $0x58] sm:$0xff] %v3354_v23 }
 0x1c0   : > { %v3105_v2 = vmul.f32 %v3073_v11, %v2977_v34 }
 0x1c1   : > { %v3107_v61 = vmul.f32 %v3075_v4, %v2979_v19 }
 0x1c3   : > { %v3131_v52 = vpack.c.bf16 %v3107_v61, %v3105_v2 }
 0x1c5   : > { %3333 = vmatmul.mubr.bf16.gmra.mrb[12].mxu0 %v3131_v52 }
 0x1e4   : > { %v3615_v13 = vpop.f32.mrb[4].mxu0 }
 0x1e5   : > { %v3616_v35 = vpop.f32.mrb[5].mxu0 }
 0x1e6   : > { %v3617_v26 = vadd.f32 %v3616_v35, %v3615_v13  ;;  %v3618_v56 = vpop.f32.mrb[6].mxu0 }
 0x1e7   : > { %v3619_v6 = vpop.f32.mrb[7].mxu0 }
 0x1e8   : > { %v3319_v14 = vadd.f32 %v3617_v26, %v5562_v38  ;;  %v3620_v9 = vadd.f32 %v3619_v6, %v3618_v56 }
 0x1ea   : > { %3375 = vst [vmem:[%s5574_s30 + $0x10] sm:$0xff] %v3319_v14  ;;  %v3322_v57 = vadd.f32 %v3620_v9, %v5562_v38 }
 0x1ec   : > { %3376 = vst [vmem:[%s5574_s30 + $0x18] sm:$0xff] %v3322_v57 }
 0x213   : > { %v3645_v10 = vpop.f32.mrb[8].mxu1 }
 0x214   : > { %v3646_v49 = vpop.f32.mrb[9].mxu1 }
 0x215   : > { %v3647_v58 = vadd.f32 %v3646_v49, %v3645_v10  ;;  %v3648_v53 = vpop.f32.mrb[10].mxu1 }
 0x216   : > { %v3649_v8 = vpop.f32.mrb[11].mxu1 }
 0x217   : > { %v3359_v31 = vadd.f32 %v3647_v58, %v5562_v38  ;;  %v3650_v41 = vadd.f32 %v3649_v8, %v3648_v53 }
 0x219   : > { %3385 = vst [vmem:[%s5574_s30 + $0x60] sm:$0xff] %v3359_v31  ;;  %v3362_v24 = vadd.f32 %v3650_v41, %v5562_v38 }
 0x21b   : > { %3386 = vst [vmem:[%s5574_s30 + $0x68] sm:$0xff] %v3362_v24 }
 0x23e   : > { %v3621_v28 = vpop.f32.mrb[8].mxu0 }
 0x23f   : > { %v3622_v51 = vpop.f32.mrb[9].mxu0 }
 0x240   : > { %v3623_v18 = vadd.f32 %v3622_v51, %v3621_v28  ;;  %v3624_v0 = vpop.f32.mrb[10].mxu0 }
 0x241   : > { %v3625_v7 = vpop.f32.mrb[11].mxu0 }
 0x242   : > { %v3327_v20 = vadd.f32 %v3623_v18, %v5562_v38  ;;  %v3626_v60 = vadd.f32 %v3625_v7, %v3624_v0 }
 0x244   : > { %3377 = vst [vmem:[%s5574_s30 + $0x20] sm:$0xff] %v3327_v20  ;;  %v3330_v25 = vadd.f32 %v3626_v60, %v5562_v38 }
 0x246   : > { %3378 = vst [vmem:[%s5574_s30 + $0x28] sm:$0xff] %v3330_v25 }
 0x26e   : > { %v3651_v27 = vpop.f32.mrb[12].mxu1 }
 0x26f   : > { %v3652_v5 = vpop.f32.mrb[13].mxu1 }
 0x270   : > { %v3653_v15 = vadd.f32 %v3652_v5, %v3651_v27  ;;  %v3654_v16 = vpop.f32.mrb[14].mxu1 }
 0x271   : > { %v3655_v48 = vpop.f32.mrb[15].mxu1 }
 0x272   : > { %v3367_v32 = vadd.f32 %v3653_v15, %v5562_v38  ;;  %v3656_v42 = vadd.f32 %v3655_v48, %v3654_v16 }
 0x274   : > { %3387 = vst [vmem:[%s5574_s30 + $0x70] sm:$0xff] %v3367_v32  ;;  %v3370_v54 = vadd.f32 %v3656_v42, %v5562_v38 }
 0x276   : > { %3388 = vst [vmem:[%s5574_s30 + $0x78] sm:$0xff] %v3370_v54 }
 0x298   : > { %v3627_v43 = vpop.f32.mrb[12].mxu0 }
 0x299   : > { %v3628_v22 = vpop.f32.mrb[13].mxu0 }
 0x29a   : > { %v3629_v50 = vadd.f32 %v3628_v22, %v3627_v43  ;;  %v3630_v44 = vpop.f32.mrb[14].mxu0 }
 0x29b   : > { %v3631_v39 = vpop.f32.mrb[15].mxu0 }
 0x29c   : > { %v3335_v59 = vadd.f32 %v3629_v50, %v5562_v38  ;;  %v3632_v40 = vadd.f32 %v3631_v39, %v3630_v44 }
 0x29e   : > { %3379 = vst [vmem:[%s5574_s30 + $0x30] sm:$0xff] %v3335_v59  ;;  %v3338_v29 = vadd.f32 %v3632_v40, %v5562_v38 }
 0x2a0   : > { %3380 = vst [vmem:[%s5574_s30 + $0x38] sm:$0xff] %v3338_v29 }
 0x2a1   : > { %3841 = shalt.err (!%p3838_p13)
}
 0x2a2   : > { %s3842_s16 = scalar_lea.hbm %s5621_s29, 2048  ;;  %s3846_s10 = scalar_lea.hbm %s5689_s7, 8192 }
 0x2a3   : > { %p3843_p0 = scmp.ne.s32.totalorder %s5621_s29, %s3842_s16  ;;  %p3847_p4 = scmp.lt.u32.totalorder %s5621_s29, %s5689_s7 }
 0x2a4   : > { %p3848_p5 = scmp.lt.u32.totalorder %s3846_s10, %s3842_s16  ;;  %p3850_p7 = scmp.lt.u32.totalorder %s3842_s16, %s5621_s29 }
 0x2a5   : > { %p3844_p1 = pnand %p3843_p0, %p4019_p3 }
 0x2a6   : > { %p3849_p6 = por %p3848_p5, %p3847_p4 }
 0x2a7   : > { %p3845_p2 = pneg %p3844_p1 }
 0x2a8   : > { %p3851_p9 = por %p3850_p7, %p3849_p6 }
 0x2aa   : > { %p3852_p10 = pnand %p3851_p9, %p3845_p2 }
 0x2ac   : > { %3855 = shalt.err (!%p3852_p10)
}
 0x2ad   : > { %s3926_s9 = smov 128   ;;  %s3927_s18 = smov 8  }
 0x2ae   : > { %3673 = dma.vmem_to_hbm [thread:$0]  (%p4019_p3), %s5623_s17, 2048, %s5621_s29, %s5630_s27, %s3926_s9, %s3926_s9, %s3927_s18  }
 0x2af PF: > { %p3679_p11 = scmp.ge.s32.totalorder %s3922_s8, 2  ;;  %s3421_s12 = sand.u32 1, %s3894_s24  }
 0x2b0   : > { %s3422_s28 = scalar_lea.sflag [#allocation4], %s3421_s12 }
 0x2b1   : > { %p3676_p12 = pnand %p3679_p11, %p4028_p8 }
 0x2b3   : > { %3889 = dma.done.wait (!%p3676_p12), %s3422_s28, 2048  }
 0x2b4   : > { %3891 = vsyncadd (!%p3676_p12), %s3422_s28, 4294965248  ;;  %s20_s8 = sadd.s32 1, %s3922_s8   ;;  %s5840_s27 = sld [smem:[#allocation6_spill]] }
 0x2b5   : > { %p17_p13 = scmp.ge.s32.totalorder %s20_s8, 6   ;;  %s5841_s28 = sld [smem:[#allocation7_spill]] }
 0x2b6   : > { %s5842_s29 = sld [smem:[#allocation8_spill]]  ;;  %s5843_s30 = sld [smem:[#allocation9_spill]] }
 0x2b7   : > { %s5844_s24 = smov %s3898_s25  ;;  %s5845_s25 = smov %s3902_s26 }
 0x2b8   : > { %s5846_s26 = smov %s4037_s19  ;;  %19 = sbr.rel (!%p17_p13) target bundleno = 5 (0x5), region = 111 }
 0x2bf   :  { %3427 = vsyncpa [#allocation4], 1 }
 0x2c0   :  { %3429 = vsyncpa [#allocation4 + $0x1], 1 }

</bundles_post_ra>
